<compile_context>
chip_gen: v7x
topology: tpu7x:2x2x1
jax: 0.10.0
libtpu: 0.0.40
codegen_flags: <defaults>
</compile_context>

<pallas_src>
import jax
import jax.numpy as jnp
from jax.experimental import pallas as pl
from jax.experimental.pallas import tpu as pltpu

EPS = 1e-5
MATMUL_DTYPE = jnp.bfloat16  # BN renormalizes afterwards -> bf16 conv inputs are safe.


def _conv_stats_kernel(xp_ref, w_ref, y_ref, stats_ref, p_ref):
    # xp_ref   : (1, TR+2, W2+2, Cin) bf16  original-res rows (+1 halo row each side),
    #                                        W already nearest-x2 upsampled + reflect padded.
    # w_ref    : (Cout, 9*Cin)        bf16  transposed im2col weights.
    # y_ref    : (1, Cout, M)         f32   conv output tile, channel-major, lane-dense.
    # stats_ref: (1, Cout, 2)         f32   per-tile [sum, sum_of_squares] per channel.
    # p_ref    : (H2T, W2, 9*Cin)     f32   VMEM scratch: im2col staging.
    tr_p2, w2_p2, cin = xp_ref.shape[1], xp_ref.shape[2], xp_ref.shape[3]
    h2t, w2, k9 = p_ref.shape

    x = xp_ref[0].astype(jnp.float32)                      # (TR+2, W2+2, Cin)

    # Nearest x2 upsample along H: broadcast over an inserted leading (major) dim and
    # fold it; the minor (sublane, lane) dims are untouched -> cheap and layout-safe.
    u = jnp.broadcast_to(x[:, None, :, :], (tr_p2, 2, w2_p2, cin))
    u = u.reshape(2 * tr_p2, w2_p2, cin)                   # (2*TR+4, W2+2, Cin)
    # Window [1 : H2T+3) == reflect-pad of the H-upsampled tensor for this tile.
    upad = u[1:h2t + 3, :, :]                              # (H2T+2, W2+2, Cin)

    # im2col: stage the 9 shifted taps side by side in VMEM -> one K=9*Cin matmul.
    for kh in range(3):
        for kw in range(3):
            k0 = (kh * 3 + kw) * cin
            p_ref[:, :, k0:k0 + cin] = upad[kh:kh + h2t, kw:kw + w2, :]

    # (H2T, W2, K9) -> (M, K9): only major dims merge (W2 % 8 == 0), layout compatible.
    p = p_ref[...].reshape(h2t * w2, k9).astype(MATMUL_DTYPE)
    # (Cout, K) x (M, K) contracted on K -> (Cout, M): result is born channel-major
    # with M (=H2T*W2) on the 128-lane axis -> lane-dense, unmasked stores.
    acc = jax.lax.dot_general(
        w_ref[...], p,
        dimension_numbers=(((1,), (1,)), ((), ())),
        preferred_element_type=jnp.float32)                # (Cout, M) f32

    # Single-pass partial BN statistics for this tile (reduced globally in wrapper).
    stats_ref[0, :, 0:1] = jnp.sum(acc, axis=1, keepdims=True)
    stats_ref[0, :, 1:2] = jnp.sum(acc * acc, axis=1, keepdims=True)
    y_ref[0] = acc


def _bn_relu_kernel(y_ref, scale_ref, bias_ref, o_ref):
    # y_ref/o_ref: (1, Cout, M) f32, scale/bias: (Cout, 1) f32
    y = y_ref[0]                                           # (Cout, M)
    o_ref[0] = jnp.maximum(y * scale_ref[...] + bias_ref[...], 0.0)


def decoder_block(x_nchw, weight_hwio, gamma, beta, up_scale_factor=2):
    """(N, Cin, H, W) -> (N, Cout, 2H, 2W); matches DecoderBlock(...)(x) forward
    (training-mode BatchNorm, i.e. batch statistics with biased variance)."""
    # TODO(synk): only up_scale_factor=2, interp_mode='nearest', block_num=1 are
    # implemented in-kernel (the nearest-x2 phase mapping is hard-coded).
    assert up_scale_factor == 2
    N, Cin, H, W = x_nchw.shape
    Cout = weight_hwio.shape[-1]
    H2, W2 = 2 * H, 2 * W
    K9 = 9 * Cin

    # Row-tile size at original resolution. For large shapes / v7x (64 MiB VMEM),
    # re-derive TR so (double-buffered input tile + f32 output tile + im2col scratch)
    # stays a few MiB; at these demo shapes everything is tiny.
    TR = 8 if H % 8 == 0 else H
    n_t = H // TR
    H2T = 2 * TR
    M = H2T * W2
    assert W2 % 8 == 0, "sublane-merging reshape in the kernel needs W2 % 8 == 0"

    # ---- wrapper-side layout plumbing (cheap, original-resolution rows) ----
    x_nhwc = jnp.transpose(x_nchw, (0, 2, 3, 1))                        # (N, H, W, Cin)
    xw = jnp.repeat(x_nhwc, 2, axis=2)                                  # nearest x2 along W
    xw = jnp.pad(xw, ((0, 0), (0, 0), (1, 1), (0, 0)), mode="reflect")  # reflect pad (W)
    xw = jnp.pad(xw, ((0, 0), (1, 1), (0, 0), (0, 0)), mode="edge")     # == reflect of H-upsampled
    # Overlapping row windows (1 halo row each side) so tiling stays plain Blocked.
    row_idx = jnp.arange(n_t)[:, None] * TR + jnp.arange(TR + 2)[None, :]
    xp_tiles = xw[:, row_idx]                                           # (N, n_t, TR+2, W2+2, Cin)
    xp_tiles = xp_tiles.reshape(N * n_t, TR + 2, W2 + 2, Cin).astype(MATMUL_DTYPE)

    # im2col weights, pre-transposed to (Cout, 9*Cin) so the kernel's single matmul
    # directly yields the channel-major, lane-dense (Cout, M) tile.
    w_t = jnp.transpose(weight_hwio.reshape(K9, Cout)).astype(MATMUL_DTYPE)

    cparams = pltpu.CompilerParams(
        dimension_semantics=("parallel", "parallel"),
        vmem_limit_bytes=32 * 1024 * 1024)

    # ---- pass 1: conv (one K=9*Cin bf16 matmul) + per-tile BN partial stats ----
    conv_y, stats = pl.pallas_call(
        _conv_stats_kernel,
        out_shape=(
            jax.ShapeDtypeStruct((N, Cout, n_t * M), jnp.float32),
            jax.ShapeDtypeStruct((N * n_t, Cout, 2), jnp.float32),
        ),
        grid=(N, n_t),
        in_specs=[
            pl.BlockSpec((1, TR + 2, W2 + 2, Cin), lambda n, t: (n * n_t + t, 0, 0, 0)),
            pl.BlockSpec((Cout, K9), lambda n, t: (0, 0)),
        ],
        out_specs=(
            pl.BlockSpec((1, Cout, M), lambda n, t: (n, 0, t)),
            pl.BlockSpec((1, Cout, 2), lambda n, t: (n * n_t + t, 0, 0)),
        ),
        scratch_shapes=[pltpu.VMEM((H2T, W2, K9), jnp.float32)],
        compiler_params=cparams,
    )(xp_tiles, w_t)

    # ---- tiny global BN-stat reduction (training mode: biased batch variance) ----
    cnt = float(N * H2 * W2)
    s = jnp.sum(stats, axis=0)                             # (Cout, 2)
    mean = s[:, 0] / cnt
    var = jnp.maximum(s[:, 1] / cnt - mean * mean, 0.0)    # E[x^2]-E[x]^2, f32
    scale = gamma.astype(jnp.float32) * jax.lax.rsqrt(var + EPS)
    bias = beta.astype(jnp.float32) - mean * scale
    scale = scale.reshape(Cout, 1)
    bias = bias.reshape(Cout, 1)

    # ---- pass 2: normalize + affine + ReLU (lane-dense, fully parallel) ----
    out = pl.pallas_call(
        _bn_relu_kernel,
        out_shape=jax.ShapeDtypeStruct((N, Cout, n_t * M), jnp.float32),
        grid=(N, n_t),
        in_specs=[
            pl.BlockSpec((1, Cout, M), lambda n, t: (n, 0, t)),
            pl.BlockSpec((Cout, 1), lambda n, t: (0, 0)),
            pl.BlockSpec((Cout, 1), lambda n, t: (0, 0)),
        ],
        out_specs=pl.BlockSpec((1, Cout, M), lambda n, t: (n, 0, t)),
        compiler_params=cparams,
    )(conv_y, scale, bias)

    # Channel-major tiles are already NCHW-contiguous: free reshape, no transpose.
    return out.reshape(N, Cout, H2, W2)


if __name__ == "__main__":
    # Shapes consistent with the module: in_planes=4, out_planes=8, batch=2,
    # spatial=16, up_scale_factor=2 (default), block_num=1 (default).
    N, Cin, H, W = 2, 4, 16, 16
    Cout = 8

    key = jax.random.PRNGKey(0)
    kx, kw, kg, kb = jax.random.split(key, 4)

    x = jax.random.normal(kx, (N, Cin, H, W), dtype=jnp.float32)
    # Conv2d weight (bias=False because use_batchnorm=True), HWIO layout.
    weight_hwio = jax.random.normal(kw, (3, 3, Cin, Cout), dtype=jnp.float32) * 0.1
    # BatchNorm affine params (perturbed from gamma=1, beta=0 so the affine path is exercised).
    gamma = 1.0 + 0.1 * jax.random.normal(kg, (Cout,), dtype=jnp.float32)
    beta = 0.1 * jax.random.normal(kb, (Cout,), dtype=jnp.float32)

    out = jax.jit(decoder_block)(x, weight_hwio, gamma, beta)
    out = jax.block_until_ready(out)
    assert out.shape == (N, Cout, H * 2, W * 2), out.shape
    print("KERNEL_OK")
</pallas_src>

<mosaic_0001>
module attributes {stable_mosaic.version = 11 : i64} {
  func.func @_conv_stats_kernel(%arg0: i32, %arg1: i32, %arg2: memref<1x10x34x4xbf16, #tpu.memory_space<vmem>>, %arg3: memref<8x36xbf16, #tpu.memory_space<vmem>>, %arg4: memref<1x8x512xf32, #tpu.memory_space<vmem>>, %arg5: memref<1x8x2xf32, #tpu.memory_space<vmem>>, %arg6: memref<16x32x36xf32, #tpu.memory_space<vmem>>) attributes {dimension_semantics = [#tpu.dimension_semantics<parallel>, #tpu.dimension_semantics<parallel>], iteration_bounds = array<i64: 2, 2>, scalar_prefetch = 0 : i64, scratch_operands = 1 : i64, tpu.core_type = #tpu.core_type<tc>, window_params = [{transform_indices = @transform_0, window_bounds = array<i64: 1, 10, 34, 4>}, {pipeline_mode = #tpu.pipeline_mode<synchronous>, transform_indices = @transform_1, window_bounds = array<i64: 8, 36>}, {transform_indices = @transform_2, window_bounds = array<i64: 1, 8, 512>}, {transform_indices = @transform_3, window_bounds = array<i64: 1, 8, 2>}]} {
    %c0 = arith.constant 0 : index
    %c0_0 = arith.constant 0 : index
    %c0_1 = arith.constant 0 : index
    %c0_2 = arith.constant 0 : index
    %0 = vector.load %arg2[%c0, %c0_0, %c0_1, %c0_2] : memref<1x10x34x4xbf16, #tpu.memory_space<vmem>>, vector<1x10x34x4xbf16>
    %1 = vector.shape_cast %0 : vector<1x10x34x4xbf16> to vector<10x34x4xbf16>
    %2 = arith.extf %1 : vector<10x34x4xbf16> to vector<10x34x4xf32>
    %3 = vector.shape_cast %2 : vector<10x34x4xf32> to vector<10x1x34x4xf32>
    %4 = vector.shape_cast %3 : vector<10x1x34x4xf32> to vector<10x1x34x4xf32>
    %5 = vector.broadcast %4 : vector<10x1x34x4xf32> to vector<10x2x34x4xf32>
    %6 = vector.shape_cast %5 : vector<10x2x34x4xf32> to vector<20x34x4xf32>
    %7 = vector.extract_strided_slice %6 {offsets = [1, 0, 0], sizes = [18, 34, 4], strides = [1, 1, 1]} : vector<20x34x4xf32> to vector<18x34x4xf32>
    %8 = vector.extract_strided_slice %7 {offsets = [0, 0, 0], sizes = [16, 32, 4], strides = [1, 1, 1]} : vector<18x34x4xf32> to vector<16x32x4xf32>
    %c0_3 = arith.constant 0 : index
    %c0_4 = arith.constant 0 : index
    %c0_5 = arith.constant 0 : index
    %9 = vector.load %arg6[%c0_3, %c0_4, %c0_5] : memref<16x32x36xf32, #tpu.memory_space<vmem>>, vector<16x32x4xf32>
    tpu.vector_store %arg6[%c0_3, %c0_4, %c0_5], %8 {strides = array<i32>} : memref<16x32x36xf32, #tpu.memory_space<vmem>>, vector<16x32x4xf32>,
    %10 = vector.extract_strided_slice %7 {offsets = [0, 1, 0], sizes = [16, 32, 4], strides = [1, 1, 1]} : vector<18x34x4xf32> to vector<16x32x4xf32>
    %c0_6 = arith.constant 0 : index
    %c0_7 = arith.constant 0 : index
    %c4 = arith.constant 4 : index
    %11 = vector.load %arg6[%c0_6, %c0_7, %c4] : memref<16x32x36xf32, #tpu.memory_space<vmem>>, vector<16x32x4xf32>
    tpu.vector_store %arg6[%c0_6, %c0_7, %c4], %10 {strides = array<i32>} : memref<16x32x36xf32, #tpu.memory_space<vmem>>, vector<16x32x4xf32>,
    %12 = vector.extract_strided_slice %7 {offsets = [0, 2, 0], sizes = [16, 32, 4], strides = [1, 1, 1]} : vector<18x34x4xf32> to vector<16x32x4xf32>
    %c0_8 = arith.constant 0 : index
    %c0_9 = arith.constant 0 : index
    %c8 = arith.constant 8 : index
    %13 = vector.load %arg6[%c0_8, %c0_9, %c8] : memref<16x32x36xf32, #tpu.memory_space<vmem>>, vector<16x32x4xf32>
    tpu.vector_store %arg6[%c0_8, %c0_9, %c8], %12 {strides = array<i32>} : memref<16x32x36xf32, #tpu.memory_space<vmem>>, vector<16x32x4xf32>,
    %14 = vector.extract_strided_slice %7 {offsets = [1, 0, 0], sizes = [16, 32, 4], strides = [1, 1, 1]} : vector<18x34x4xf32> to vector<16x32x4xf32>
    %c0_10 = arith.constant 0 : index
    %c0_11 = arith.constant 0 : index
    %c12 = arith.constant 12 : index
    %15 = vector.load %arg6[%c0_10, %c0_11, %c12] : memref<16x32x36xf32, #tpu.memory_space<vmem>>, vector<16x32x4xf32>
    tpu.vector_store %arg6[%c0_10, %c0_11, %c12], %14 {strides = array<i32>} : memref<16x32x36xf32, #tpu.memory_space<vmem>>, vector<16x32x4xf32>,
    %16 = vector.extract_strided_slice %7 {offsets = [1, 1, 0], sizes = [16, 32, 4], strides = [1, 1, 1]} : vector<18x34x4xf32> to vector<16x32x4xf32>
    %c0_12 = arith.constant 0 : index
    %c0_13 = arith.constant 0 : index
    %c16 = arith.constant 16 : index
    %17 = vector.load %arg6[%c0_12, %c0_13, %c16] : memref<16x32x36xf32, #tpu.memory_space<vmem>>, vector<16x32x4xf32>
    tpu.vector_store %arg6[%c0_12, %c0_13, %c16], %16 {strides = array<i32>} : memref<16x32x36xf32, #tpu.memory_space<vmem>>, vector<16x32x4xf32>,
    %18 = vector.extract_strided_slice %7 {offsets = [1, 2, 0], sizes = [16, 32, 4], strides = [1, 1, 1]} : vector<18x34x4xf32> to vector<16x32x4xf32>
    %c0_14 = arith.constant 0 : index
    %c0_15 = arith.constant 0 : index
    %c20 = arith.constant 20 : index
    %19 = vector.load %arg6[%c0_14, %c0_15, %c20] : memref<16x32x36xf32, #tpu.memory_space<vmem>>, vector<16x32x4xf32>
    tpu.vector_store %arg6[%c0_14, %c0_15, %c20], %18 {strides = array<i32>} : memref<16x32x36xf32, #tpu.memory_space<vmem>>, vector<16x32x4xf32>,
    %20 = vector.extract_strided_slice %7 {offsets = [2, 0, 0], sizes = [16, 32, 4], strides = [1, 1, 1]} : vector<18x34x4xf32> to vector<16x32x4xf32>
    %c0_16 = arith.constant 0 : index
    %c0_17 = arith.constant 0 : index
    %c24 = arith.constant 24 : index
    %21 = vector.load %arg6[%c0_16, %c0_17, %c24] : memref<16x32x36xf32, #tpu.memory_space<vmem>>, vector<16x32x4xf32>
    tpu.vector_store %arg6[%c0_16, %c0_17, %c24], %20 {strides = array<i32>} : memref<16x32x36xf32, #tpu.memory_space<vmem>>, vector<16x32x4xf32>,
    %22 = vector.extract_strided_slice %7 {offsets = [2, 1, 0], sizes = [16, 32, 4], strides = [1, 1, 1]} : vector<18x34x4xf32> to vector<16x32x4xf32>
    %c0_18 = arith.constant 0 : index
    %c0_19 = arith.constant 0 : index
    %c28 = arith.constant 28 : index
    %23 = vector.load %arg6[%c0_18, %c0_19, %c28] : memref<16x32x36xf32, #tpu.memory_space<vmem>>, vector<16x32x4xf32>
    tpu.vector_store %arg6[%c0_18, %c0_19, %c28], %22 {strides = array<i32>} : memref<16x32x36xf32, #tpu.memory_space<vmem>>, vector<16x32x4xf32>,
    %24 = vector.extract_strided_slice %7 {offsets = [2, 2, 0], sizes = [16, 32, 4], strides = [1, 1, 1]} : vector<18x34x4xf32> to vector<16x32x4xf32>
    %c0_20 = arith.constant 0 : index
    %c0_21 = arith.constant 0 : index
    %c32 = arith.constant 32 : index
    %25 = vector.load %arg6[%c0_20, %c0_21, %c32] : memref<16x32x36xf32, #tpu.memory_space<vmem>>, vector<16x32x4xf32>
    tpu.vector_store %arg6[%c0_20, %c0_21, %c32], %24 {strides = array<i32>} : memref<16x32x36xf32, #tpu.memory_space<vmem>>, vector<16x32x4xf32>,
    %c0_22 = arith.constant 0 : index
    %c0_23 = arith.constant 0 : index
    %c0_24 = arith.constant 0 : index
    %26 = vector.load %arg6[%c0_22, %c0_23, %c0_24] : memref<16x32x36xf32, #tpu.memory_space<vmem>>, vector<16x32x36xf32>
    %27 = vector.shape_cast %26 : vector<16x32x36xf32> to vector<512x36xf32>
    %28 = arith.truncf %27 : vector<512x36xf32> to vector<512x36xbf16>
    %c0_25 = arith.constant 0 : index
    %c0_26 = arith.constant 0 : index
    %29 = vector.load %arg3[%c0_25, %c0_26] : memref<8x36xbf16, #tpu.memory_space<vmem>>, vector<8x36xbf16>
    %cst = arith.constant dense<0.000000e+00> : vector<8x512xf32>
    %30 = tpu.matmul %29, %28, %cst {dimension_numbers = #tpu.dot_dimension_numbers<[1], [1], [0], [0], [0, 0, 1, 0], [], []>} : vector<8x36xbf16>, vector<512x36xbf16>, vector<8x512xf32> -> vector<8x512xf32>
    %cst_27 = arith.constant dense<0.000000e+00> : vector<8xf32>
    %31 = vector.multi_reduction <add>, %30, %cst_27 [1] : vector<8x512xf32> to vector<8xf32>
    %32 = vector.shape_cast %31 : vector<8xf32> to vector<8x1xf32>
    %c0_28 = arith.constant 0 : index
    %c0_29 = arith.constant 0 : index
    %c0_30 = arith.constant 0 : index
    %33 = vector.load %arg5[%c0_28, %c0_29, %c0_30] : memref<1x8x2xf32, #tpu.memory_space<vmem>>, vector<1x8x1xf32>
    %34 = vector.shape_cast %33 : vector<1x8x1xf32> to vector<8x1xf32>
    %35 = vector.shape_cast %32 : vector<8x1xf32> to vector<1x8x1xf32>
    tpu.vector_store %arg5[%c0_28, %c0_29, %c0_30], %35 {strides = array<i32>} : memref<1x8x2xf32, #tpu.memory_space<vmem>>, vector<1x8x1xf32>,
    %36 = arith.mulf %30, %30 : vector<8x512xf32>
    %cst_31 = arith.constant dense<0.000000e+00> : vector<8xf32>
    %37 = vector.multi_reduction <add>, %36, %cst_31 [1] : vector<8x512xf32> to vector<8xf32>
    %38 = vector.shape_cast %37 : vector<8xf32> to vector<8x1xf32>
    %c0_32 = arith.constant 0 : index
    %c0_33 = arith.constant 0 : index
    %c1 = arith.constant 1 : index
    %39 = vector.load %arg5[%c0_32, %c0_33, %c1] : memref<1x8x2xf32, #tpu.memory_space<vmem>>, vector<1x8x1xf32>
    %40 = vector.shape_cast %39 : vector<1x8x1xf32> to vector<8x1xf32>
    %41 = vector.shape_cast %38 : vector<8x1xf32> to vector<1x8x1xf32>
    tpu.vector_store %arg5[%c0_32, %c0_33, %c1], %41 {strides = array<i32>} : memref<1x8x2xf32, #tpu.memory_space<vmem>>, vector<1x8x1xf32>,
    %c0_34 = arith.constant 0 : index
    %c0_35 = arith.constant 0 : index
    %c0_36 = arith.constant 0 : index
    %42 = vector.load %arg4[%c0_34, %c0_35, %c0_36] : memref<1x8x512xf32, #tpu.memory_space<vmem>>, vector<1x8x512xf32>
    %43 = vector.shape_cast %42 : vector<1x8x512xf32> to vector<8x512xf32>
    %44 = vector.shape_cast %30 : vector<8x512xf32> to vector<1x8x512xf32>
    tpu.vector_store %arg4[%c0_34, %c0_35, %c0_36], %44 {strides = array<i32>} : memref<1x8x512xf32, #tpu.memory_space<vmem>>, vector<1x8x512xf32>,
    return
  }
  func.func @transform_0(%arg0: i32, %arg1: i32) -> (i32, i32, i32, i32) {
    %c2_i32 = arith.constant 2 : i32
    %0 = arith.muli %arg0, %c2_i32 : i32
    %1 = arith.addi %0, %arg1 : i32
    %c0_i32 = arith.constant 0 : i32
    %c0_i32_0 = arith.constant 0 : i32
    %c0_i32_1 = arith.constant 0 : i32
    %c0_i32_2 = arith.constant 0 : i32
    return %1, %c0_i32, %c0_i32_0, %c0_i32_1 : i32, i32, i32, i32
  }
  func.func @transform_1(%arg0: i32, %arg1: i32) -> (i32, i32) {
    %c0_i32 = arith.constant 0 : i32
    %c0_i32_0 = arith.constant 0 : i32
    %c0_i32_1 = arith.constant 0 : i32
    return %c0_i32, %c0_i32_0 : i32, i32
  }
  func.func @transform_2(%arg0: i32, %arg1: i32) -> (i32, i32, i32) {
    %c0_i32 = arith.constant 0 : i32
    %c0_i32_0 = arith.constant 0 : i32
    return %arg0, %c0_i32, %arg1 : i32, i32, i32
  }
  func.func @transform_3(%arg0: i32, %arg1: i32) -> (i32, i32, i32) {
    %c2_i32 = arith.constant 2 : i32
    %0 = arith.muli %arg0, %c2_i32 : i32
    %1 = arith.addi %0, %arg1 : i32
    %c0_i32 = arith.constant 0 : i32
    %c0_i32_0 = arith.constant 0 : i32
    %c0_i32_1 = arith.constant 0 : i32
    return %1, %c0_i32, %c0_i32_0 : i32, i32, i32
  }
}

module attributes {stable_mosaic.version = 11 : i64} {
  func.func @_bn_relu_kernel(%arg0: i32, %arg1: i32, %arg2: memref<1x8x512xf32, #tpu.memory_space<vmem>>, %arg3: memref<8x1xf32, #tpu.memory_space<vmem>>, %arg4: memref<8x1xf32, #tpu.memory_space<vmem>>, %arg5: memref<1x8x512xf32, #tpu.memory_space<vmem>>) attributes {dimension_semantics = [#tpu.dimension_semantics<parallel>, #tpu.dimension_semantics<parallel>], iteration_bounds = array<i64: 2, 2>, scalar_prefetch = 0 : i64, scratch_operands = 0 : i64, tpu.core_type = #tpu.core_type<tc>, window_params = [{transform_indices = @transform_0, window_bounds = array<i64: 1, 8, 512>}, {pipeline_mode = #tpu.pipeline_mode<synchronous>, transform_indices = @transform_1, window_bounds = array<i64: 8, 1>}, {pipeline_mode = #tpu.pipeline_mode<synchronous>, transform_indices = @transform_2, window_bounds = array<i64: 8, 1>}, {transform_indices = @transform_3, window_bounds = array<i64: 1, 8, 512>}]} {
    %c0 = arith.constant 0 : index
    %c0_0 = arith.constant 0 : index
    %c0_1 = arith.constant 0 : index
    %0 = vector.load %arg2[%c0, %c0_0, %c0_1] : memref<1x8x512xf32, #tpu.memory_space<vmem>>, vector<1x8x512xf32>
    %1 = vector.shape_cast %0 : vector<1x8x512xf32> to vector<8x512xf32>
    %c0_2 = arith.constant 0 : index
    %c0_3 = arith.constant 0 : index
    %2 = vector.load %arg3[%c0_2, %c0_3] : memref<8x1xf32, #tpu.memory_space<vmem>>, vector<8x1xf32>
    %3 = vector.broadcast %2 : vector<8x1xf32> to vector<8x512xf32>
    %4 = arith.mulf %1, %3 : vector<8x512xf32>
    %c0_4 = arith.constant 0 : index
    %c0_5 = arith.constant 0 : index
    %5 = vector.load %arg4[%c0_4, %c0_5] : memref<8x1xf32, #tpu.memory_space<vmem>>, vector<8x1xf32>
    %6 = vector.broadcast %5 : vector<8x1xf32> to vector<8x512xf32>
    %7 = arith.addf %4, %6 : vector<8x512xf32>
    %cst = arith.constant 0.000000e+00 : f32
    %8 = vector.broadcast %cst : f32 to vector<8x512xf32>
    %9 = arith.maximumf %7, %8 : vector<8x512xf32>
    %c0_6 = arith.constant 0 : index
    %c0_7 = arith.constant 0 : index
    %c0_8 = arith.constant 0 : index
    %10 = vector.load %arg5[%c0_6, %c0_7, %c0_8] : memref<1x8x512xf32, #tpu.memory_space<vmem>>, vector<1x8x512xf32>
    %11 = vector.shape_cast %10 : vector<1x8x512xf32> to vector<8x512xf32>
    %12 = vector.shape_cast %9 : vector<8x512xf32> to vector<1x8x512xf32>
    tpu.vector_store %arg5[%c0_6, %c0_7, %c0_8], %12 {strides = array<i32>} : memref<1x8x512xf32, #tpu.memory_space<vmem>>, vector<1x8x512xf32>,
    return
  }
  func.func @transform_0(%arg0: i32, %arg1: i32) -> (i32, i32, i32) {
    %c0_i32 = arith.constant 0 : i32
    %c0_i32_0 = arith.constant 0 : i32
    return %arg0, %c0_i32, %arg1 : i32, i32, i32
  }
  func.func @transform_1(%arg0: i32, %arg1: i32) -> (i32, i32) {
    %c0_i32 = arith.constant 0 : i32
    %c0_i32_0 = arith.constant 0 : i32
    %c0_i32_1 = arith.constant 0 : i32
    return %c0_i32, %c0_i32_0 : i32, i32
  }
  func.func @transform_2(%arg0: i32, %arg1: i32) -> (i32, i32) {
    %c0_i32 = arith.constant 0 : i32
    %c0_i32_0 = arith.constant 0 : i32
    %c0_i32_1 = arith.constant 0 : i32
    return %c0_i32, %c0_i32_0 : i32, i32
  }
  func.func @transform_3(%arg0: i32, %arg1: i32) -> (i32, i32, i32) {
    %c0_i32 = arith.constant 0 : i32
    %c0_i32_0 = arith.constant 0 : i32
    return %arg0, %c0_i32, %arg1 : i32, i32, i32
  }
}

</mosaic_0001>

<bundles_post_ra>
// kernel: decoder_block.3
= control target key start
LH: loop header
LB: loop body
LE: loop exit
PB: predicated region body
PF: predicated region fallthrough
CT: control target
= control target key end

     0   :  { %s448_s12 = smov 0   ;;  %s450_s13 = smov 0   ;;  %s505_s0 = inlined_call_operand.vmem [shape: f32[2,8,1024], index: 0, kind: input, shape index: {}]   ;;  %s506_s1 = inlined_call_operand.vmem [shape: f32[8,1], index: 1, kind: input, shape index: {}]   ;;  %s507_s2 = inlined_call_operand.vmem [shape: f32[8,1], index: 2, kind: input, shape index: {}]   ;;  %s508_s3 = inlined_call_operand.vmem [shape: f32[2,8,1024], index: 3, kind: output, shape index: {}]  }
   0x1   :  { %s452_s14 = smov 0   ;;  %s454_s15 = smov 0  }
   0x2   :  { %s456_s16 = smov 0  }
   0x3 LB: > { %s22_s17 = sadd.s32 1, %s417_s14  ;;  %s25_s18 = sadd.s32 1, %s421_s15  ;;  %s425_s16 = sphi %s456_s16, %s13_s16   ;;  %s421_s15 = sphi %s454_s15, %s512_s15   ;;  %s417_s14 = sphi %s452_s14, %s511_s14   ;;  %s413_s13 = sphi %s450_s13, %s510_s13   ;;  %s409_s12 = sphi %s448_s12, %s509_s12  }
   0x4   : > { %p23_p0 = scmp.ge.s32.totalorder %s22_s17, 2  ;;  %p336_p1 = scmp.ge.s32.totalorder %s425_s16, 1 }
   0x5   : > { %p158_p2 = scmp.lt.s32.totalorder %s425_s16, 5 }
   0x6   : > { %s514_s17 = smov (%p23_p0, %s22_s17), 0  ;;  %s516_s18 = smov (!%p23_p0, %s25_s18), %s421_s15 }
   0x7   : > { %p159_p3 = pnand %p336_p1, %p158_p2  ;;  %p27_p4 = scmp.ge.s32.totalorder %s516_s18, 2 }
   0x8   : > { %v214_v0 = vld [vmem:[%s506_s1] sm:$0xff] (!%p159_p3)  ;;  %v427_v1 = vmov (!%p159_p3), 0   ;;  %s337_s23 = sshll.u32 (!%p159_p3), %s409_s12, 2  ;;  %p191_p5 = scmp.lt.s32.totalorder (!%p159_p3), %s413_s13, 1 }
   0x9   : > { %s518_s18 = smov (%p27_p4, %s516_s18), 0  ;;  %162 = sbr.rel (%p159_p3) target bundleno = 149 (0x95), region = 32 }
   0xa   : > { %386 = vset.pattern.permute.xlu0 (!%p159_p3), %v427_v1  ;;  %v224_v2 = vld [vmem:[%s507_s2] sm:$0xff] (!%p159_p3)  ;;  %p193_p6 = scmp.lt.s32.totalorder (!%p159_p3), %s337_s23, 7 }
   0xb   : > { %217 = vperm.xlu0 (!%p159_p3), %386, %v214_v0  }
   0xf   : > { %227 = vperm.xlu0 (!%p159_p3), %386, %v224_v2  }
  0x10   : > { %s520_s13 = smov (!%p191_p5, %s413_s13), 1  ;;  %s522_s23 = smov (!%p193_p6, %s337_s23), 7 }
  0x11   : > { %s338_s24 = sshll.u32 %s520_s13, 3 }
  0x12   : > { %s196_s25 = sadd.s32 %s338_s24, %s522_s23 }
  0x13   : > { %s339_s26 = sshll.u32 %s196_s25, 3 }
  0x14   : > { %s198_s29 = scalar_lea.vmem %s505_s0, %s339_s26  ;;  %s208_s5 = scalar_lea.vmem %s508_s3, %s339_s26 }
  0x15   : > { %v210_v3 = vld [vmem:[%s198_s29] sm:$0xff]  ;;  %v211_v5 = vld [vmem:[%s198_s29 + $0x8] sm:$0xff]  ;;  %v212_v6 = vld [vmem:[%s198_s29 + $0x10] sm:$0xff] }
  0x16   : > { %v213_v7 = vld [vmem:[%s198_s29 + $0x18] sm:$0xff] }
  0x8a   : > { %v218_v4 = vpop.permute.xlu0 %217 }
  0x8b   : > { %v220_v8 = vmul.f32 %v218_v4, %v210_v3  ;;  %v221_v9 = vmul.f32 %v218_v4, %v211_v5  ;;  %v222_v10 = vmul.f32 %v218_v4, %v212_v6  ;;  %v223_v11 = vmul.f32 %v218_v4, %v213_v7 }
  0x8e   : > { %v228_v12 = vpop.permute.xlu0 %227 }
  0x8f   : > { %v230_v13 = vadd.f32 %v228_v12, %v220_v8  ;;  %v231_v14 = vadd.f32 %v228_v12, %v221_v9  ;;  %v232_v15 = vadd.f32 %v228_v12, %v222_v10  ;;  %v233_v16 = vadd.f32 %v228_v12, %v223_v11 }
  0x91   : > { %v234_v17 = vmax.f32 %v230_v13, 0.0  ;;  %v235_v18 = vmax.f32 %v231_v14, 0.0  ;;  %v236_v19 = vmax.f32 %v232_v15, 0.0  ;;  %v237_v20 = vmax.f32 %v233_v16, 0.0 }
  0x93   : > { %238 = vst [vmem:[%s208_s5] sm:$0xff] %v234_v17  ;;  %239 = vst [vmem:[%s208_s5 + $0x8] sm:$0xff] %v235_v18 }
  0x94   : > { %240 = vst [vmem:[%s208_s5 + $0x10] sm:$0xff] %v236_v19  ;;  %241 = vst [vmem:[%s208_s5 + $0x18] sm:$0xff] %v237_v20 }
  0x95 PF: > { %s13_s16 = sadd.s32 1, %s425_s16   ;;  %s509_s12 = smov %s417_s14 }
  0x96   : > { %p10_p7 = scmp.ge.s32.totalorder %s13_s16, 6   ;;  %s510_s13 = smov %s421_s15 }
  0x97   : > { %s511_s14 = smov %s514_s17  ;;  %s512_s15 = smov %s518_s18 }
  0x98   :  { %12 = sbr.rel (!%p10_p7) target bundleno = 3 (0x3), region = 62 }

// kernel: decoder_block.2
= control target key start
LH: loop header
LB: loop body
LE: loop exit
PB: predicated region body
PF: predicated region fallthrough
CT: control target
= control target key end

     0   :  { %s3548_s12 = smov 0   ;;  %s3550_s13 = smov 0   ;;  %s5530_s0 = inlined_call_operand.vmem [shape: bf16[4,10,34,4], index: 0, kind: input, shape index: {}]   ;;  %s5531_s1 = inlined_call_operand.vmem [shape: bf16[8,36], index: 1, kind: input, shape index: {}]   ;;  %s5532_s2 = inlined_call_operand.vmem [shape: f32[2,8,1024], index: 2, kind: output, shape index: {0}]   ;;  %s5533_s3 = inlined_call_operand.vmem [shape: f32[4,8,2], index: 3, kind: output, shape index: {1}]  }
   0x1   :  { %s3552_s14 = smov 0   ;;  %s3554_s15 = smov 0  }
   0x2   :  { %s3556_s16 = smov 0  }
   0x3 LB: > { %s23_s17 = sadd.s32 1, %s3510_s14  ;;  %s26_s18 = sadd.s32 1, %s3514_s15  ;;  %s3518_s16 = sphi %s3556_s16, %s14_s16   ;;  %s3514_s15 = sphi %s3554_s15, %s5745_s15   ;;  %s3510_s14 = sphi %s3552_s14, %s5744_s14   ;;  %s3506_s13 = sphi %s3550_s13, %s5743_s13   ;;  %s3502_s12 = sphi %s3548_s12, %s5742_s12  }
   0x4   : > { %p24_p0 = scmp.ge.s32.totalorder %s23_s17, 2  ;;  %p2487_p1 = scmp.ge.s32.totalorder %s3518_s16, 1 }
   0x5   : > { %p166_p2 = scmp.lt.s32.totalorder %s3518_s16, 5 }
   0x6   : > { %s5747_s17 = smov (%p24_p0, %s23_s17), 0  ;;  %s5749_s18 = smov (!%p24_p0, %s26_s18), %s3514_s15 }
   0x7   : > { %p167_p3 = pnand %p2487_p1, %p166_p2  ;;  %p28_p4 = scmp.ge.s32.totalorder %s5749_s18, 2 }
   0x9   : > { %s5751_s18 = smov (%p28_p4, %s5749_s18), 0  ;;  %170 = sbr.rel (%p167_p3) target bundleno = 909 (0x38d), region = 28 }
  0x10   : > { %s2488_s19 = sshll.u32 %s3506_s13, 1  ;;  %vm330_vm0 = vcmask 31744   ;;  %s3520_s25 = smov 4   ;;  %vm575_vm1 = vcmask 64545   ;;  %vm581_vm2 = vcmask 57376   ;;  %vm577_vm3 = vcmask 64544  }
  0x11   : > { %s203_s20 = sadd.s32 %s3502_s12, %s2488_s19  ;;  %s3521_s26 = smov 8   ;;  %vm793_vm4 = vcmask 97346   ;;  %vm795_vm5 = vcmask 97344   ;;  %vm799_vm6 = vcmask 91200   ;;  %vm972_vm7 = vcmask 130144  }
  0x12   : > { %p204_p5 = scmp.lt.s32.totalorder %s203_s20, 3  ;;  %s3522_s27 = smov 12   ;;  %vm1159_vm8 = vcmask 162944   ;;  %vm1157_vm9 = vcmask 162945   ;;  %vm1362_vm10 = vcmask 195744   ;;  %vm1360_vm11 = vcmask 195746  }
  0x13   : > { %s3523_s28 = smov 16   ;;  %s3524_s29 = smov 20   ;;  %vm1555_vm12 = vcmask 228544   ;;  %vm1756_vm13 = vcmask 261345   ;;  %vm1758_vm14 = vcmask 261344   ;;  %vm1974_vm15 = vcmask 294146  }
  0x14   : > { %s5753_s20 = smov (!%p204_p5, %s203_s20), 3  ;;  %s3525_s30 = smov 24  }
  0x15   : > { %s2625_s21 = smul.u32 200, %s5753_s20  ;;  %s3526_s4 = smov 28  }
  0x16   : > { %s3527_s5 = smov 32   ;;  %s2490_s10 = sshll.u32 %s3502_s12, 2 }
  0x17   : > { %s3590_s24 = scalar_lea.vmem %s5530_s0, %s2625_s21  ;;  %p212_p6 = scmp.lt.s32.totalorder %s3506_s13, 1 }
  0x18   : > { %v234_v0 = vld [vmem:[%s3590_s24 + $0x10] sm:$0x1]  ;;  %v235_v1 = vld [vmem:[%s3590_s24 + $0x14] ss:$12 sps:$4 sm:$0xff]   ;;  %v2560_v7 = vld [vmem:[%s3590_s24 + $0x18] sm:$0xff]   ;;  %p214_p7 = scmp.lt.s32.totalorder %s2490_s10, 7 }
  0x19   : > { %v2500_v2 = vld [vmem:[%s3590_s24] sm:$0xff]   ;;  %v284_v3 = vunpack.c.l.bf16 %v234_v0  ;;  %v3595_v4 = vunpack.c.l.bf16 %v235_v1  ;;  %v2559_v8 = vld [vmem:[%s3590_s24 + $0x8] sm:$0xff]   ;;  %v3600_v10 = vunpack.c.l.bf16 %v2560_v7  ;;  %v3602_v11 = vunpack.c.h.bf16 %v2560_v7  ;;  %v2562_v20 = vld [vmem:[%s3590_s24 + $0x30] sm:$0xff]   ;;  %s5755_s13 = smov (!%p212_p6, %s3506_s13), 1  ;;  %s2494_s12 = sshll.u32 %s5753_s20, 3 }
  0x1a   : > { %v2501_v5 = vunpack.c.l.bf16 %v2500_v2  ;;  %v2502_v6 = vunpack.c.h.bf16 %v2500_v2  ;;  %v2561_v9 = vld [vmem:[%s3590_s24 + $0x28] sm:$0xff]   ;;  %v2505_v12 = vunpack.c.l.bf16 %v2559_v8  ;;  %v2506_v13 = vunpack.c.h.bf16 %v2559_v8  ;;  %v3605_v14 = vld [vmem:[%s3590_s24 + $0x24] sm:$0x1]  ;;  %v2565_v24 = vld [vmem:[%s3590_s24 + $0x58] sm:$0xff]   ;;  %s5757_s10 = smov (!%p214_p7, %s2490_s10), 7  ;;  %s2491_s11 = sshll.u32 %s5755_s13, 3 }
  0x1b   : > { %v245_v15 = vld [vmem:[%s3590_s24 + $0x3c] ss:$12 sps:$4 sm:$0xff]   ;;  %v3609_v16 = vpack.i.bf16 %v3595_v4, %v284_v3  ;;  %335 = vst.msk [vmem:[#allocation2 + $0x20] sm:$0xff] %vm330_vm0, %v3595_v4  ;;  %339 = vst.msk [vmem:[#allocation2 + $0x40] sm:$0xff] %vm330_vm0, %v3595_v4  ;;  %v2513_v18 = vunpack.c.l.bf16 %v2561_v9  ;;  %v2514_v19 = vunpack.c.h.bf16 %v2561_v9  ;;  %v3622_v21 = vpack.i.bf16 %v3602_v11, %v3600_v10  ;;  %v2563_v23 = vld [vmem:[%s3590_s24 + $0x40] sm:$0xff]   ;;  %s217_s19 = sadd.s32 %s2491_s11, %s5757_s10 }
  0x1c   : > { %332 = vst.msk [vmem:[#allocation2 + $0x8] sm:$0xff] %vm330_vm0, %v2502_v6  ;;  %v3612_v17 = vpack.i.bf16 %v2502_v6, %v2501_v5  ;;  %331 = vst.msk [vmem:[#allocation2] sm:$0xff] %vm330_vm0, %v2501_v5  ;;  %v3634_v22 = vunpack.c.h.bf16 %v235_v1  ;;  %v3642_v25 = vpack.i.bf16 %v2506_v13, %v2505_v12  ;;  %v289_v26 = vunpack.c.l.bf16 %v3605_v14  ;;  %v244_v27 = vld [vmem:[%s3590_s24 + $0x38] sm:$0x1]  ;;  %v2564_v30 = vld [vmem:[%s3590_s24 + $0x50] sm:$0xff]   ;;  %s2492_s21 = sshll.u32 %s217_s19, 3 }
  0x1d   : > { %336 = vst.msk [vmem:[#allocation2 + $0x28] sm:$0xff] %vm330_vm0, %v3600_v10  ;;  %337 = vst.msk [vmem:[#allocation2 + $0x30] sm:$0xff] %vm330_vm0, %v3602_v11  ;;  %2685 = vrot.lane.b32.xlu1 %v3609_v16, %s3520_s25  ;;  %v3650_v28 = vunpack.c.l.bf16 %v245_v15  ;;  %v3652_v29 = vunpack.c.l.bf16 %v2562_v20  ;;  %v3659_v31 = vunpack.c.h.bf16 %v2562_v20  ;;  %v3661_v32 = vunpack.c.h.bf16 %v245_v15  ;;  %v2566_v33 = vld [vmem:[%s3590_s24 + $0x68] sm:$0xff]   ;;  %v255_v37 = vld [vmem:[%s3590_s24 + $0x64] ss:$12 sps:$4 sm:$0xff]  }
  0x1e   : > { %340 = vst.msk [vmem:[#allocation2 + $0x48] sm:$0xff] %vm330_vm0, %v3600_v10  ;;  %341 = vst.msk [vmem:[#allocation2 + $0x50] sm:$0xff] %vm330_vm0, %v3602_v11  ;;  %2675 = vrot.lane.b32.xlu0 %v3612_v17, %s3520_s25  ;;  %v3672_v34 = vunpack.c.l.bf16 %v2563_v23  ;;  %v3674_v35 = vunpack.c.h.bf16 %v2563_v23  ;;  %v3676_v36 = vunpack.c.l.bf16 %v2565_v24  ;;  %v2567_v38 = vld [vmem:[%s3590_s24 + $0x78] sm:$0xff]   ;;  %v3680_v39 = vpack.i.bf16 %v2514_v19, %v2513_v18  ;;  %v3706_v44 = vld [vmem:[%s3590_s24 + $0x4c] sm:$0x1] }
  0x1f   : > { %333 = vst.msk [vmem:[#allocation2 + $0x10] sm:$0xff] %vm330_vm0, %v2505_v12  ;;  %334 = vst.msk [vmem:[#allocation2 + $0x18] sm:$0xff] %vm330_vm0, %v2506_v13  ;;  %v3682_v40 = vunpack.c.l.bf16 %v244_v27  ;;  %v3692_v41 = vunpack.c.h.bf16 %v2565_v24  ;;  %v3694_v42 = vunpack.c.l.bf16 %v2564_v30  ;;  %v3703_v43 = vpack.i.bf16 %v289_v26, %v3634_v22  ;;  %v265_v48 = vld [vmem:[%s3590_s24 + $0x8c] ss:$12 sps:$4 sm:$0xff]   ;;  %v2568_v51 = vld [vmem:[%s3590_s24 + $0x80] sm:$0xff]  }
  0x20   : > { %343 = vst.msk [vmem:[#allocation2 + $0x60] sm:$0xff] %vm330_vm0, %v2513_v18  ;;  %344 = vst.msk [vmem:[#allocation2 + $0x68] sm:$0xff] %vm330_vm0, %v2514_v19  ;;  %v3720_v45 = vunpack.c.h.bf16 %v2564_v30  ;;  %v3722_v46 = vunpack.c.l.bf16 %v2566_v33  ;;  %v3724_v47 = vunpack.c.h.bf16 %v2566_v33  ;;  %v3735_v49 = vunpack.c.l.bf16 %v255_v37  ;;  %v2569_v54 = vld [vmem:[%s3590_s24 + $0x90] sm:$0xff]   ;;  %v2571_v58 = vld [vmem:[%s3590_s24 + $0xa8] sm:$0xff]  }
  0x21   : > { %347 = vst.msk [vmem:[#allocation2 + $0x80] sm:$0xff] %vm330_vm0, %v2513_v18  ;;  %348 = vst.msk [vmem:[#allocation2 + $0x88] sm:$0xff] %vm330_vm0, %v2514_v19  ;;  %2690 = vrot.lane.b32.xlu1 %v3622_v21, %s3520_s25  ;;  %v3737_v50 = vunpack.c.l.bf16 %v2567_v38  ;;  %v3752_v52 = vunpack.c.h.bf16 %v2567_v38  ;;  %v3754_v53 = vunpack.c.h.bf16 %v255_v37  ;;  %v3759_v55 = vpack.i.bf16 %v3650_v28, %v3682_v40  ;;  %v2570_v63 = vld [vmem:[%s3590_s24 + $0xa0] sm:$0xff]   ;;  %v3867_v19 = vld [vmem:[%s3590_s24 + $0x74] sm:$0x1] }
  0x22   : > { %338 = vst.msk [vmem:[#allocation2 + $0x38] sm:$0xff] %vm330_vm0, %v3634_v22  ;;  %342 = vst.msk [vmem:[#allocation2 + $0x58] sm:$0xff] %vm330_vm0, %v3634_v22  ;;  %2680 = vrot.lane.b32.xlu0 %v3642_v25, %s3520_s25  ;;  %v299_v56 = vunpack.c.l.bf16 %v3706_v44  ;;  %v3770_v57 = vunpack.c.l.bf16 %v265_v48  ;;  %v3779_v59 = vpack.i.bf16 %v3659_v31, %v3652_v29  ;;  %v3789_v60 = vunpack.c.l.bf16 %v2568_v51  ;;  %v254_v9 = vld [vmem:[%s3590_s24 + $0x60] sm:$0x1]  ;;  %v264_v33 = vld [vmem:[%s3590_s24 + $0x88] sm:$0x1] }
  0x23   : > { %351 = vst.msk [vmem:[#allocation2 + $0xa0] sm:$0xff] %vm330_vm0, %v3650_v28  ;;  %355 = vst.msk [vmem:[#allocation2 + $0xc0] sm:$0xff] %vm330_vm0, %v3650_v28  ;;  %v3791_v61 = vunpack.c.h.bf16 %v2568_v51  ;;  %v3793_v62 = vunpack.c.h.bf16 %v265_v48  ;;  %v2545_v0 = vunpack.c.l.bf16 %v2569_v54  ;;  %v3812_v1 = vunpack.c.h.bf16 %v2569_v54 }
  0x24   : > { %345 = vst.msk [vmem:[#allocation2 + $0x70] sm:$0xff] %vm330_vm0, %v3652_v29  ;;  %349 = vst.msk [vmem:[#allocation2 + $0x90] sm:$0xff] %vm330_vm0, %v3652_v29  ;;  %v3814_v2 = vunpack.c.l.bf16 %v2571_v58  ;;  %v3816_v3 = vunpack.c.h.bf16 %v2571_v58  ;;  %v3820_v5 = vunpack.c.l.bf16 %v2570_v63  ;;  %v3822_v6 = vunpack.c.h.bf16 %v2570_v63  ;;  %v274_v58 = vld [vmem:[%s3590_s24 + $0xb0] sm:$0x1] }
  0x25   : > { %346 = vst.msk [vmem:[#allocation2 + $0x78] sm:$0xff] %vm330_vm0, %v3659_v31  ;;  %350 = vst.msk [vmem:[#allocation2 + $0x98] sm:$0xff] %vm330_vm0, %v3659_v31  ;;  %2700 = vrot.lane.b32.xlu1 %v3680_v39, %s3520_s25  ;;  %v3831_v7 = vpack.i.bf16 %v299_v56, %v3661_v32  ;;  %v3835_v8 = vpack.i.bf16 %v3674_v35, %v3672_v34  ;;  %v3856_v12 = vpack.i.bf16 %v3692_v41, %v3676_v36 }
  0x26   : > { %354 = vst.msk [vmem:[#allocation2 + $0xb8] sm:$0xff] %vm330_vm0, %v3661_v32  ;;  %358 = vst.msk [vmem:[#allocation2 + $0xd8] sm:$0xff] %vm330_vm0, %v3661_v32  ;;  %2695 = vrot.lane.b32.xlu0 %v3703_v43, %s3520_s25  ;;  %v3860_v13 = vpack.i.bf16 %v3720_v45, %v3694_v42  ;;  %v3862_v15 = vunpack.c.l.bf16 %v254_v9  ;;  %v2849_v18 = vpack.i.bf16 %v3724_v47, %v3722_v46  ;;  %v309_v30 = vunpack.c.l.bf16 %v3867_v19 }
  0x27   : > { %352 = vst.msk [vmem:[#allocation2 + $0xa8] sm:$0xff] %vm330_vm0, %v3672_v34  ;;  %353 = vst.msk [vmem:[#allocation2 + $0xb0] sm:$0xff] %vm330_vm0, %v3674_v35  ;;  %v3870_v20 = vpack.i.bf16 %v3812_v1, %v2545_v0  ;;  %v3874_v23 = vpack.i.bf16 %v3600_v10, %v3595_v4  ;;  %v3878_v24 = vpack.i.bf16 %v3672_v34, %v3650_v28  ;;  %v3906_v38 = vunpack.c.l.bf16 %v264_v33 }
  0x28   : > { %356 = vst.msk [vmem:[#allocation2 + $0xc8] sm:$0xff] %vm330_vm0, %v3672_v34  ;;  %357 = vst.msk [vmem:[#allocation2 + $0xd0] sm:$0xff] %vm330_vm0, %v3674_v35  ;;  %v2734_v27 = vpack.i.bf16 %v3735_v49, %v3862_v15  ;;  %v3890_v4 = vpack.i.bf16 %v3722_v46, %v3735_v49  ;;  %v3893_v10 = vpack.i.bf16 %v2545_v0, %v3770_v57  ;;  %v3951_v63 = vunpack.c.l.bf16 %v274_v58 }
  0x29   : > { %361 = vst.msk [vmem:[#allocation2 + $0xf0] sm:$0xff] %vm330_vm0, %v3676_v36  ;;  %365 = vst.msk [vmem:[#allocation2 + $0x110] sm:$0xff] %vm330_vm0, %v3676_v36  ;;  %2710 = vrot.lane.b32.xlu1 %v3759_v55, %s3520_s25  ;;  %v3897_v34 = vpack.i.bf16 %v3752_v52, %v3737_v50  ;;  %v3904_v37 = vpack.i.bf16 %v309_v30, %v3754_v53  ;;  %v3913_v48 = vpack.i.bf16 %v3650_v28, %v3602_v11 }
  0x2a   : > { %362 = vst.msk [vmem:[#allocation2 + $0xf8] sm:$0xff] %vm330_vm0, %v3692_v41  ;;  %366 = vst.msk [vmem:[#allocation2 + $0x118] sm:$0xff] %vm330_vm0, %v3692_v41  ;;  %2705 = vrot.lane.b32.xlu0 %v3779_v59, %s3520_s25  ;;  %v3944_v54 = vpack.i.bf16 %v3822_v6, %v3820_v5 }
  0x2b   : > { %359 = vst.msk [vmem:[#allocation2 + $0xe0] sm:$0xff] %vm330_vm0, %v3694_v42  ;;  %363 = vst.msk [vmem:[#allocation2 + $0x100] sm:$0xff] %vm330_vm0, %v3694_v42 }
  0x2c   : > { %360 = vst.msk [vmem:[#allocation2 + $0xe8] sm:$0xff] %vm330_vm0, %v3720_v45  ;;  %364 = vst.msk [vmem:[#allocation2 + $0x108] sm:$0xff] %vm330_vm0, %v3720_v45 }
  0x2d   : > { %368 = vst.msk [vmem:[#allocation2 + $0x128] sm:$0xff] %vm330_vm0, %v3722_v46  ;;  %369 = vst.msk [vmem:[#allocation2 + $0x130] sm:$0xff] %vm330_vm0, %v3724_v47  ;;  %2720 = vrot.lane.b32.xlu1 %v3831_v7, %s3520_s25 }
  0x2e   : > { %372 = vst.msk [vmem:[#allocation2 + $0x148] sm:$0xff] %vm330_vm0, %v3722_v46  ;;  %373 = vst.msk [vmem:[#allocation2 + $0x150] sm:$0xff] %vm330_vm0, %v3724_v47  ;;  %2715 = vrot.lane.b32.xlu0 %v3835_v8, %s3520_s25  ;;  %v3909_v46 = vld [vmem:[%s3590_s24 + $0x9c] sm:$0x1] }
  0x2f   : > { %367 = vst.msk [vmem:[#allocation2 + $0x120] sm:$0xff] %vm330_vm0, %v3735_v49  ;;  %371 = vst.msk [vmem:[#allocation2 + $0x140] sm:$0xff] %vm330_vm0, %v3735_v49  ;;  %v2759_v49 = vpack.i.bf16 %v3770_v57, %v3906_v38  ;;  %v319_v51 = vunpack.c.l.bf16 %v3909_v46 }
  0x30   : > { %375 = vst.msk [vmem:[#allocation2 + $0x160] sm:$0xff] %vm330_vm0, %v3737_v50  ;;  %379 = vst.msk [vmem:[#allocation2 + $0x180] sm:$0xff] %vm330_vm0, %v3737_v50  ;;  %v3923_v50 = vpack.i.bf16 %v3791_v61, %v3789_v60 }
  0x31   : > { %376 = vst.msk [vmem:[#allocation2 + $0x168] sm:$0xff] %vm330_vm0, %v3752_v52  ;;  %380 = vst.msk [vmem:[#allocation2 + $0x188] sm:$0xff] %vm330_vm0, %v3752_v52  ;;  %2730 = vrot.lane.b32.xlu1 %v3856_v12, %s3520_s25  ;;  %v3932_v28 = vpack.i.bf16 %v319_v51, %v3793_v62  ;;  %v3940_v52 = vpack.i.bf16 %v3816_v3, %v3814_v2 }
  0x32   : > { %370 = vst.msk [vmem:[#allocation2 + $0x138] sm:$0xff] %vm330_vm0, %v3754_v53  ;;  %374 = vst.msk [vmem:[#allocation2 + $0x158] sm:$0xff] %vm330_vm0, %v3754_v53  ;;  %2725 = vrot.lane.b32.xlu0 %v3860_v13, %s3520_s25 }
  0x33   : > { %383 = vst.msk [vmem:[#allocation2 + $0x1a0] sm:$0xff] %vm330_vm0, %v3770_v57  ;;  %387 = vst.msk [vmem:[#allocation2 + $0x1c0] sm:$0xff] %vm330_vm0, %v3770_v57 }
  0x34   : > { %377 = vst.msk [vmem:[#allocation2 + $0x170] sm:$0xff] %vm330_vm0, %v3789_v60  ;;  %378 = vst.msk [vmem:[#allocation2 + $0x178] sm:$0xff] %vm330_vm0, %v3791_v61 }
  0x35   : > { %381 = vst.msk [vmem:[#allocation2 + $0x190] sm:$0xff] %vm330_vm0, %v3789_v60  ;;  %382 = vst.msk [vmem:[#allocation2 + $0x198] sm:$0xff] %vm330_vm0, %v3791_v61  ;;  %2740 = vrot.lane.b32.xlu1 %v2849_v18, %s3520_s25 }
  0x36   : > { %386 = vst.msk [vmem:[#allocation2 + $0x1b8] sm:$0xff] %vm330_vm0, %v3793_v62  ;;  %390 = vst.msk [vmem:[#allocation2 + $0x1d8] sm:$0xff] %vm330_vm0, %v3793_v62  ;;  %2735 = vrot.lane.b32.xlu0 %v2734_v27, %s3520_s25 }
  0x37   : > { %384 = vst.msk [vmem:[#allocation2 + $0x1a8] sm:$0xff] %vm330_vm0, %v2545_v0  ;;  %388 = vst.msk [vmem:[#allocation2 + $0x1c8] sm:$0xff] %vm330_vm0, %v2545_v0  ;;  %v3958_v0 = vpack.i.bf16 %v3770_v57, %v3724_v47 }
  0x38   : > { %385 = vst.msk [vmem:[#allocation2 + $0x1b0] sm:$0xff] %vm330_vm0, %v3812_v1  ;;  %389 = vst.msk [vmem:[#allocation2 + $0x1d0] sm:$0xff] %vm330_vm0, %v3812_v1 }
  0x39   : > { %393 = vst.msk [vmem:[#allocation2 + $0x1f0] sm:$0xff] %vm330_vm0, %v3814_v2  ;;  %394 = vst.msk [vmem:[#allocation2 + $0x1f8] sm:$0xff] %vm330_vm0, %v3816_v3  ;;  %2750 = vrot.lane.b32.xlu1 %v3897_v34, %s3520_s25 }
  0x3a   : > { %391 = vst.msk [vmem:[#allocation2 + $0x1e0] sm:$0xff] %vm330_vm0, %v3820_v5  ;;  %392 = vst.msk [vmem:[#allocation2 + $0x1e8] sm:$0xff] %vm330_vm0, %v3822_v6  ;;  %2745 = vrot.lane.b32.xlu0 %v3904_v37, %s3520_s25  ;;  %vm1976_vm0 = vcmask 294144  }
  0x3d   : > { %2760 = vrot.lane.b32.xlu1 %v2759_v49, %s3520_s25 }
  0x3e   : > { %2755 = vrot.lane.b32.xlu0 %v3923_v50, %s3520_s25 }
  0x41   : > { %2770 = vrot.lane.b32.xlu1 %v3932_v28, %s3520_s25 }
  0x42   : > { %2765 = vrot.lane.b32.xlu0 %v3870_v20, %s3520_s25 }
  0x45   : > { %2780 = vrot.lane.b32.xlu1 %v3940_v52, %s3520_s25 }
  0x46   : > { %2775 = vrot.lane.b32.xlu0 %v3944_v54, %s3520_s25 }
  0x49   : > { %2785 = vrot.lane.b32.xlu1 %v3612_v17, %s3521_s26  ;;  %v3993_v17 = vpack.i.bf16 %v3661_v32, %v3674_v35 }
  0x4a   : > { %528 = vrot.lane.b32.xlu0 %v3951_v63, %s3520_s25 }
  0x4d   : > { %2795 = vrot.lane.b32.xlu1 %v3609_v16, %s3521_s26  ;;  %v3981_v16 = vpack.i.bf16 %v3634_v22, %v3602_v11  ;;  %v4005_v11 = vpack.i.bf16 %v3754_v53, %v3724_v47 }
  0x4e   : > { %2790 = vrot.lane.b32.xlu0 %v3642_v25, %s3521_s26 }
  0x51   : > { %2805 = vrot.lane.b32.xlu1 %v3703_v43, %s3521_s26 }
  0x52   : > { %2800 = vrot.lane.b32.xlu0 %v3622_v21, %s3521_s26  ;;  %v4017_v21 = vpack.i.bf16 %v3793_v62, %v3812_v1 }
  0x55   : > { %2815 = vrot.lane.b32.xlu1 %v3779_v59, %s3521_s26 }
  0x56   : > { %2810 = vrot.lane.b32.xlu0 %v3680_v39, %s3521_s26 }
  0x59   : > { %2825 = vrot.lane.b32.xlu1 %v3835_v8, %s3521_s26 }
  0x5a   : > { %2820 = vrot.lane.b32.xlu0 %v3759_v55, %s3521_s26 }
  0x5d   : > { %2835 = vrot.lane.b32.xlu1 %v3860_v13, %s3521_s26 }
  0x5e   : > { %2830 = vrot.lane.b32.xlu0 %v3831_v7, %s3521_s26 }
  0x61   : > { %2845 = vrot.lane.b32.xlu1 %v2734_v27, %s3521_s26 }
  0x62   : > { %2840 = vrot.lane.b32.xlu0 %v3856_v12, %s3521_s26 }
  0x65   : > { %2855 = vrot.lane.b32.xlu1 %v3904_v37, %s3521_s26 }
  0x66   : > { %2850 = vrot.lane.b32.xlu0 %v2849_v18, %s3521_s26 }
  0x69   : > { %2865 = vrot.lane.b32.xlu1 %v3923_v50, %s3521_s26 }
  0x6a   : > { %2860 = vrot.lane.b32.xlu0 %v3897_v34, %s3521_s26 }
  0x6d   : > { %2875 = vrot.lane.b32.xlu1 %v3870_v20, %s3521_s26 }
  0x6e   : > { %2870 = vrot.lane.b32.xlu0 %v2759_v49, %s3521_s26 }
  0x71   : > { %2885 = vrot.lane.b32.xlu1 %v3944_v54, %s3521_s26 }
  0x72   : > { %2880 = vrot.lane.b32.xlu0 %v3932_v28, %s3521_s26 }
  0x75   : > { %746 = vrot.lane.b32.xlu1 %v3951_v63, %s3521_s26 }
  0x76   : > { %2890 = vrot.lane.b32.xlu0 %v3940_v52, %s3521_s26  ;;  %s226_s26 = scalar_lea.vmem %s5533_s3, %s2494_s12 }
  0x79   : > { %2900 = vrot.lane.b32.xlu1 %v3981_v16, %s3522_s27 }
  0x7a   : > { %2895 = vrot.lane.b32.xlu0 %v3874_v23, %s3522_s27 }
  0x7d   : > { %2910 = vrot.lane.b32.xlu1 %v3779_v59, %s3522_s27 }
  0x7e   : > { %2905 = vrot.lane.b32.xlu0 %v3680_v39, %s3522_s27 }
  0x81   : > { %2920 = vrot.lane.b32.xlu1 %v3993_v17, %s3522_s27 }
  0x82   : > { %2915 = vrot.lane.b32.xlu0 %v3878_v24, %s3522_s27 }
  0x85   : > { %2930 = vrot.lane.b32.xlu1 %v3856_v12, %s3522_s27 }
  0x86   : > { %2925 = vrot.lane.b32.xlu0 %v3860_v13, %s3522_s27 }
  0x89   : > { %2940 = vrot.lane.b32.xlu1 %v4005_v11, %s3522_s27 }
  0x8a   : > { %2935 = vrot.lane.b32.xlu0 %v3890_v4, %s3522_s27 }
  0x8d   : > { %2950 = vrot.lane.b32.xlu1 %v3923_v50, %s3522_s27 }
  0x8e   : > { %2945 = vrot.lane.b32.xlu0 %v3897_v34, %s3522_s27 }
  0x8f   : > { %v2686_v25 = vpop.permute.xlu1 %2685 }
  0x90   : > { %v2676_v35 = vpop.permute.xlu0 %2675  ;;  %v2688_v47 = vunpack.i.h.bf16 %v2686_v25  ;;  %v2687_v55 = vunpack.i.l.bf16 %v2686_v25 }
  0x91   : > { %v2678_v57 = vunpack.i.h.bf16 %v2676_v35  ;;  %v2677_v9 = vunpack.i.l.bf16 %v2676_v35  ;;  %2960 = vrot.lane.b32.xlu1 %v4017_v21, %s3522_s27 }
  0x92   : > { %2955 = vrot.lane.b32.xlu0 %v3893_v10, %s3522_s27  ;;  %583 = vst.msk [vmem:[#allocation2 + $0x1f] sm:$0xfe] %vm575_vm1, %v2688_v47  ;;  %588 = vst.msk [vmem:[#allocation2 + $0x3f] sm:$0xfe] %vm575_vm1, %v2688_v47 }
  0x93   : > { %582 = vst.msk [vmem:[#allocation2 + $0x1f] sm:$0x1] %vm581_vm2, %v2687_v55  ;;  %v2691_v1 = vpop.permute.xlu1 %2690 }
  0x94   : > { %576 = vst.msk [vmem:[#allocation2 - $0x1] sm:$0xfe] %vm575_vm1, %v2677_v9  ;;  %v2681_v18 = vpop.permute.xlu0 %2680  ;;  %v2693_v27 = vunpack.i.h.bf16 %v2691_v1  ;;  %v2692_v33 = vunpack.i.l.bf16 %v2691_v1 }
  0x95   : > { %578 = vst.msk [vmem:[#allocation2 + $0x7] sm:$0xff] %vm577_vm3, %v2678_v57  ;;  %v2683_v49 = vunpack.i.h.bf16 %v2681_v18  ;;  %v2682_v58 = vunpack.i.l.bf16 %v2681_v18  ;;  %2970 = vrot.lane.b32.xlu1 %v3940_v52, %s3522_s27 }
  0x96   : > { %2965 = vrot.lane.b32.xlu0 %v3944_v54, %s3522_s27  ;;  %585 = vst.msk [vmem:[#allocation2 + $0x2f] sm:$0xff] %vm577_vm3, %v2693_v27  ;;  %590 = vst.msk [vmem:[#allocation2 + $0x4f] sm:$0xff] %vm577_vm3, %v2693_v27 }
  0x97   : > { %584 = vst.msk [vmem:[#allocation2 + $0x27] sm:$0xff] %vm577_vm3, %v2692_v33  ;;  %589 = vst.msk [vmem:[#allocation2 + $0x47] sm:$0xff] %vm577_vm3, %v2692_v33  ;;  %v2701_v25 = vpop.permute.xlu1 %2700 }
  0x98   : > { %580 = vst.msk [vmem:[#allocation2 + $0x17] sm:$0xff] %vm577_vm3, %v2683_v49  ;;  %579 = vst.msk [vmem:[#allocation2 + $0xf] sm:$0xff] %vm577_vm3, %v2682_v58  ;;  %v2696_v35 = vpop.permute.xlu0 %2695  ;;  %v2703_v47 = vunpack.i.h.bf16 %v2701_v25  ;;  %v2702_v55 = vunpack.i.l.bf16 %v2701_v25 }
  0x99   : > { %v2698_v57 = vunpack.i.h.bf16 %v2696_v35  ;;  %v2697_v9 = vunpack.i.l.bf16 %v2696_v35  ;;  %2980 = vrot.lane.b32.xlu1 %v3981_v16, %s3523_s28 }
  0x9a   : > { %2975 = vrot.lane.b32.xlu0 %v3874_v23, %s3523_s28  ;;  %594 = vst.msk [vmem:[#allocation2 + $0x67] sm:$0xff] %vm577_vm3, %v2703_v47  ;;  %599 = vst.msk [vmem:[#allocation2 + $0x87] sm:$0xff] %vm577_vm3, %v2703_v47 }
  0x9b   : > { %593 = vst.msk [vmem:[#allocation2 + $0x5f] sm:$0xfe] %vm575_vm1, %v2702_v55  ;;  %598 = vst.msk [vmem:[#allocation2 + $0x7f] sm:$0xfe] %vm575_vm1, %v2702_v55  ;;  %v2711_v1 = vpop.permute.xlu1 %2710 }
  0x9c   : > { %587 = vst.msk [vmem:[#allocation2 + $0x3f] sm:$0x1] %vm581_vm2, %v2698_v57  ;;  %592 = vst.msk [vmem:[#allocation2 + $0x5f] sm:$0x1] %vm581_vm2, %v2698_v57  ;;  %v2706_v18 = vpop.permute.xlu0 %2705  ;;  %v2713_v27 = vunpack.i.h.bf16 %v2711_v1  ;;  %v2712_v33 = vunpack.i.l.bf16 %v2711_v1 }
  0x9d   : > { %586 = vst.msk [vmem:[#allocation2 + $0x37] sm:$0xff] %vm577_vm3, %v2697_v9  ;;  %591 = vst.msk [vmem:[#allocation2 + $0x57] sm:$0xff] %vm577_vm3, %v2697_v9  ;;  %v2708_v49 = vunpack.i.h.bf16 %v2706_v18  ;;  %v2707_v58 = vunpack.i.l.bf16 %v2706_v18  ;;  %2990 = vrot.lane.b32.xlu1 %v3993_v17, %s3523_s28 }
  0x9e   : > { %2985 = vrot.lane.b32.xlu0 %v3878_v24, %s3523_s28  ;;  %603 = vst.msk [vmem:[#allocation2 + $0x9f] sm:$0xfe] %vm575_vm1, %v2713_v27  ;;  %608 = vst.msk [vmem:[#allocation2 + $0xbf] sm:$0xfe] %vm575_vm1, %v2713_v27 }
  0x9f   : > { %597 = vst.msk [vmem:[#allocation2 + $0x7f] sm:$0x1] %vm581_vm2, %v2712_v33  ;;  %602 = vst.msk [vmem:[#allocation2 + $0x9f] sm:$0x1] %vm581_vm2, %v2712_v33  ;;  %v2721_v25 = vpop.permute.xlu1 %2720 }
  0xa0   : > { %596 = vst.msk [vmem:[#allocation2 + $0x77] sm:$0xff] %vm577_vm3, %v2708_v49  ;;  %601 = vst.msk [vmem:[#allocation2 + $0x97] sm:$0xff] %vm577_vm3, %v2708_v49  ;;  %v2716_v35 = vpop.permute.xlu0 %2715  ;;  %v2723_v47 = vunpack.i.h.bf16 %v2721_v25  ;;  %v2722_v55 = vunpack.i.l.bf16 %v2721_v25 }
  0xa1   : > { %595 = vst.msk [vmem:[#allocation2 + $0x6f] sm:$0xff] %vm577_vm3, %v2707_v58  ;;  %600 = vst.msk [vmem:[#allocation2 + $0x8f] sm:$0xff] %vm577_vm3, %v2707_v58  ;;  %v2718_v57 = vunpack.i.h.bf16 %v2716_v35  ;;  %v2717_v9 = vunpack.i.l.bf16 %v2716_v35  ;;  %3000 = vrot.lane.b32.xlu1 %v3981_v16, %s3524_s29 }
  0xa2   : > { %2995 = vrot.lane.b32.xlu0 %v3874_v23, %s3524_s29  ;;  %607 = vst.msk [vmem:[#allocation2 + $0xbf] sm:$0x1] %vm581_vm2, %v2723_v47  ;;  %612 = vst.msk [vmem:[#allocation2 + $0xdf] sm:$0x1] %vm581_vm2, %v2723_v47 }
  0xa3   : > { %606 = vst.msk [vmem:[#allocation2 + $0xb7] sm:$0xff] %vm577_vm3, %v2722_v55  ;;  %611 = vst.msk [vmem:[#allocation2 + $0xd7] sm:$0xff] %vm577_vm3, %v2722_v55  ;;  %v2731_v16 = vpop.permute.xlu1 %2730 }
  0xa4   : > { %605 = vst.msk [vmem:[#allocation2 + $0xaf] sm:$0xff] %vm577_vm3, %v2718_v57  ;;  %610 = vst.msk [vmem:[#allocation2 + $0xcf] sm:$0xff] %vm577_vm3, %v2718_v57  ;;  %v2726_v1 = vpop.permute.xlu0 %2725  ;;  %v2733_v18 = vunpack.i.h.bf16 %v2731_v16  ;;  %v2732_v27 = vunpack.i.l.bf16 %v2731_v16 }
  0xa5   : > { %604 = vst.msk [vmem:[#allocation2 + $0xa7] sm:$0xff] %vm577_vm3, %v2717_v9  ;;  %609 = vst.msk [vmem:[#allocation2 + $0xc7] sm:$0xff] %vm577_vm3, %v2717_v9  ;;  %v2728_v33 = vunpack.i.h.bf16 %v2726_v1  ;;  %v2727_v49 = vunpack.i.l.bf16 %v2726_v1  ;;  %3010 = vrot.lane.b32.xlu1 %v3993_v17, %s3524_s29 }
  0xa6   : > { %3005 = vrot.lane.b32.xlu0 %v3878_v24, %s3524_s29  ;;  %615 = vst.msk [vmem:[#allocation2 + $0xef] sm:$0xff] %vm577_vm3, %v2732_v27  ;;  %620 = vst.msk [vmem:[#allocation2 + $0x10f] sm:$0xff] %vm577_vm3, %v2732_v27 }
  0xa7   : > { %616 = vst.msk [vmem:[#allocation2 + $0xf7] sm:$0xff] %vm577_vm3, %v2733_v18  ;;  %621 = vst.msk [vmem:[#allocation2 + $0x117] sm:$0xff] %vm577_vm3, %v2733_v18  ;;  %v2741_v17 = vpop.permute.xlu1 %2740 }
  0xa8   : > { %614 = vst.msk [vmem:[#allocation2 + $0xe7] sm:$0xff] %vm577_vm3, %v2728_v33  ;;  %619 = vst.msk [vmem:[#allocation2 + $0x107] sm:$0xff] %vm577_vm3, %v2728_v33  ;;  %v2736_v58 = vpop.permute.xlu0 %2735  ;;  %v2743_v25 = vunpack.i.h.bf16 %v2741_v17  ;;  %v2742_v24 = vunpack.i.l.bf16 %v2741_v17 }
  0xa9   : > { %613 = vst.msk [vmem:[#allocation2 + $0xdf] sm:$0xfe] %vm575_vm1, %v2727_v49  ;;  %618 = vst.msk [vmem:[#allocation2 + $0xff] sm:$0xfe] %vm575_vm1, %v2727_v49  ;;  %v2738_v35 = vunpack.i.h.bf16 %v2736_v58  ;;  %v2737_v47 = vunpack.i.l.bf16 %v2736_v58  ;;  %3020 = vrot.lane.b32.xlu1 %v3913_v48, %s3525_s30 }
  0xaa   : > { %3015 = vrot.lane.b32.xlu0 %v3874_v23, %s3525_s30  ;;  %625 = vst.msk [vmem:[#allocation2 + $0x12f] sm:$0xff] %vm577_vm3, %v2743_v25  ;;  %630 = vst.msk [vmem:[#allocation2 + $0x14f] sm:$0xff] %vm577_vm3, %v2743_v25 }
  0xab   : > { %624 = vst.msk [vmem:[#allocation2 + $0x127] sm:$0xff] %vm577_vm3, %v2742_v24  ;;  %629 = vst.msk [vmem:[#allocation2 + $0x147] sm:$0xff] %vm577_vm3, %v2742_v24  ;;  %v2751_v55 = vpop.permute.xlu1 %2750 }
  0xac   : > { %623 = vst.msk [vmem:[#allocation2 + $0x11f] sm:$0xfe] %vm575_vm1, %v2738_v35  ;;  %628 = vst.msk [vmem:[#allocation2 + $0x13f] sm:$0xfe] %vm575_vm1, %v2738_v35  ;;  %v2746_v57 = vpop.permute.xlu0 %2745  ;;  %v2753_v9 = vunpack.i.h.bf16 %v2751_v55  ;;  %v2752_v16 = vunpack.i.l.bf16 %v2751_v55 }
  0xad   : > { %617 = vst.msk [vmem:[#allocation2 + $0xff] sm:$0x1] %vm581_vm2, %v2737_v47  ;;  %622 = vst.msk [vmem:[#allocation2 + $0x11f] sm:$0x1] %vm581_vm2, %v2737_v47  ;;  %v2748_v1 = vunpack.i.h.bf16 %v2746_v57  ;;  %v2747_v18 = vunpack.i.l.bf16 %v2746_v57  ;;  %3030 = vrot.lane.b32.xlu1 %v3890_v4, %s3523_s28 }
  0xae   : > { %3025 = vrot.lane.b32.xlu0 %v3835_v8, %s3525_s30  ;;  %634 = vst.msk [vmem:[#allocation2 + $0x167] sm:$0xff] %vm577_vm3, %v2753_v9  ;;  %639 = vst.msk [vmem:[#allocation2 + $0x187] sm:$0xff] %vm577_vm3, %v2753_v9 }
  0xaf   : > { %633 = vst.msk [vmem:[#allocation2 + $0x15f] sm:$0xfe] %vm575_vm1, %v2752_v16  ;;  %638 = vst.msk [vmem:[#allocation2 + $0x17f] sm:$0xfe] %vm575_vm1, %v2752_v16  ;;  %v2761_v27 = vpop.permute.xlu1 %2760 }
  0xb0   : > { %627 = vst.msk [vmem:[#allocation2 + $0x13f] sm:$0x1] %vm581_vm2, %v2748_v1  ;;  %632 = vst.msk [vmem:[#allocation2 + $0x15f] sm:$0x1] %vm581_vm2, %v2748_v1  ;;  %v2756_v33 = vpop.permute.xlu0 %2755  ;;  %v2763_v49 = vunpack.i.h.bf16 %v2761_v27  ;;  %v2762_v17 = vunpack.i.l.bf16 %v2761_v27 }
  0xb1   : > { %626 = vst.msk [vmem:[#allocation2 + $0x137] sm:$0xff] %vm577_vm3, %v2747_v18  ;;  %631 = vst.msk [vmem:[#allocation2 + $0x157] sm:$0xff] %vm577_vm3, %v2747_v18  ;;  %v2758_v58 = vunpack.i.h.bf16 %v2756_v33  ;;  %v2757_v25 = vunpack.i.l.bf16 %v2756_v33  ;;  %3040 = vrot.lane.b32.xlu1 %v3893_v10, %s3523_s28 }
  0xb2   : > { %3035 = vrot.lane.b32.xlu0 %v4005_v11, %s3523_s28  ;;  %643 = vst.msk [vmem:[#allocation2 + $0x19f] sm:$0xfe] %vm575_vm1, %v2763_v49  ;;  %648 = vst.msk [vmem:[#allocation2 + $0x1bf] sm:$0xfe] %vm575_vm1, %v2763_v49 }
  0xb3   : > { %637 = vst.msk [vmem:[#allocation2 + $0x17f] sm:$0x1] %vm581_vm2, %v2762_v17  ;;  %642 = vst.msk [vmem:[#allocation2 + $0x19f] sm:$0x1] %vm581_vm2, %v2762_v17  ;;  %v2771_v24 = vpop.permute.xlu1 %2770 }
  0xb4   : > { %636 = vst.msk [vmem:[#allocation2 + $0x177] sm:$0xff] %vm577_vm3, %v2758_v58  ;;  %641 = vst.msk [vmem:[#allocation2 + $0x197] sm:$0xff] %vm577_vm3, %v2758_v58  ;;  %v2766_v35 = vpop.permute.xlu0 %2765  ;;  %v2773_v47 = vunpack.i.h.bf16 %v2771_v24  ;;  %v2772_v55 = vunpack.i.l.bf16 %v2771_v24 }
  0xb5   : > { %635 = vst.msk [vmem:[#allocation2 + $0x16f] sm:$0xff] %vm577_vm3, %v2757_v25  ;;  %640 = vst.msk [vmem:[#allocation2 + $0x18f] sm:$0xff] %vm577_vm3, %v2757_v25  ;;  %v2768_v57 = vunpack.i.h.bf16 %v2766_v35  ;;  %v2767_v9 = vunpack.i.l.bf16 %v2766_v35  ;;  %3050 = vrot.lane.b32.xlu1 %v3874_v23, %s3526_s4 }
  0xb6   : > { %3045 = vrot.lane.b32.xlu0 %v4017_v21, %s3523_s28  ;;  %647 = vst.msk [vmem:[#allocation2 + $0x1bf] sm:$0x1] %vm581_vm2, %v2773_v47  ;;  %652 = vst.msk [vmem:[#allocation2 + $0x1df] sm:$0x1] %vm581_vm2, %v2773_v47 }
  0xb7   : > { %646 = vst.msk [vmem:[#allocation2 + $0x1b7] sm:$0xff] %vm577_vm3, %v2772_v55  ;;  %651 = vst.msk [vmem:[#allocation2 + $0x1d7] sm:$0xff] %vm577_vm3, %v2772_v55  ;;  %v2781_v16 = vpop.permute.xlu1 %2780 }
  0xb8   : > { %645 = vst.msk [vmem:[#allocation2 + $0x1af] sm:$0xff] %vm577_vm3, %v2768_v57  ;;  %650 = vst.msk [vmem:[#allocation2 + $0x1cf] sm:$0xff] %vm577_vm3, %v2768_v57  ;;  %v2776_v1 = vpop.permute.xlu0 %2775  ;;  %v2783_v18 = vunpack.i.h.bf16 %v2781_v16  ;;  %v2782_v27 = vunpack.i.l.bf16 %v2781_v16 }
  0xb9   : > { %644 = vst.msk [vmem:[#allocation2 + $0x1a7] sm:$0xff] %vm577_vm3, %v2767_v9  ;;  %649 = vst.msk [vmem:[#allocation2 + $0x1c7] sm:$0xff] %vm577_vm3, %v2767_v9  ;;  %v2778_v33 = vunpack.i.h.bf16 %v2776_v1  ;;  %v2777_v49 = vunpack.i.l.bf16 %v2776_v1  ;;  %3060 = vrot.lane.b32.xlu1 %v3835_v8, %s3526_s4 }
  0xba   : > { %3055 = vrot.lane.b32.xlu0 %v3913_v48, %s3526_s4  ;;  %655 = vst.msk [vmem:[#allocation2 + $0x1ef] sm:$0xff] %vm577_vm3, %v2782_v27  ;;  %656 = vst.msk [vmem:[#allocation2 + $0x1f7] sm:$0xff] %vm577_vm3, %v2783_v18 }
  0xbb   : > { %654 = vst.msk [vmem:[#allocation2 + $0x1e7] sm:$0xff] %vm577_vm3, %v2778_v33  ;;  %v2786_v17 = vpop.permute.xlu1 %2785  ;;  %vm1366_vm3 = vcmask 189600  }
  0xbc   : > { %653 = vst.msk [vmem:[#allocation2 + $0x1df] sm:$0xfe] %vm575_vm1, %v2777_v49  ;;  %v529_v58 = vpop.permute.xlu0 %528  ;;  %v2788_v25 = vunpack.i.h.bf16 %v2786_v17  ;;  %v2787_v24 = vunpack.i.l.bf16 %v2786_v17  ;;  %vm2154_vm1 = vcmask 293888  }
  0xbd   : > { %657 = vst.msk [vmem:[#allocation2 + $0x1ff] sm:$0x1] %vm581_vm2, %v529_v58  ;;  %3070 = vrot.lane.b32.xlu1 %v4005_v11, %s3524_s29  ;;  %vm1163_vm2 = vcmask 155776  }
  0xbe   : > { %3065 = vrot.lane.b32.xlu0 %v3890_v4, %s3524_s29  ;;  %794 = vst.msk [vmem:[#allocation2 - $0x2] sm:$0xfc] %vm793_vm4, %v2787_v24 }
  0xbf   : > { %796 = vst.msk [vmem:[#allocation2 + $0x6] sm:$0xff] %vm795_vm5, %v2788_v25  ;;  %v2796_v35 = vpop.permute.xlu1 %2795 }
  0xc0   : > { %v2791_v47 = vpop.permute.xlu0 %2790  ;;  %v2798_v55 = vunpack.i.h.bf16 %v2796_v35  ;;  %v2797_v57 = vunpack.i.l.bf16 %v2796_v35 }
  0xc1   : > { %v2793_v9 = vunpack.i.h.bf16 %v2791_v47  ;;  %v2792_v16 = vunpack.i.l.bf16 %v2791_v47  ;;  %3080 = vrot.lane.b32.xlu1 %v4017_v21, %s3524_s29 }
  0xc2   : > { %3075 = vrot.lane.b32.xlu0 %v3893_v10, %s3524_s29  ;;  %801 = vst.msk [vmem:[#allocation2 + $0x1e] sm:$0xfc] %vm793_vm4, %v2798_v55  ;;  %806 = vst.msk [vmem:[#allocation2 + $0x3e] sm:$0xfc] %vm793_vm4, %v2798_v55 }
  0xc3   : > { %800 = vst.msk [vmem:[#allocation2 + $0x1e] sm:$0x3] %vm799_vm6, %v2797_v57  ;;  %v2806_v11 = vpop.permute.xlu1 %2805 }
  0xc4   : > { %797 = vst.msk [vmem:[#allocation2 + $0xe] sm:$0xff] %vm795_vm5, %v2792_v16  ;;  %798 = vst.msk [vmem:[#allocation2 + $0x16] sm:$0xff] %vm795_vm5, %v2793_v9  ;;  %v2801_v1 = vpop.permute.xlu0 %2800  ;;  %v2808_v18 = vunpack.i.h.bf16 %v2806_v11  ;;  %v2807_v27 = vunpack.i.l.bf16 %v2806_v11 }
  0xc5   : > { %v2803_v33 = vunpack.i.h.bf16 %v2801_v1  ;;  %v2802_v49 = vunpack.i.l.bf16 %v2801_v1  ;;  %3090 = vrot.lane.b32.xlu1 %v3913_v48, %s3527_s5 }
  0xc6   : > { %3085 = vrot.lane.b32.xlu0 %v3874_v23, %s3527_s5  ;;  %804 = vst.msk [vmem:[#allocation2 + $0x36] sm:$0xff] %vm795_vm5, %v2807_v27  ;;  %809 = vst.msk [vmem:[#allocation2 + $0x56] sm:$0xff] %vm795_vm5, %v2807_v27 }
  0xc7   : > { %805 = vst.msk [vmem:[#allocation2 + $0x3e] sm:$0x3] %vm799_vm6, %v2808_v18  ;;  %810 = vst.msk [vmem:[#allocation2 + $0x5e] sm:$0x3] %vm799_vm6, %v2808_v18  ;;  %v2816_v10 = vpop.permute.xlu1 %2815 }
  0xc8   : > { %803 = vst.msk [vmem:[#allocation2 + $0x2e] sm:$0xff] %vm795_vm5, %v2803_v33  ;;  %808 = vst.msk [vmem:[#allocation2 + $0x4e] sm:$0xff] %vm795_vm5, %v2803_v33  ;;  %v2811_v48 = vpop.permute.xlu0 %2810  ;;  %v2818_v21 = vunpack.i.h.bf16 %v2816_v10  ;;  %v2817_v23 = vunpack.i.l.bf16 %v2816_v10 }
  0xc9   : > { %802 = vst.msk [vmem:[#allocation2 + $0x26] sm:$0xff] %vm795_vm5, %v2802_v49  ;;  %807 = vst.msk [vmem:[#allocation2 + $0x46] sm:$0xff] %vm795_vm5, %v2802_v49  ;;  %v2813_v17 = vunpack.i.h.bf16 %v2811_v48  ;;  %v2812_v58 = vunpack.i.l.bf16 %v2811_v48  ;;  %3100 = vrot.lane.b32.xlu1 %v3890_v4, %s3525_s30 }
  0xca   : > { %3095 = vrot.lane.b32.xlu0 %v3835_v8, %s3527_s5  ;;  %813 = vst.msk [vmem:[#allocation2 + $0x6e] sm:$0xff] %vm795_vm5, %v2817_v23  ;;  %814 = vst.msk [vmem:[#allocation2 + $0x76] sm:$0xff] %vm795_vm5, %v2818_v21 }
  0xcb   : > { %818 = vst.msk [vmem:[#allocation2 + $0x8e] sm:$0xff] %vm795_vm5, %v2817_v23  ;;  %819 = vst.msk [vmem:[#allocation2 + $0x96] sm:$0xff] %vm795_vm5, %v2818_v21  ;;  %v2826_v25 = vpop.permute.xlu1 %2825 }
  0xcc   : > { %812 = vst.msk [vmem:[#allocation2 + $0x66] sm:$0xff] %vm795_vm5, %v2813_v17  ;;  %817 = vst.msk [vmem:[#allocation2 + $0x86] sm:$0xff] %vm795_vm5, %v2813_v17  ;;  %v2821_v24 = vpop.permute.xlu0 %2820  ;;  %v2828_v35 = vunpack.i.h.bf16 %v2826_v25  ;;  %v2827_v8 = vunpack.i.l.bf16 %v2826_v25 }
  0xcd   : > { %811 = vst.msk [vmem:[#allocation2 + $0x5e] sm:$0xfc] %vm793_vm4, %v2812_v58  ;;  %816 = vst.msk [vmem:[#allocation2 + $0x7e] sm:$0xfc] %vm793_vm4, %v2812_v58  ;;  %v2823_v47 = vunpack.i.h.bf16 %v2821_v24  ;;  %v2822_v55 = vunpack.i.l.bf16 %v2821_v24  ;;  %3110 = vrot.lane.b32.xlu1 %v3870_v20, %s3525_s30 }
  0xce   : > { %3105 = vrot.lane.b32.xlu0 %v3958_v0, %s3525_s30  ;;  %822 = vst.msk [vmem:[#allocation2 + $0xa6] sm:$0xff] %vm795_vm5, %v2827_v8  ;;  %823 = vst.msk [vmem:[#allocation2 + $0xae] sm:$0xff] %vm795_vm5, %v2828_v35 }
  0xcf   : > { %827 = vst.msk [vmem:[#allocation2 + $0xc6] sm:$0xff] %vm795_vm5, %v2827_v8  ;;  %828 = vst.msk [vmem:[#allocation2 + $0xce] sm:$0xff] %vm795_vm5, %v2828_v35  ;;  %v2836_v57 = vpop.permute.xlu1 %2835  ;;  %v3149_v35 = vpack.i.bf16 %v299_v56, %v289_v26  ;;  %v3159_v8 = vpack.i.bf16 %v319_v51, %v309_v30 }
  0xd0   : > { %821 = vst.msk [vmem:[#allocation2 + $0x9e] sm:$0xfc] %vm793_vm4, %v2823_v47  ;;  %826 = vst.msk [vmem:[#allocation2 + $0xbe] sm:$0xfc] %vm793_vm4, %v2823_v47  ;;  %v2831_v9 = vpop.permute.xlu0 %2830  ;;  %v2838_v16 = vunpack.i.h.bf16 %v2836_v57  ;;  %v2837_v11 = vunpack.i.l.bf16 %v2836_v57  ;;  %v3154_v47 = vpack.i.bf16 %v3661_v32, %v3634_v22 }
  0xd1   : > { %815 = vst.msk [vmem:[#allocation2 + $0x7e] sm:$0x3] %vm799_vm6, %v2822_v55  ;;  %820 = vst.msk [vmem:[#allocation2 + $0x9e] sm:$0x3] %vm799_vm6, %v2822_v55  ;;  %v2833_v1 = vunpack.i.h.bf16 %v2831_v9  ;;  %v2832_v18 = vunpack.i.l.bf16 %v2831_v9  ;;  %3120 = vrot.lane.b32.xlu1 %v3958_v0, %s3526_s4 }
  0xd2   : > { %3115 = vrot.lane.b32.xlu0 %v3890_v4, %s3526_s4  ;;  %831 = vst.msk [vmem:[#allocation2 + $0xde] sm:$0xfc] %vm793_vm4, %v2837_v11  ;;  %836 = vst.msk [vmem:[#allocation2 + $0xfe] sm:$0xfc] %vm793_vm4, %v2837_v11 }
  0xd3   : > { %832 = vst.msk [vmem:[#allocation2 + $0xe6] sm:$0xff] %vm795_vm5, %v2838_v16  ;;  %837 = vst.msk [vmem:[#allocation2 + $0x106] sm:$0xff] %vm795_vm5, %v2838_v16  ;;  %v2846_v27 = vpop.permute.xlu1 %2845 }
  0xd4   : > { %825 = vst.msk [vmem:[#allocation2 + $0xbe] sm:$0x3] %vm799_vm6, %v2833_v1  ;;  %830 = vst.msk [vmem:[#allocation2 + $0xde] sm:$0x3] %vm799_vm6, %v2833_v1  ;;  %v2841_v33 = vpop.permute.xlu0 %2840  ;;  %v2848_v49 = vunpack.i.h.bf16 %v2846_v27  ;;  %v2847_v10 = vunpack.i.l.bf16 %v2846_v27 }
  0xd5   : > { %824 = vst.msk [vmem:[#allocation2 + $0xb6] sm:$0xff] %vm795_vm5, %v2832_v18  ;;  %829 = vst.msk [vmem:[#allocation2 + $0xd6] sm:$0xff] %vm795_vm5, %v2832_v18  ;;  %v2843_v48 = vunpack.i.h.bf16 %v2841_v33  ;;  %v2842_v21 = vunpack.i.l.bf16 %v2841_v33  ;;  %3130 = vrot.lane.b32.xlu1 %v3890_v4, %s3527_s5 }
  0xd6   : > { %3125 = vrot.lane.b32.xlu0 %v3870_v20, %s3526_s4  ;;  %835 = vst.msk [vmem:[#allocation2 + $0xfe] sm:$0x3] %vm799_vm6, %v2847_v10  ;;  %840 = vst.msk [vmem:[#allocation2 + $0x11e] sm:$0x3] %vm799_vm6, %v2847_v10  ;;  %v3189_v10 = vpack.i.bf16 %v3793_v62, %v3754_v53 }
  0xd7   : > { %841 = vst.msk [vmem:[#allocation2 + $0x11e] sm:$0xfc] %vm793_vm4, %v2848_v49  ;;  %846 = vst.msk [vmem:[#allocation2 + $0x13e] sm:$0xfc] %vm793_vm4, %v2848_v49  ;;  %v2856_v4 = vpop.permute.xlu1 %2855 }
  0xd8   : > { %834 = vst.msk [vmem:[#allocation2 + $0xf6] sm:$0xff] %vm795_vm5, %v2843_v48  ;;  %839 = vst.msk [vmem:[#allocation2 + $0x116] sm:$0xff] %vm795_vm5, %v2843_v48  ;;  %v2851_v23 = vpop.permute.xlu0 %2850  ;;  %v2858_v17 = vunpack.i.h.bf16 %v2856_v4  ;;  %v2857_v58 = vunpack.i.l.bf16 %v2856_v4 }
  0xd9   : > { %833 = vst.msk [vmem:[#allocation2 + $0xee] sm:$0xff] %vm795_vm5, %v2842_v21  ;;  %838 = vst.msk [vmem:[#allocation2 + $0x10e] sm:$0xff] %vm795_vm5, %v2842_v21  ;;  %v2853_v25 = vunpack.i.h.bf16 %v2851_v23  ;;  %v2852_v24 = vunpack.i.l.bf16 %v2851_v23  ;;  %3140 = vrot.lane.b32.xlu1 %v3870_v20, %s3527_s5 }
  0xda   : > { %3135 = vrot.lane.b32.xlu0 %v3958_v0, %s3527_s5  ;;  %844 = vst.msk [vmem:[#allocation2 + $0x136] sm:$0xff] %vm795_vm5, %v2857_v58  ;;  %849 = vst.msk [vmem:[#allocation2 + $0x156] sm:$0xff] %vm795_vm5, %v2857_v58 }
  0xdb   : > { %845 = vst.msk [vmem:[#allocation2 + $0x13e] sm:$0x3] %vm799_vm6, %v2858_v17  ;;  %850 = vst.msk [vmem:[#allocation2 + $0x15e] sm:$0x3] %vm799_vm6, %v2858_v17  ;;  %v2866_v14 = vpop.permute.xlu1 %2865 }
  0xdc   : > { %843 = vst.msk [vmem:[#allocation2 + $0x12e] sm:$0xff] %vm795_vm5, %v2853_v25  ;;  %848 = vst.msk [vmem:[#allocation2 + $0x14e] sm:$0xff] %vm795_vm5, %v2853_v25  ;;  %v2861_v20 = vpop.permute.xlu0 %2860  ;;  %v2868_v44 = vunpack.i.h.bf16 %v2866_v14  ;;  %v2867_v26 = vunpack.i.l.bf16 %v2866_v14 }
  0xdd   : > { %842 = vst.msk [vmem:[#allocation2 + $0x126] sm:$0xff] %vm795_vm5, %v2852_v24  ;;  %847 = vst.msk [vmem:[#allocation2 + $0x146] sm:$0xff] %vm795_vm5, %v2852_v24  ;;  %v2863_v56 = vunpack.i.h.bf16 %v2861_v20  ;;  %v2862_v0 = vunpack.i.l.bf16 %v2861_v20  ;;  %3150 = vrot.lane.b32.xlu1 %v3149_v35, %s3524_s29 }
  0xde   : > { %3145 = vrot.lane.b32.xlu0 %v3149_v35, %s3523_s28  ;;  %853 = vst.msk [vmem:[#allocation2 + $0x16e] sm:$0xff] %vm795_vm5, %v2867_v26  ;;  %854 = vst.msk [vmem:[#allocation2 + $0x176] sm:$0xff] %vm795_vm5, %v2868_v44 }
  0xdf   : > { %858 = vst.msk [vmem:[#allocation2 + $0x18e] sm:$0xff] %vm795_vm5, %v2867_v26  ;;  %859 = vst.msk [vmem:[#allocation2 + $0x196] sm:$0xff] %vm795_vm5, %v2868_v44  ;;  %v2876_v19 = vpop.permute.xlu1 %2875 }
  0xe0   : > { %852 = vst.msk [vmem:[#allocation2 + $0x166] sm:$0xff] %vm795_vm5, %v2863_v56  ;;  %857 = vst.msk [vmem:[#allocation2 + $0x186] sm:$0xff] %vm795_vm5, %v2863_v56  ;;  %v2871_v30 = vpop.permute.xlu0 %2870  ;;  %v2878_v46 = vunpack.i.h.bf16 %v2876_v19  ;;  %v2877_v22 = vunpack.i.l.bf16 %v2876_v19  ;;  %v4323_v19 = vpack.i.bf16 %v3676_v36, %v3720_v45 }
  0xe1   : > { %851 = vst.msk [vmem:[#allocation2 + $0x15e] sm:$0xfc] %vm793_vm4, %v2862_v0  ;;  %856 = vst.msk [vmem:[#allocation2 + $0x17e] sm:$0xfc] %vm793_vm4, %v2862_v0  ;;  %v2873_v32 = vunpack.i.h.bf16 %v2871_v30  ;;  %v2872_v51 = vunpack.i.l.bf16 %v2871_v30  ;;  %3160 = vrot.lane.b32.xlu1 %v3159_v8, %s3523_s28  ;;  %v4307_v0 = vpack.i.bf16 %v3694_v42, %v3652_v29 }
  0xe2   : > { %3155 = vrot.lane.b32.xlu0 %v3154_v47, %s3525_s30  ;;  %862 = vst.msk [vmem:[#allocation2 + $0x1a6] sm:$0xff] %vm795_vm5, %v2877_v22  ;;  %863 = vst.msk [vmem:[#allocation2 + $0x1ae] sm:$0xff] %vm795_vm5, %v2878_v46 }
  0xe3   : > { %867 = vst.msk [vmem:[#allocation2 + $0x1c6] sm:$0xff] %vm795_vm5, %v2877_v22  ;;  %868 = vst.msk [vmem:[#allocation2 + $0x1ce] sm:$0xff] %vm795_vm5, %v2878_v46  ;;  %v2886_v55 = vpop.permute.xlu1 %2885 }
  0xe4   : > { %861 = vst.msk [vmem:[#allocation2 + $0x19e] sm:$0xfc] %vm793_vm4, %v2873_v32  ;;  %866 = vst.msk [vmem:[#allocation2 + $0x1be] sm:$0xfc] %vm793_vm4, %v2873_v32  ;;  %v2881_v57 = vpop.permute.xlu0 %2880  ;;  %v2888_v9 = vunpack.i.h.bf16 %v2886_v55  ;;  %v2887_v16 = vunpack.i.l.bf16 %v2886_v55 }
  0xe5   : > { %855 = vst.msk [vmem:[#allocation2 + $0x17e] sm:$0x3] %vm799_vm6, %v2872_v51  ;;  %860 = vst.msk [vmem:[#allocation2 + $0x19e] sm:$0x3] %vm799_vm6, %v2872_v51  ;;  %v2883_v11 = vunpack.i.h.bf16 %v2881_v57  ;;  %v2882_v1 = vunpack.i.l.bf16 %v2881_v57  ;;  %3170 = vrot.lane.b32.xlu1 %v3831_v7, %s3526_s4 }
  0xe6   : > { %3165 = vrot.lane.b32.xlu0 %v3703_v43, %s3526_s4  ;;  %871 = vst.msk [vmem:[#allocation2 + $0x1de] sm:$0xfc] %vm793_vm4, %v2887_v16  ;;  %vm1762_vm4 = vcmask 254176  }
  0xe7   : > { %872 = vst.msk [vmem:[#allocation2 + $0x1e6] sm:$0xff] %vm795_vm5, %v2888_v9  ;;  %864 = vst.msk [vmem:[#allocation2 + $0x1b6] sm:$0xff] %vm795_vm5, %v2882_v1  ;;  %v747_v18 = vpop.permute.xlu1 %746 }
  0xe8   : > { %865 = vst.msk [vmem:[#allocation2 + $0x1be] sm:$0x3] %vm799_vm6, %v2883_v11  ;;  %870 = vst.msk [vmem:[#allocation2 + $0x1de] sm:$0x3] %vm799_vm6, %v2883_v11  ;;  %v2891_v27 = vpop.permute.xlu0 %2890 }
  0xe9   : > { %869 = vst.msk [vmem:[#allocation2 + $0x1d6] sm:$0xff] %vm795_vm5, %v2882_v1  ;;  %v2893_v33 = vunpack.i.h.bf16 %v2891_v27  ;;  %v2892_v49 = vunpack.i.l.bf16 %v2891_v27  ;;  %3180 = vrot.lane.b32.xlu1 %v3703_v43, %s3527_s5 }
  0xea   : > { %875 = vst.msk [vmem:[#allocation2 + $0x1fe] sm:$0x3] %vm799_vm6, %v747_v18  ;;  %3175 = vrot.lane.b32.xlu0 %v3159_v8, %s3524_s29  ;;  %vm2341_vm6 = vcmask 7168  }
  0xeb   : > { %874 = vst.msk [vmem:[#allocation2 + $0x1f6] sm:$0xff] %vm795_vm5, %v2893_v33  ;;  %873 = vst.msk [vmem:[#allocation2 + $0x1ee] sm:$0xff] %vm795_vm5, %v2892_v49  ;;  %v2901_v48 = vpop.permute.xlu1 %2900  ;;  %vm1980_vm5 = vcmask 288000  }
  0xec   : > { %v2896_v21 = vpop.permute.xlu0 %2895  ;;  %v2903_v4 = vunpack.i.h.bf16 %v2901_v48  ;;  %v2902_v23 = vunpack.i.l.bf16 %v2901_v48 }
  0xed   : > { %v2898_v17 = vunpack.i.h.bf16 %v2896_v21  ;;  %v2897_v58 = vunpack.i.l.bf16 %v2896_v21  ;;  %3190 = vrot.lane.b32.xlu1 %v3189_v10, %s3525_s30 }
  0xee   : > { %3185 = vrot.lane.b32.xlu0 %v3831_v7, %s3527_s5  ;;  %975 = vst.msk [vmem:[#allocation2 + $0x10] sm:$0xff] %vm972_vm7, %v2902_v23  ;;  %976 = vst.msk [vmem:[#allocation2 + $0x18] sm:$0xff] %vm972_vm7, %v2903_v4 }
  0xef   : > { %979 = vst.msk [vmem:[#allocation2 + $0x30] sm:$0xff] %vm972_vm7, %v2902_v23  ;;  %980 = vst.msk [vmem:[#allocation2 + $0x38] sm:$0xff] %vm972_vm7, %v2903_v4  ;;  %v2911_v43 = vpop.permute.xlu1 %2910 }
  0xf0   : > { %974 = vst.msk [vmem:[#allocation2 + $0x8] sm:$0xff] %vm972_vm7, %v2898_v17  ;;  %978 = vst.msk [vmem:[#allocation2 + $0x28] sm:$0xff] %vm972_vm7, %v2898_v17  ;;  %v2906_v53 = vpop.permute.xlu0 %2905  ;;  %v2913_v62 = vunpack.i.h.bf16 %v2911_v43  ;;  %v2912_v7 = vunpack.i.l.bf16 %v2911_v43  ;;  %v4375_v43 = vpack.i.bf16 %v3814_v2, %v3822_v6 }
  0xf1   : > { %973 = vst.msk [vmem:[#allocation2] sm:$0xff] %vm972_vm7, %v2897_v58  ;;  %977 = vst.msk [vmem:[#allocation2 + $0x20] sm:$0xff] %vm972_vm7, %v2897_v58  ;;  %v2908_v25 = vunpack.i.h.bf16 %v2906_v53  ;;  %v2907_v24 = vunpack.i.l.bf16 %v2906_v53  ;;  %3200 = vrot.lane.b32.xlu1 %v3932_v28, %s3526_s4  ;;  %v4379_v53 = vpack.i.bf16 %v3820_v5, %v3789_v60 }
  0xf2   : > { %3195 = vrot.lane.b32.xlu0 %v3904_v37, %s3526_s4  ;;  %983 = vst.msk [vmem:[#allocation2 + $0x50] sm:$0xff] %vm972_vm7, %v2912_v7  ;;  %984 = vst.msk [vmem:[#allocation2 + $0x58] sm:$0xff] %vm972_vm7, %v2913_v62 }
  0xf3   : > { %987 = vst.msk [vmem:[#allocation2 + $0x70] sm:$0xff] %vm972_vm7, %v2912_v7  ;;  %988 = vst.msk [vmem:[#allocation2 + $0x78] sm:$0xff] %vm972_vm7, %v2913_v62  ;;  %v2921_v35 = vpop.permute.xlu1 %2920 }
  0xf4   : > { %982 = vst.msk [vmem:[#allocation2 + $0x48] sm:$0xff] %vm972_vm7, %v2908_v25  ;;  %986 = vst.msk [vmem:[#allocation2 + $0x68] sm:$0xff] %vm972_vm7, %v2908_v25  ;;  %v2916_v14 = vpop.permute.xlu0 %2915  ;;  %v2923_v20 = vunpack.i.h.bf16 %v2921_v35  ;;  %v2922_v44 = vunpack.i.l.bf16 %v2921_v35 }
  0xf5   : > { %981 = vst.msk [vmem:[#allocation2 + $0x40] sm:$0xff] %vm972_vm7, %v2907_v24  ;;  %985 = vst.msk [vmem:[#allocation2 + $0x60] sm:$0xff] %vm972_vm7, %v2907_v24  ;;  %v2918_v26 = vunpack.i.h.bf16 %v2916_v14  ;;  %v2917_v56 = vunpack.i.l.bf16 %v2916_v14  ;;  %3210 = vrot.lane.b32.xlu1 %v3932_v28, %s3527_s5 }
  0xf6   : > { %3205 = vrot.lane.b32.xlu0 %v3904_v37, %s3527_s5  ;;  %991 = vst.msk [vmem:[#allocation2 + $0x90] sm:$0xff] %vm972_vm7, %v2922_v44  ;;  %992 = vst.msk [vmem:[#allocation2 + $0x98] sm:$0xff] %vm972_vm7, %v2923_v20 }
  0xf7   : > { %995 = vst.msk [vmem:[#allocation2 + $0xb0] sm:$0xff] %vm972_vm7, %v2922_v44  ;;  %996 = vst.msk [vmem:[#allocation2 + $0xb8] sm:$0xff] %vm972_vm7, %v2923_v20  ;;  %v2931_v37 = vpop.permute.xlu1 %2930 }
  0xf8   : > { %990 = vst.msk [vmem:[#allocation2 + $0x88] sm:$0xff] %vm972_vm7, %v2918_v26  ;;  %994 = vst.msk [vmem:[#allocation2 + $0xa8] sm:$0xff] %vm972_vm7, %v2918_v26  ;;  %v2926_v28 = vpop.permute.xlu0 %2925  ;;  %v2933_v29 = vunpack.i.h.bf16 %v2931_v37  ;;  %v2932_v42 = vunpack.i.l.bf16 %v2931_v37 }
  0xf9   : > { %989 = vst.msk [vmem:[#allocation2 + $0x80] sm:$0xff] %vm972_vm7, %v2917_v56  ;;  %993 = vst.msk [vmem:[#allocation2 + $0xa0] sm:$0xff] %vm972_vm7, %v2917_v56  ;;  %v2928_v8 = vunpack.i.h.bf16 %v2926_v28  ;;  %v2927_v47 = vunpack.i.l.bf16 %v2926_v28  ;;  %3220 = vrot.lane.b32.xlu1 %v4307_v0, %s3525_s30 }
  0xfa   : > { %3215 = vrot.lane.b32.xlu0 %v3680_v39, %s3525_s30  ;;  %999 = vst.msk [vmem:[#allocation2 + $0xd0] sm:$0xff] %vm972_vm7, %v2932_v42  ;;  %1000 = vst.msk [vmem:[#allocation2 + $0xd8] sm:$0xff] %vm972_vm7, %v2933_v29 }
  0xfb   : > { %1003 = vst.msk [vmem:[#allocation2 + $0xf0] sm:$0xff] %vm972_vm7, %v2932_v42  ;;  %1004 = vst.msk [vmem:[#allocation2 + $0xf8] sm:$0xff] %vm972_vm7, %v2933_v29  ;;  %v2941_v30 = vpop.permute.xlu1 %2940 }
  0xfc   : > { %998 = vst.msk [vmem:[#allocation2 + $0xc8] sm:$0xff] %vm972_vm7, %v2928_v8  ;;  %1002 = vst.msk [vmem:[#allocation2 + $0xe8] sm:$0xff] %vm972_vm7, %v2928_v8  ;;  %v2936_v46 = vpop.permute.xlu0 %2935  ;;  %v2943_v36 = vunpack.i.h.bf16 %v2941_v30  ;;  %v2942_v45 = vunpack.i.l.bf16 %v2941_v30 }
  0xfd   : > { %997 = vst.msk [vmem:[#allocation2 + $0xc0] sm:$0xff] %vm972_vm7, %v2927_v47  ;;  %1001 = vst.msk [vmem:[#allocation2 + $0xe0] sm:$0xff] %vm972_vm7, %v2927_v47  ;;  %v2938_v22 = vunpack.i.h.bf16 %v2936_v46  ;;  %v2937_v32 = vunpack.i.l.bf16 %v2936_v46  ;;  %3230 = vrot.lane.b32.xlu1 %v3680_v39, %s3526_s4 }
  0xfe   : > { %3225 = vrot.lane.b32.xlu0 %v4323_v19, %s3525_s30  ;;  %1007 = vst.msk [vmem:[#allocation2 + $0x110] sm:$0xff] %vm972_vm7, %v2942_v45  ;;  %1011 = vst.msk [vmem:[#allocation2 + $0x130] sm:$0xff] %vm972_vm7, %v2942_v45  ;;  %v3304_v45 = vpack.i.bf16 %v3692_v41, %v3659_v31 }
  0xff   : > { %1008 = vst.msk [vmem:[#allocation2 + $0x118] sm:$0xff] %vm972_vm7, %v2943_v36  ;;  %1012 = vst.msk [vmem:[#allocation2 + $0x138] sm:$0xff] %vm972_vm7, %v2943_v36  ;;  %v2951_v51 = vpop.permute.xlu1 %2950  ;;  %v3309_v36 = vpack.i.bf16 %v3682_v40, %v3659_v31 }
 0x100   : > { %1006 = vst.msk [vmem:[#allocation2 + $0x108] sm:$0xff] %vm972_vm7, %v2938_v22  ;;  %1010 = vst.msk [vmem:[#allocation2 + $0x128] sm:$0xff] %vm972_vm7, %v2938_v22  ;;  %v2946_v55 = vpop.permute.xlu0 %2945  ;;  %v2953_v57 = vunpack.i.h.bf16 %v2951_v51  ;;  %v2952_v9 = vunpack.i.l.bf16 %v2951_v51 }
 0x101   : > { %1005 = vst.msk [vmem:[#allocation2 + $0x100] sm:$0xff] %vm972_vm7, %v2937_v32  ;;  %1009 = vst.msk [vmem:[#allocation2 + $0x120] sm:$0xff] %vm972_vm7, %v2937_v32  ;;  %v2948_v16 = vunpack.i.h.bf16 %v2946_v55  ;;  %v2947_v11 = vunpack.i.l.bf16 %v2946_v55  ;;  %3240 = vrot.lane.b32.xlu1 %v4323_v19, %s3526_s4 }
 0x102   : > { %3235 = vrot.lane.b32.xlu0 %v4307_v0, %s3526_s4  ;;  %1015 = vst.msk [vmem:[#allocation2 + $0x150] sm:$0xff] %vm972_vm7, %v2952_v9  ;;  %1019 = vst.msk [vmem:[#allocation2 + $0x170] sm:$0xff] %vm972_vm7, %v2952_v9  ;;  %v3314_v9 = vpack.i.bf16 %v3862_v15, %v3692_v41  ;;  %v3329_v41 = vpack.i.bf16 %v3816_v3, %v3791_v61 }
 0x103   : > { %1016 = vst.msk [vmem:[#allocation2 + $0x158] sm:$0xff] %vm972_vm7, %v2953_v57  ;;  %1020 = vst.msk [vmem:[#allocation2 + $0x178] sm:$0xff] %vm972_vm7, %v2953_v57  ;;  %v2961_v1 = vpop.permute.xlu1 %2960 }
 0x104   : > { %1014 = vst.msk [vmem:[#allocation2 + $0x148] sm:$0xff] %vm972_vm7, %v2948_v16  ;;  %1018 = vst.msk [vmem:[#allocation2 + $0x168] sm:$0xff] %vm972_vm7, %v2948_v16  ;;  %v2956_v18 = vpop.permute.xlu0 %2955  ;;  %v2963_v27 = vunpack.i.h.bf16 %v2961_v1  ;;  %v2962_v33 = vunpack.i.l.bf16 %v2961_v1 }
 0x105   : > { %1013 = vst.msk [vmem:[#allocation2 + $0x140] sm:$0xff] %vm972_vm7, %v2947_v11  ;;  %1017 = vst.msk [vmem:[#allocation2 + $0x160] sm:$0xff] %vm972_vm7, %v2947_v11  ;;  %v2958_v49 = vunpack.i.h.bf16 %v2956_v18  ;;  %v2957_v10 = vunpack.i.l.bf16 %v2956_v18  ;;  %3250 = vrot.lane.b32.xlu1 %v4307_v0, %s3527_s5 }
 0x106   : > { %3245 = vrot.lane.b32.xlu0 %v3680_v39, %s3527_s5  ;;  %1023 = vst.msk [vmem:[#allocation2 + $0x190] sm:$0xff] %vm972_vm7, %v2962_v33  ;;  %1027 = vst.msk [vmem:[#allocation2 + $0x1b0] sm:$0xff] %vm972_vm7, %v2962_v33 }
 0x107   : > { %1024 = vst.msk [vmem:[#allocation2 + $0x198] sm:$0xff] %vm972_vm7, %v2963_v27  ;;  %1028 = vst.msk [vmem:[#allocation2 + $0x1b8] sm:$0xff] %vm972_vm7, %v2963_v27  ;;  %v2971_v48 = vpop.permute.xlu1 %2970 }
 0x108   : > { %1022 = vst.msk [vmem:[#allocation2 + $0x188] sm:$0xff] %vm972_vm7, %v2958_v49  ;;  %1026 = vst.msk [vmem:[#allocation2 + $0x1a8] sm:$0xff] %vm972_vm7, %v2958_v49  ;;  %v2966_v21 = vpop.permute.xlu0 %2965  ;;  %v2973_v4 = vunpack.i.h.bf16 %v2971_v48  ;;  %v2972_v23 = vunpack.i.l.bf16 %v2971_v48 }
 0x109   : > { %1021 = vst.msk [vmem:[#allocation2 + $0x180] sm:$0xff] %vm972_vm7, %v2957_v10  ;;  %1025 = vst.msk [vmem:[#allocation2 + $0x1a0] sm:$0xff] %vm972_vm7, %v2957_v10  ;;  %v2968_v17 = vunpack.i.h.bf16 %v2966_v21  ;;  %v2967_v58 = vunpack.i.l.bf16 %v2966_v21  ;;  %3260 = vrot.lane.b32.xlu1 %v3897_v34, %s3525_s30 }
 0x10a   : > { %3255 = vrot.lane.b32.xlu0 %v4323_v19, %s3527_s5  ;;  %1031 = vst.msk [vmem:[#allocation2 + $0x1d0] sm:$0xff] %vm972_vm7, %v2972_v23  ;;  %1035 = vst.msk [vmem:[#allocation2 + $0x1f0] sm:$0xff] %vm972_vm7, %v2972_v23 }
 0x10b   : > { %1032 = vst.msk [vmem:[#allocation2 + $0x1d8] sm:$0xff] %vm972_vm7, %v2973_v4  ;;  %1036 = vst.msk [vmem:[#allocation2 + $0x1f8] sm:$0xff] %vm972_vm7, %v2973_v4  ;;  %v2981_v2 = vpop.permute.xlu1 %2980 }
 0x10c   : > { %1030 = vst.msk [vmem:[#allocation2 + $0x1c8] sm:$0xff] %vm972_vm7, %v2968_v17  ;;  %1034 = vst.msk [vmem:[#allocation2 + $0x1e8] sm:$0xff] %vm972_vm7, %v2968_v17  ;;  %v2976_v60 = vpop.permute.xlu0 %2975  ;;  %v2983_v5 = vunpack.i.h.bf16 %v2981_v2  ;;  %v2982_v6 = vunpack.i.l.bf16 %v2981_v2  ;;  %v3339_v17 = vpack.i.bf16 %v3951_v63, %v3816_v3 }
 0x10d   : > { %1029 = vst.msk [vmem:[#allocation2 + $0x1c0] sm:$0xff] %vm972_vm7, %v2967_v58  ;;  %1033 = vst.msk [vmem:[#allocation2 + $0x1e0] sm:$0xff] %vm972_vm7, %v2967_v58  ;;  %v2978_v62 = vunpack.i.h.bf16 %v2976_v60  ;;  %v2977_v7 = vunpack.i.l.bf16 %v2976_v60  ;;  %3270 = vrot.lane.b32.xlu1 %v4375_v43, %s3525_s30  ;;  %v3334_v58 = vpack.i.bf16 %v3906_v38, %v3791_v61  ;;  %vm2352_vm7 = vcmask 15368  }
 0x10e   : > { %3265 = vrot.lane.b32.xlu0 %v4379_v53, %s3525_s30  ;;  %1161 = vst.msk [vmem:[#allocation2 + $0xf] sm:$0xff] %vm1159_vm8, %v2982_v6  ;;  %1162 = vst.msk [vmem:[#allocation2 + $0x17] sm:$0xff] %vm1159_vm8, %v2983_v5 }
 0x10f   : > { %1167 = vst.msk [vmem:[#allocation2 + $0x2f] sm:$0xff] %vm1159_vm8, %v2982_v6  ;;  %1168 = vst.msk [vmem:[#allocation2 + $0x37] sm:$0xff] %vm1159_vm8, %v2983_v5  ;;  %v2991_v25 = vpop.permute.xlu1 %2990 }
 0x110   : > { %1158 = vst.msk [vmem:[#allocation2 - $0x1] sm:$0xfe] %vm1157_vm9, %v2977_v7  ;;  %1165 = vst.msk [vmem:[#allocation2 + $0x1f] sm:$0xfe] %vm1157_vm9, %v2977_v7  ;;  %v2986_v24 = vpop.permute.xlu0 %2985  ;;  %v2993_v35 = vunpack.i.h.bf16 %v2991_v25  ;;  %v2992_v14 = vunpack.i.l.bf16 %v2991_v25 }
 0x111   : > { %1160 = vst.msk [vmem:[#allocation2 + $0x7] sm:$0xff] %vm1159_vm8, %v2978_v62  ;;  %1166 = vst.msk [vmem:[#allocation2 + $0x27] sm:$0xff] %vm1159_vm8, %v2978_v62  ;;  %v2988_v20 = vunpack.i.h.bf16 %v2986_v24  ;;  %v2987_v44 = vunpack.i.l.bf16 %v2986_v24  ;;  %3280 = vrot.lane.b32.xlu1 %v4379_v53, %s3526_s4 }
 0x112   : > { %3275 = vrot.lane.b32.xlu0 %v3897_v34, %s3526_s4  ;;  %1182 = vst.msk [vmem:[#allocation2 + $0x8f] sm:$0xff] %vm1159_vm8, %v2992_v14  ;;  %1183 = vst.msk [vmem:[#allocation2 + $0x97] sm:$0xff] %vm1159_vm8, %v2993_v35 }
 0x113   : > { %1187 = vst.msk [vmem:[#allocation2 + $0xaf] sm:$0xff] %vm1159_vm8, %v2992_v14  ;;  %1188 = vst.msk [vmem:[#allocation2 + $0xb7] sm:$0xff] %vm1159_vm8, %v2993_v35  ;;  %v3001_v26 = vpop.permute.xlu1 %3000 }
 0x114   : > { %1180 = vst.msk [vmem:[#allocation2 + $0x7f] sm:$0xfe] %vm1157_vm9, %v2987_v44  ;;  %1185 = vst.msk [vmem:[#allocation2 + $0x9f] sm:$0xfe] %vm1157_vm9, %v2987_v44  ;;  %v2996_v56 = vpop.permute.xlu0 %2995  ;;  %v3003_v0 = vunpack.i.h.bf16 %v3001_v26  ;;  %v3002_v37 = vunpack.i.l.bf16 %v3001_v26 }
 0x115   : > { %1181 = vst.msk [vmem:[#allocation2 + $0x87] sm:$0xff] %vm1159_vm8, %v2988_v20  ;;  %1186 = vst.msk [vmem:[#allocation2 + $0xa7] sm:$0xff] %vm1159_vm8, %v2988_v20  ;;  %v2998_v28 = vunpack.i.h.bf16 %v2996_v56  ;;  %v2997_v29 = vunpack.i.l.bf16 %v2996_v56  ;;  %3290 = vrot.lane.b32.xlu1 %v3897_v34, %s3527_s5 }
 0x116   : > { %3285 = vrot.lane.b32.xlu0 %v4375_v43, %s3526_s4  ;;  %1364 = vst.msk [vmem:[#allocation2 + $0xe] sm:$0xff] %vm1362_vm10, %v3002_v37  ;;  %1365 = vst.msk [vmem:[#allocation2 + $0x16] sm:$0xff] %vm1362_vm10, %v3003_v0 }
 0x117   : > { %1370 = vst.msk [vmem:[#allocation2 + $0x2e] sm:$0xff] %vm1362_vm10, %v3002_v37  ;;  %1371 = vst.msk [vmem:[#allocation2 + $0x36] sm:$0xff] %vm1362_vm10, %v3003_v0  ;;  %v3011_v42 = vpop.permute.xlu1 %3010 }
 0x118   : > { %1361 = vst.msk [vmem:[#allocation2 - $0x2] sm:$0xfc] %vm1360_vm11, %v2997_v29  ;;  %1368 = vst.msk [vmem:[#allocation2 + $0x1e] sm:$0xfc] %vm1360_vm11, %v2997_v29  ;;  %v3006_v8 = vpop.permute.xlu0 %3005  ;;  %v3013_v47 = vunpack.i.h.bf16 %v3011_v42  ;;  %v3012_v19 = vunpack.i.l.bf16 %v3011_v42 }
 0x119   : > { %1363 = vst.msk [vmem:[#allocation2 + $0x6] sm:$0xff] %vm1362_vm10, %v2998_v28  ;;  %1369 = vst.msk [vmem:[#allocation2 + $0x26] sm:$0xff] %vm1362_vm10, %v2998_v28  ;;  %v3008_v30 = vunpack.i.h.bf16 %v3006_v8  ;;  %v3007_v46 = vunpack.i.l.bf16 %v3006_v8  ;;  %3300 = vrot.lane.b32.xlu1 %v4375_v43, %s3527_s5 }
 0x11a   : > { %3295 = vrot.lane.b32.xlu0 %v4379_v53, %s3527_s5  ;;  %1385 = vst.msk [vmem:[#allocation2 + $0x8e] sm:$0xff] %vm1362_vm10, %v3012_v19  ;;  %1386 = vst.msk [vmem:[#allocation2 + $0x96] sm:$0xff] %vm1362_vm10, %v3013_v47 }
 0x11b   : > { %1390 = vst.msk [vmem:[#allocation2 + $0xae] sm:$0xff] %vm1362_vm10, %v3012_v19  ;;  %1391 = vst.msk [vmem:[#allocation2 + $0xb6] sm:$0xff] %vm1362_vm10, %v3013_v47  ;;  %v4441_v22 = vpop.permute.xlu1 %3020 }
 0x11c   : > { %1383 = vst.msk [vmem:[#allocation2 + $0x7e] sm:$0xfc] %vm1360_vm11, %v3007_v46  ;;  %1388 = vst.msk [vmem:[#allocation2 + $0x9e] sm:$0xfc] %vm1360_vm11, %v3007_v46  ;;  %v3016_v31 = vpop.permute.xlu0 %3015  ;;  %v5622_v32 = vunpack.i.h.bf16 %v4441_v22  ;;  %v3022_v51 = vunpack.i.l.bf16 %v4441_v22 }
 0x11d   : > { %1384 = vst.msk [vmem:[#allocation2 + $0x86] sm:$0xff] %vm1362_vm10, %v3008_v30  ;;  %1389 = vst.msk [vmem:[#allocation2 + $0xa6] sm:$0xff] %vm1362_vm10, %v3008_v30  ;;  %v3018_v55 = vunpack.i.h.bf16 %v3016_v31  ;;  %v3017_v57 = vunpack.i.l.bf16 %v3016_v31  ;;  %3310 = vrot.lane.b32.xlu1 %v3309_v36, %s3526_s4 }
 0x11e   : > { %3305 = vrot.lane.b32.xlu0 %v3304_v45, %s3525_s30  ;;  %1558 = vst.msk [vmem:[#allocation2 + $0x10] sm:$0xff] %vm1555_vm12, %v3022_v51  ;;  %1572 = vst.msk [vmem:[#allocation2 + $0x80] sm:$0xff] %vm1555_vm12, %v5622_v32 }
 0x11f   : > { %1557 = vst.msk [vmem:[#allocation2 + $0x8] sm:$0xff] %vm1555_vm12, %v3018_v55  ;;  %1556 = vst.msk [vmem:[#allocation2] sm:$0xff] %vm1555_vm12, %v3017_v57  ;;  %v3031_v16 = vpop.permute.xlu1 %3030 }
 0x120   : > { %v4455_v11 = vpop.permute.xlu0 %3025  ;;  %v3033_v1 = vunpack.i.h.bf16 %v3031_v16  ;;  %v3032_v18 = vunpack.i.l.bf16 %v3031_v16 }
 0x121   : > { %v5612_v27 = vunpack.i.h.bf16 %v4455_v11  ;;  %v5620_v33 = vunpack.i.l.bf16 %v4455_v11  ;;  %3320 = vrot.lane.b32.xlu1 %v3309_v36, %s3527_s5 }
 0x122   : > { %3315 = vrot.lane.b32.xlu0 %v3314_v9, %s3526_s4  ;;  %1200 = vst.msk [vmem:[#allocation2 + $0xff] sm:$0xfe] %vm1157_vm9, %v3032_v18  ;;  %1205 = vst.msk [vmem:[#allocation2 + $0x11f] sm:$0xfe] %vm1157_vm9, %v3032_v18 }
 0x123   : > { %1201 = vst.msk [vmem:[#allocation2 + $0x107] sm:$0xff] %vm1159_vm8, %v3033_v1  ;;  %1206 = vst.msk [vmem:[#allocation2 + $0x127] sm:$0xff] %vm1159_vm8, %v3033_v1  ;;  %v3041_v49 = vpop.permute.xlu1 %3040 }
 0x124   : > { %1573 = vst.msk [vmem:[#allocation2 + $0x88] sm:$0xff] %vm1555_vm12, %v5620_v33  ;;  %1574 = vst.msk [vmem:[#allocation2 + $0x90] sm:$0xff] %vm1555_vm12, %v5612_v27  ;;  %v3036_v10 = vpop.permute.xlu0 %3035  ;;  %v3043_v48 = vunpack.i.h.bf16 %v3041_v49  ;;  %v3042_v21 = vunpack.i.l.bf16 %v3041_v49 }
 0x125   : > { %v3038_v4 = vunpack.i.h.bf16 %v3036_v10  ;;  %v3037_v23 = vunpack.i.l.bf16 %v3036_v10  ;;  %3330 = vrot.lane.b32.xlu1 %v3329_v41, %s3525_s30 }
 0x126   : > { %3325 = vrot.lane.b32.xlu0 %v3314_v9, %s3527_s5  ;;  %1220 = vst.msk [vmem:[#allocation2 + $0x17f] sm:$0xfe] %vm1157_vm9, %v3042_v21  ;;  %1225 = vst.msk [vmem:[#allocation2 + $0x19f] sm:$0xfe] %vm1157_vm9, %v3042_v21 }
 0x127   : > { %1221 = vst.msk [vmem:[#allocation2 + $0x187] sm:$0xff] %vm1159_vm8, %v3043_v48  ;;  %1226 = vst.msk [vmem:[#allocation2 + $0x1a7] sm:$0xff] %vm1159_vm8, %v3043_v48  ;;  %v3051_v3 = vpop.permute.xlu1 %3050 }
 0x128   : > { %1202 = vst.msk [vmem:[#allocation2 + $0x10f] sm:$0xff] %vm1159_vm8, %v3037_v23  ;;  %1207 = vst.msk [vmem:[#allocation2 + $0x12f] sm:$0xff] %vm1159_vm8, %v3037_v23  ;;  %v3046_v61 = vpop.permute.xlu0 %3045  ;;  %v3053_v43 = vunpack.i.h.bf16 %v3051_v3  ;;  %v3052_v53 = vunpack.i.l.bf16 %v3051_v3 }
 0x129   : > { %1203 = vst.msk [vmem:[#allocation2 + $0x117] sm:$0xff] %vm1159_vm8, %v3038_v4  ;;  %1208 = vst.msk [vmem:[#allocation2 + $0x137] sm:$0xff] %vm1159_vm8, %v3038_v4  ;;  %v3048_v2 = vunpack.i.h.bf16 %v3046_v61  ;;  %v3047_v60 = vunpack.i.l.bf16 %v3046_v61  ;;  %3340 = vrot.lane.b32.xlu1 %v3339_v17, %s3526_s4 }
 0x12a   : > { %3335 = vrot.lane.b32.xlu0 %v3334_v58, %s3526_s4  ;;  %1757 = vst.msk [vmem:[#allocation2 - $0x1] sm:$0xfe] %vm1756_vm13, %v3052_v53 }
 0x12b   : > { %1759 = vst.msk [vmem:[#allocation2 + $0x7] sm:$0xff] %vm1758_vm14, %v3053_v43  ;;  %v4495_v5 = vpop.permute.xlu1 %3060 }
 0x12c   : > { %1222 = vst.msk [vmem:[#allocation2 + $0x18f] sm:$0xff] %vm1159_vm8, %v3047_v60  ;;  %1227 = vst.msk [vmem:[#allocation2 + $0x1af] sm:$0xff] %vm1159_vm8, %v3047_v60  ;;  %v4497_v6 = vpop.permute.xlu0 %3055  ;;  %v5602_v62 = vunpack.i.h.bf16 %v4495_v5  ;;  %v5603_v7 = vunpack.i.l.bf16 %v4495_v5 }
 0x12d   : > { %1223 = vst.msk [vmem:[#allocation2 + $0x197] sm:$0xff] %vm1159_vm8, %v3048_v2  ;;  %1228 = vst.msk [vmem:[#allocation2 + $0x1b7] sm:$0xff] %vm1159_vm8, %v3048_v2  ;;  %v5606_v25 = vunpack.i.h.bf16 %v4497_v6  ;;  %v3057_v24 = vunpack.i.l.bf16 %v4497_v6  ;;  %3350 = vrot.lane.b32.xlu1 %v3339_v17, %s3527_s5 }
 0x12e   : > { %3345 = vrot.lane.b32.xlu0 %v3334_v58, %s3527_s5  ;;  %1781 = vst.msk [vmem:[#allocation2 + $0x8f] sm:$0xff] %vm1758_vm14, %v5602_v62  ;;  %1780 = vst.msk [vmem:[#allocation2 + $0x87] sm:$0xff] %vm1758_vm14, %v5603_v7 }
 0x12f   : > { %1760 = vst.msk [vmem:[#allocation2 + $0xf] sm:$0xff] %vm1758_vm14, %v3057_v24  ;;  %v3071_v35 = vpop.permute.xlu1 %3070 }
 0x130   : > { %1779 = vst.msk [vmem:[#allocation2 + $0x7f] sm:$0xfe] %vm1756_vm13, %v5606_v25  ;;  %v3066_v14 = vpop.permute.xlu0 %3065  ;;  %v3073_v20 = vunpack.i.h.bf16 %v3071_v35  ;;  %v3072_v44 = vunpack.i.l.bf16 %v3071_v35 }
 0x131   : > { %v3068_v26 = vunpack.i.h.bf16 %v3066_v14  ;;  %v3067_v56 = vunpack.i.l.bf16 %v3066_v14  ;;  %3360 = vrot.lane.b32.xlu1 %v3779_v59, %s3523_s28 }
 0x132   : > { %3355 = vrot.lane.b32.xlu0 %v3680_v39, %s3523_s28  ;;  %1405 = vst.msk [vmem:[#allocation2 + $0x10e] sm:$0xff] %vm1362_vm10, %v3072_v44  ;;  %1410 = vst.msk [vmem:[#allocation2 + $0x12e] sm:$0xff] %vm1362_vm10, %v3072_v44 }
 0x133   : > { %1406 = vst.msk [vmem:[#allocation2 + $0x116] sm:$0xff] %vm1362_vm10, %v3073_v20  ;;  %1411 = vst.msk [vmem:[#allocation2 + $0x136] sm:$0xff] %vm1362_vm10, %v3073_v20  ;;  %v3081_v0 = vpop.permute.xlu1 %3080 }
 0x134   : > { %1403 = vst.msk [vmem:[#allocation2 + $0xfe] sm:$0xfc] %vm1360_vm11, %v3067_v56  ;;  %1408 = vst.msk [vmem:[#allocation2 + $0x11e] sm:$0xfc] %vm1360_vm11, %v3067_v56  ;;  %v3076_v37 = vpop.permute.xlu0 %3075  ;;  %v3083_v28 = vunpack.i.h.bf16 %v3081_v0  ;;  %v3082_v29 = vunpack.i.l.bf16 %v3081_v0 }
 0x135   : > { %1404 = vst.msk [vmem:[#allocation2 + $0x106] sm:$0xff] %vm1362_vm10, %v3068_v26  ;;  %1409 = vst.msk [vmem:[#allocation2 + $0x126] sm:$0xff] %vm1362_vm10, %v3068_v26  ;;  %v3078_v42 = vunpack.i.h.bf16 %v3076_v37  ;;  %v3077_v8 = vunpack.i.l.bf16 %v3076_v37  ;;  %3370 = vrot.lane.b32.xlu1 %v3856_v12, %s3523_s28  ;;  %v3434_v37 = vpack.i.bf16 %v3862_v15, %v3682_v40 }
 0x136   : > { %3365 = vrot.lane.b32.xlu0 %v3860_v13, %s3523_s28  ;;  %1425 = vst.msk [vmem:[#allocation2 + $0x18e] sm:$0xff] %vm1362_vm10, %v3082_v29  ;;  %1430 = vst.msk [vmem:[#allocation2 + $0x1ae] sm:$0xff] %vm1362_vm10, %v3082_v29 }
 0x137   : > { %1426 = vst.msk [vmem:[#allocation2 + $0x196] sm:$0xff] %vm1362_vm10, %v3083_v28  ;;  %1431 = vst.msk [vmem:[#allocation2 + $0x1b6] sm:$0xff] %vm1362_vm10, %v3083_v28  ;;  %v4539_v47 = vpop.permute.xlu1 %3090 }
 0x138   : > { %1423 = vst.msk [vmem:[#allocation2 + $0x17e] sm:$0xfc] %vm1360_vm11, %v3077_v8  ;;  %1428 = vst.msk [vmem:[#allocation2 + $0x19e] sm:$0xfc] %vm1360_vm11, %v3077_v8  ;;  %v3086_v19 = vpop.permute.xlu0 %3085  ;;  %v5585_v30 = vunpack.i.h.bf16 %v4539_v47  ;;  %v3092_v46 = vunpack.i.l.bf16 %v4539_v47 }
 0x139   : > { %1424 = vst.msk [vmem:[#allocation2 + $0x186] sm:$0xff] %vm1362_vm10, %v3078_v42  ;;  %1429 = vst.msk [vmem:[#allocation2 + $0x1a6] sm:$0xff] %vm1362_vm10, %v3078_v42  ;;  %v3088_v36 = vunpack.i.h.bf16 %v3086_v19  ;;  %v3087_v45 = vunpack.i.l.bf16 %v3086_v19  ;;  %3380 = vrot.lane.b32.xlu1 %v3779_v59, %s3524_s29  ;;  %v3444_v19 = vpack.i.bf16 %v3951_v63, %v3906_v38 }
 0x13a   : > { %3375 = vrot.lane.b32.xlu0 %v3680_v39, %s3524_s29  ;;  %1978 = vst.msk [vmem:[#allocation2 + $0xe] sm:$0xff] %vm1976_vm0, %v3092_v46 }
 0x13b   : > { %1997 = vst.msk [vmem:[#allocation2 + $0x7e] sm:$0xfc] %vm1974_vm15, %v5585_v30  ;;  %1975 = vst.msk [vmem:[#allocation2 - $0x2] sm:$0xfc] %vm1974_vm15, %v3087_v45  ;;  %v4553_v31 = vpop.permute.xlu1 %3100 }
 0x13c   : > { %1977 = vst.msk [vmem:[#allocation2 + $0x6] sm:$0xff] %vm1976_vm0, %v3088_v36  ;;  %v4555_v51 = vpop.permute.xlu0 %3095  ;;  %v5571_v55 = vunpack.i.h.bf16 %v4553_v31  ;;  %v5572_v59 = vunpack.i.l.bf16 %v4553_v31 }
 0x13d   : > { %v5580_v39 = vunpack.i.h.bf16 %v4555_v51  ;;  %v5581_v57 = vunpack.i.l.bf16 %v4555_v51  ;;  %3390 = vrot.lane.b32.xlu1 %v3856_v12, %s3524_s29 }
 0x13e   : > { %3385 = vrot.lane.b32.xlu0 %v3860_v13, %s3524_s29  ;;  %1589 = vst.msk [vmem:[#allocation2 + $0x108] sm:$0xff] %vm1555_vm12, %v5571_v55  ;;  %1588 = vst.msk [vmem:[#allocation2 + $0x100] sm:$0xff] %vm1555_vm12, %v5572_v59 }
 0x13f   : > { %1998 = vst.msk [vmem:[#allocation2 + $0x86] sm:$0xff] %vm1976_vm0, %v5581_v57  ;;  %1999 = vst.msk [vmem:[#allocation2 + $0x8e] sm:$0xff] %vm1976_vm0, %v5580_v39  ;;  %v4577_v12 = vpop.permute.xlu1 %3110 }
 0x140   : > { %v4579_v9 = vpop.permute.xlu0 %3105  ;;  %v5555_v13 = vunpack.i.h.bf16 %v4577_v12  ;;  %v5556_v16 = vunpack.i.l.bf16 %v4577_v12 }
 0x141   : > { %v5557_v1 = vunpack.i.h.bf16 %v4579_v9  ;;  %v5569_v18 = vunpack.i.l.bf16 %v4579_v9  ;;  %3400 = vrot.lane.b32.xlu1 %v3923_v50, %s3523_s28 }
 0x142   : > { %3395 = vrot.lane.b32.xlu0 %v3897_v34, %s3523_s28  ;;  %1605 = vst.msk [vmem:[#allocation2 + $0x188] sm:$0xff] %vm1555_vm12, %v5556_v16  ;;  %1606 = vst.msk [vmem:[#allocation2 + $0x190] sm:$0xff] %vm1555_vm12, %v5555_v13 }
 0x143   : > { %1590 = vst.msk [vmem:[#allocation2 + $0x110] sm:$0xff] %vm1555_vm12, %v5569_v18  ;;  %1604 = vst.msk [vmem:[#allocation2 + $0x180] sm:$0xff] %vm1555_vm12, %v5557_v1  ;;  %v2057_v41 = vld [vmem:[#allocation2] sm:$0xff]  ;;  %v2058_v49 = vld [vmem:[#allocation2 + $0x8] sm:$0xff]  ;;  %v4601_v10 = vpop.permute.xlu1 %3120 }
 0x144   : > { %v4603_v48 = vpop.permute.xlu0 %3115  ;;  %v5554_v21 = vunpack.i.h.bf16 %v4601_v10  ;;  %v5561_v4 = vunpack.i.l.bf16 %v4601_v10  ;;  %v2121_v61 = vpack.c.bf16 %v2058_v49, %v2057_v41 }
 0x145   : > { %v5562_v23 = vunpack.i.h.bf16 %v4603_v48  ;;  %v5563_v17 = vunpack.i.l.bf16 %v4603_v48  ;;  %3410 = vrot.lane.b32.xlu1 %v3940_v52, %s3523_s28 }
 0x146   : > { %3405 = vrot.lane.b32.xlu0 %v3944_v54, %s3523_s28  ;;  %v2073_v58 = vld [vmem:[#allocation2 + $0x80] sm:$0xff]  ;;  %v2074_v3 = vld [vmem:[#allocation2 + $0x88] sm:$0xff]  ;;  %1819 = vst.msk [vmem:[#allocation2 + $0x17f] sm:$0xfe] %vm1756_vm13, %v5554_v21  ;;  %v2159_v20 = vsel %vm2154_vm1, %v2121_v61, 0 }
 0x147   : > { %1801 = vst.msk [vmem:[#allocation2 + $0x10f] sm:$0xff] %vm1758_vm14, %v5561_v4  ;;  %1800 = vst.msk [vmem:[#allocation2 + $0x107] sm:$0xff] %vm1758_vm14, %v5562_v23  ;;  %v2129_v43 = vpack.c.bf16 %v2074_v3, %v2073_v58  ;;  %v4625_v53 = vpop.permute.xlu1 %3130 }
 0x148   : > { %1799 = vst.msk [vmem:[#allocation2 + $0xff] sm:$0xfe] %vm1756_vm13, %v5563_v17  ;;  %v4627_v2 = vpop.permute.xlu0 %3125  ;;  %v5559_v60 = vunpack.i.h.bf16 %v4625_v53  ;;  %v5560_v24 = vunpack.i.l.bf16 %v4625_v53 }
 0x149   : > { %v5552_v35 = vunpack.i.h.bf16 %v4627_v2  ;;  %v5553_v14 = vunpack.i.l.bf16 %v4627_v2  ;;  %2609 = vmatprep.subr.msk.bf16.mxu0 %vm2154_vm1, %v2129_v43  ;;  %3420 = vrot.lane.b32.xlu1 %v3923_v50, %s3524_s29 }
 0x14a   : > { %3415 = vrot.lane.b32.xlu0 %v3897_v34, %s3524_s29  ;;  %2017 = vst.msk [vmem:[#allocation2 + $0xfe] sm:$0xfc] %vm1974_vm15, %v5560_v24  ;;  %2574 = vmatpush3.bf16.xpose.msra.mxu0 %v2159_v20 }
 0x14b   : > { %2018 = vst.msk [vmem:[#allocation2 + $0x106] sm:$0xff] %vm1976_vm0, %v5559_v60  ;;  %v4651_v34 = vpop.permute.xlu1 %3140 }
 0x14c   : > { %1820 = vst.msk [vmem:[#allocation2 + $0x187] sm:$0xff] %vm1758_vm14, %v5553_v14  ;;  %1821 = vst.msk [vmem:[#allocation2 + $0x18f] sm:$0xff] %vm1758_vm14, %v5552_v35  ;;  %v4653_v50 = vpop.permute.xlu0 %3135  ;;  %v5549_v44 = vunpack.i.h.bf16 %v4651_v34  ;;  %v5550_v26 = vunpack.i.l.bf16 %v4651_v34 }
 0x14d   : > { %v5551_v56 = vunpack.i.h.bf16 %v4653_v50  ;;  %v5558_v0 = vunpack.i.l.bf16 %v4653_v50  ;;  %3430 = vrot.lane.b32.xlu1 %v3940_v52, %s3524_s29  ;;  %v4678_v52 = vld [vmem:[%s3590_s24 + $0xb4] ss:$12 sps:$4 sm:$0xff]  }
 0x14e   : > { %3425 = vrot.lane.b32.xlu0 %v3944_v54, %s3524_s29  ;;  %2038 = vst.msk [vmem:[#allocation2 + $0x186] sm:$0xff] %vm1976_vm0, %v5550_v26  ;;  %2039 = vst.msk [vmem:[#allocation2 + $0x18e] sm:$0xff] %vm1976_vm0, %v5549_v44  ;;  %v2572_v54 = vld [vmem:[%s3590_s24 + $0xb8] sm:$0xff]   ;;  %v325_v36 = vunpack.c.l.bf16 %v4678_v52 }
 0x14f   : > { %2037 = vst.msk [vmem:[#allocation2 + $0x17e] sm:$0xfc] %vm1974_vm15, %v5551_v56  ;;  %v3151_v40 = vpop.permute.xlu1 %3150  ;;  %v2557_v46 = vunpack.c.l.bf16 %v2572_v54 }
 0x150   : > { %2019 = vst.msk [vmem:[#allocation2 + $0x10e] sm:$0xff] %vm1976_vm0, %v5558_v0  ;;  %v3146_v15 = vpop.permute.xlu0 %3145  ;;  %v3153_v28 = vunpack.i.h.bf16 %v3151_v40  ;;  %v3152_v29 = vunpack.i.l.bf16 %v3151_v40  ;;  %v2558_v40 = vunpack.c.h.bf16 %v2572_v54 }
 0x151   : > { %v3148_v42 = vunpack.i.h.bf16 %v3146_v15  ;;  %v3147_v8 = vunpack.i.l.bf16 %v3146_v15  ;;  %3440 = vrot.lane.b32.xlu1 %v3434_v37, %s3524_s29  ;;  %v3454_v20 = vpack.i.bf16 %v2557_v46, %v325_v36 }
 0x152   : > { %3435 = vrot.lane.b32.xlu0 %v3434_v37, %s3523_s28  ;;  %v2089_v3 = vld [vmem:[#allocation2 + $0x100] sm:$0xff] }
 0x153   : > { %1164 = vst.msk [vmem:[#allocation2 + $0x1f] sm:$0x1] %vm1163_vm2, %v3147_v8  ;;  %1169 = vst.msk [vmem:[#allocation2 + $0x3f] sm:$0x1] %vm1163_vm2, %v3147_v8  ;;  %v3161_v38 = vpop.permute.xlu1 %3160 }
 0x154   : > { %1184 = vst.msk [vmem:[#allocation2 + $0x9f] sm:$0x1] %vm1163_vm2, %v3148_v42  ;;  %1189 = vst.msk [vmem:[#allocation2 + $0xbf] sm:$0x1] %vm1163_vm2, %v3148_v42  ;;  %v4694_v63 = vpop.permute.xlu0 %3155  ;;  %v3163_v45 = vunpack.i.h.bf16 %v3161_v38  ;;  %v3162_v41 = vunpack.i.l.bf16 %v3161_v38  ;;  %v279_v38 = vld [vmem:[%s3590_s24 + $0xc4] sm:$0x1]  ;;  %s219_s24 = scalar_lea.vmem %s5532_s2, %s2492_s21 }
 0x155   : > { %1367 = vst.msk [vmem:[#allocation2 + $0x1e] sm:$0x3] %vm1366_vm3, %v3152_v29  ;;  %1372 = vst.msk [vmem:[#allocation2 + $0x3e] sm:$0x3] %vm1366_vm3, %v3152_v29  ;;  %v5548_v49 = vunpack.i.h.bf16 %v4694_v63  ;;  %v3157_v58 = vunpack.i.l.bf16 %v4694_v63  ;;  %3450 = vrot.lane.b32.xlu1 %v3444_v19, %s3524_s29  ;;  %v2106_v43 = vld [vmem:[#allocation2 + $0x188] sm:$0xff] }
 0x156   : > { %1387 = vst.msk [vmem:[#allocation2 + $0x9e] sm:$0x3] %vm1366_vm3, %v3153_v28  ;;  %1392 = vst.msk [vmem:[#allocation2 + $0xbe] sm:$0x3] %vm1366_vm3, %v3153_v28  ;;  %3445 = vrot.lane.b32.xlu0 %v3444_v19, %s3523_s28  ;;  %v2105_v61 = vld [vmem:[#allocation2 + $0x180] sm:$0xff] }
 0x157   : > { %v2090_v37 = vld [vmem:[#allocation2 + $0x108] sm:$0xff]  ;;  %1204 = vst.msk [vmem:[#allocation2 + $0x11f] sm:$0x1] %vm1163_vm2, %v3162_v41  ;;  %1209 = vst.msk [vmem:[#allocation2 + $0x13f] sm:$0x1] %vm1163_vm2, %v3162_v41  ;;  %v2145_v15 = vpack.c.bf16 %v2106_v43, %v2105_v61  ;;  %v4708_v29 = vpop.permute.xlu1 %3170 }
 0x158   : > { %1224 = vst.msk [vmem:[#allocation2 + $0x19f] sm:$0x1] %vm1163_vm2, %v3163_v45  ;;  %1229 = vst.msk [vmem:[#allocation2 + $0x1bf] sm:$0x1] %vm1163_vm2, %v3163_v45  ;;  %v2137_v28 = vpack.c.bf16 %v2090_v37, %v2089_v3  ;;  %v3166_v54 = vpop.permute.xlu0 %3165  ;;  %v5540_v42 = vunpack.i.h.bf16 %v4708_v29  ;;  %v5546_v8 = vunpack.i.l.bf16 %v4708_v29  ;;  %v328_v37 = vunpack.c.h.bf16 %v4678_v52 }
 0x159   : > { %1559 = vst.msk [vmem:[#allocation2 + $0x18] sm:$0xff] %vm1555_vm12, %v3157_v58  ;;  %1575 = vst.msk [vmem:[#allocation2 + $0x98] sm:$0xff] %vm1555_vm12, %v5548_v49  ;;  %v3168_v19 = vunpack.i.h.bf16 %v3166_v54  ;;  %v3167_v46 = vunpack.i.l.bf16 %v3166_v54  ;;  %2617 = vmatprep.subr.msk.bf16.mxu1 %vm2154_vm1, %v2145_v15  ;;  %1515 = vrot.lane.b32.xlu1 %v2558_v40, %s3525_s30  ;;  %v329_v15 = vunpack.c.l.bf16 %v279_v38 }
 0x15a   : > { %3455 = vrot.lane.b32.xlu0 %v3454_v20, %s3525_s30  ;;  %v2207_v36 = vsel %vm2154_vm1, %v2137_v28, 0  ;;  %1782 = vst.msk [vmem:[#allocation2 + $0x97] sm:$0xff] %vm1758_vm14, %v5546_v8 }
 0x15b   : > { %1783 = vst.msk [vmem:[#allocation2 + $0x9f] sm:$0x1] %vm1762_vm4, %v5540_v42  ;;  %1763 = vst.msk [vmem:[#allocation2 + $0x1f] sm:$0x1] %vm1762_vm4, %v3168_v19  ;;  %2592 = vmatpush3.bf16.xpose.msra.mxu1 %v2207_v36  ;;  %v3181_v45 = vpop.permute.xlu1 %3180  ;;  %v3469_v38 = vpack.i.bf16 %v329_v15, %v328_v37 }
 0x15c   : > { %1761 = vst.msk [vmem:[#allocation2 + $0x17] sm:$0xff] %vm1758_vm14, %v3167_v46  ;;  %v3176_v41 = vpop.permute.xlu0 %3175  ;;  %v3183_v58 = vunpack.i.h.bf16 %v3181_v45  ;;  %v3182_v3 = vunpack.i.l.bf16 %v3181_v45 }
 0x15d   : > { %v3178_v61 = vunpack.i.h.bf16 %v3176_v41  ;;  %v3177_v43 = vunpack.i.l.bf16 %v3176_v41  ;;  %1705 = vrot.lane.b32.xlu1 %v2558_v40, %s3526_s4 }
 0x15e   : > { %3460 = vrot.lane.b32.xlu0 %v3454_v20, %s3526_s4  ;;  %1979 = vst.msk [vmem:[#allocation2 + $0x16] sm:$0xff] %vm1976_vm0, %v3182_v3 }
 0x15f   : > { %1981 = vst.msk [vmem:[#allocation2 + $0x1e] sm:$0x3] %vm1980_vm5, %v3183_v58  ;;  %v4734_v28 = vpop.permute.xlu1 %3190 }
 0x160   : > { %1407 = vst.msk [vmem:[#allocation2 + $0x11e] sm:$0x3] %vm1366_vm3, %v3177_v43  ;;  %1412 = vst.msk [vmem:[#allocation2 + $0x13e] sm:$0x3] %vm1366_vm3, %v3177_v43  ;;  %v4736_v54 = vpop.permute.xlu0 %3185  ;;  %v5534_v19 = vunpack.i.h.bf16 %v4734_v28  ;;  %v5547_v52 = vunpack.i.l.bf16 %v4734_v28 }
 0x161   : > { %1427 = vst.msk [vmem:[#allocation2 + $0x19e] sm:$0x3] %vm1366_vm3, %v3178_v61  ;;  %1432 = vst.msk [vmem:[#allocation2 + $0x1be] sm:$0x3] %vm1366_vm3, %v3178_v61  ;;  %v5535_v46 = vunpack.i.h.bf16 %v4736_v54  ;;  %v5537_v36 = vunpack.i.l.bf16 %v4736_v54  ;;  %1923 = vrot.lane.b32.xlu1 %v2558_v40, %s3527_s5 }
 0x162   : > { %3465 = vrot.lane.b32.xlu0 %v3454_v20, %s3527_s5  ;;  %1591 = vst.msk [vmem:[#allocation2 + $0x118] sm:$0xff] %vm1555_vm12, %v5547_v52  ;;  %1607 = vst.msk [vmem:[#allocation2 + $0x198] sm:$0xff] %vm1555_vm12, %v5534_v19 }
 0x163   : > { %2000 = vst.msk [vmem:[#allocation2 + $0x96] sm:$0xff] %vm1976_vm0, %v5537_v36  ;;  %v4756_v20 = vpop.permute.xlu1 %3200 }
 0x164   : > { %2001 = vst.msk [vmem:[#allocation2 + $0x9e] sm:$0x3] %vm1980_vm5, %v5535_v46  ;;  %v4758_v40 = vpop.permute.xlu0 %3195  ;;  %v5538_v45 = vunpack.i.h.bf16 %v4756_v20  ;;  %v5536_v41 = vunpack.i.l.bf16 %v4756_v20 }
 0x165   : > { %v5542_v58 = vunpack.i.h.bf16 %v4758_v40  ;;  %v5539_v3 = vunpack.i.l.bf16 %v4758_v40  ;;  %3470 = vrot.lane.b32.xlu1 %v3469_v38, %s3526_s4  ;;  %v2059_v61 = vld [vmem:[#allocation2 + $0x10] sm:$0xff] }
 0x166   : > { %1517 = vrot.lane.b32.xlu0 %v328_v37, %s3525_s30  ;;  %v2060_v43 = vld [vmem:[#allocation2 + $0x18] sm:$0xff]  ;;  %1822 = vst.msk [vmem:[#allocation2 + $0x197] sm:$0xff] %vm1758_vm14, %v5536_v41 }
 0x167   : > { %1823 = vst.msk [vmem:[#allocation2 + $0x19f] sm:$0x1] %vm1762_vm4, %v5538_v45  ;;  %1803 = vst.msk [vmem:[#allocation2 + $0x11f] sm:$0x1] %vm1762_vm4, %v5542_v58  ;;  %v4778_v37 = vpop.permute.xlu1 %3210  ;;  %v2122_v19 = vpack.c.bf16 %v2060_v43, %v2059_v61 }
 0x168   : > { %1802 = vst.msk [vmem:[#allocation2 + $0x117] sm:$0xff] %vm1758_vm14, %v5539_v3  ;;  %5638 = vst [vmem:[#allocation3_spill] sm:$0xff] %v4778_v37  ;;  %v4780_v15 = vpop.permute.xlu0 %3205  ;;  %v5543_v46 = vunpack.i.h.bf16 %v4778_v37  ;;  %v5541_v41 = vunpack.i.l.bf16 %v4778_v37 }
 0x169   : > { %v5545_v36 = vunpack.i.h.bf16 %v4780_v15  ;;  %v5544_v45 = vunpack.i.l.bf16 %v4780_v15  ;;  %v2162_v58 = vsel %vm2154_vm1, %v2122_v19, 0 }
 0x16a   : > { %3475 = vrot.lane.b32.xlu0 %v3469_v38, %s3527_s5  ;;  %v2075_v3 = vld [vmem:[#allocation2 + $0x90] sm:$0xff]  ;;  %2040 = vst.msk [vmem:[#allocation2 + $0x196] sm:$0xff] %vm1976_vm0, %v5541_v41  ;;  %v2153_v38 = vld [vmem:[%s5531_s1] sm:$0xf] }
 0x16b   : > { %v2076_v42 = vld [vmem:[#allocation2 + $0x98] sm:$0xff]  ;;  %2041 = vst.msk [vmem:[#allocation2 + $0x19e] sm:$0x3] %vm1980_vm5, %v5543_v46  ;;  %2021 = vst.msk [vmem:[#allocation2 + $0x11e] sm:$0x3] %vm1980_vm5, %v5545_v36  ;;  %v4802_v43 = vpop.permute.xlu1 %3220  ;;  %2589 = vmatprep.mubr.msk.bf16.mxu0 %vm2154_vm1, %v2153_v38  ;;  %2607 = vmatprep.mubr.msk.bf16.mxu1 %vm2154_vm1, %v2153_v38 }
 0x16c   : > { %2020 = vst.msk [vmem:[#allocation2 + $0x116] sm:$0xff] %vm1976_vm0, %v5544_v45  ;;  %v2130_v61 = vpack.c.bf16 %v2076_v42, %v2075_v3  ;;  %v4804_v41 = vpop.permute.xlu0 %3215  ;;  %v5576_v46 = vunpack.i.h.bf16 %v4802_v43  ;;  %v5627_v45 = vunpack.i.l.bf16 %v4802_v43 }
 0x16d   : > { %v5623_v42 = vunpack.i.h.bf16 %v4804_v41  ;;  %v5626_v3 = vunpack.i.l.bf16 %v4804_v41 }
 0x16e   : > { %2610 = vmatprep.subr.msk.bf16.mxu0 %vm2154_vm1, %v2130_v61  ;;  %1562 = vst.msk [vmem:[#allocation2 + $0x30] sm:$0xff] %vm1555_vm12, %v5627_v45  ;;  %1576 = vst.msk [vmem:[#allocation2 + $0xa0] sm:$0xff] %vm1555_vm12, %v5576_v46 }
 0x16f   : > { %2576 = vmatpush3.bf16.xpose.msra.mxu0 %v2162_v58  ;;  %1561 = vst.msk [vmem:[#allocation2 + $0x28] sm:$0xff] %vm1555_vm12, %v5623_v42  ;;  %1560 = vst.msk [vmem:[#allocation2 + $0x20] sm:$0xff] %vm1555_vm12, %v5626_v3  ;;  %v4826_v19 = vpop.permute.xlu1 %3230 }
 0x170   : > { %v4828_v61 = vpop.permute.xlu0 %3225  ;;  %v5608_v58 = vunpack.i.h.bf16 %v4826_v19  ;;  %v5610_v38 = vunpack.i.l.bf16 %v4826_v19 }
 0x171   : > { %v5578_v36 = vunpack.i.h.bf16 %v4828_v61  ;;  %v5575_v8 = vunpack.i.l.bf16 %v4828_v61  ;;  %v2107_v52 = vld [vmem:[#allocation2 + $0x190] sm:$0xff] }
 0x172   : > { %v2108_v49 = vld [vmem:[#allocation2 + $0x198] sm:$0xff]  ;;  %1764 = vst.msk [vmem:[#allocation2 + $0x1f] sm:$0xfe] %vm1756_vm13, %v5610_v38 }
 0x173   : > { %v2091_v44 = vld [vmem:[#allocation2 + $0x110] sm:$0xff]  ;;  %1765 = vst.msk [vmem:[#allocation2 + $0x27] sm:$0xff] %vm1758_vm14, %v5608_v58  ;;  %v2146_v26 = vpack.c.bf16 %v2108_v49, %v2107_v52  ;;  %v2092_v56 = vld [vmem:[#allocation2 + $0x118] sm:$0xff]  ;;  %v4846_v35 = vpop.permute.xlu1 %3240 }
 0x174   : > { %1577 = vst.msk [vmem:[#allocation2 + $0xa8] sm:$0xff] %vm1555_vm12, %v5575_v8  ;;  %1578 = vst.msk [vmem:[#allocation2 + $0xb0] sm:$0xff] %vm1555_vm12, %v5578_v36  ;;  %v4848_v14 = vpop.permute.xlu0 %3235  ;;  %v2138_v21 = vpack.c.bf16 %v2092_v56, %v2091_v44  ;;  %v5565_v13 = vunpack.i.h.bf16 %v4846_v35  ;;  %v5566_v16 = vunpack.i.l.bf16 %v4846_v35 }
 0x175   : > { %v5567_v1 = vunpack.i.h.bf16 %v4848_v14  ;;  %v5607_v0 = vunpack.i.l.bf16 %v4848_v14  ;;  %2618 = vmatprep.subr.msk.bf16.mxu1 %vm2154_vm1, %v2146_v26 }
 0x176   : > { %v2210_v60 = vsel %vm2154_vm1, %v2138_v21, 0  ;;  %1786 = vst.msk [vmem:[#allocation2 + $0xaf] sm:$0xff] %vm1758_vm14, %v5565_v13  ;;  %1785 = vst.msk [vmem:[#allocation2 + $0xa7] sm:$0xff] %vm1758_vm14, %v5566_v16 }
 0x177   : > { %1766 = vst.msk [vmem:[#allocation2 + $0x2f] sm:$0xff] %vm1758_vm14, %v5607_v0  ;;  %2594 = vmatpush3.bf16.xpose.msra.mxu1 %v2210_v60  ;;  %v4868_v44 = vpop.permute.xlu1 %3250 }
 0x178   : > { %1784 = vst.msk [vmem:[#allocation2 + $0x9f] sm:$0xfe] %vm1756_vm13, %v5567_v1  ;;  %v4870_v21 = vpop.permute.xlu0 %3245  ;;  %v5564_v26 = vunpack.i.h.bf16 %v4868_v44  ;;  %v5587_v56 = vunpack.i.l.bf16 %v4868_v44 }
 0x179   : > { %v5599_v49 = vunpack.i.h.bf16 %v4870_v21  ;;  %v5601_v52 = vunpack.i.l.bf16 %v4870_v21 }
 0x17a   : > { %1984 = vst.msk [vmem:[#allocation2 + $0x2e] sm:$0xff] %vm1976_vm0, %v5587_v56 }
 0x17b   : > { %2002 = vst.msk [vmem:[#allocation2 + $0x9e] sm:$0xfc] %vm1974_vm15, %v5564_v26  ;;  %1982 = vst.msk [vmem:[#allocation2 + $0x1e] sm:$0xfc] %vm1974_vm15, %v5601_v52  ;;  %v4888_v60 = vpop.permute.xlu1 %3260 }
 0x17c   : > { %1983 = vst.msk [vmem:[#allocation2 + $0x26] sm:$0xff] %vm1976_vm0, %v5599_v49  ;;  %v4890_v24 = vpop.permute.xlu0 %3255  ;;  %v5568_v4 = vunpack.i.h.bf16 %v4888_v60  ;;  %v5570_v23 = vunpack.i.l.bf16 %v4888_v60 }
 0x17d   : > { %v5573_v17 = vunpack.i.h.bf16 %v4890_v24  ;;  %v5574_v26 = vunpack.i.l.bf16 %v4890_v24 }
 0x17e   : > { %1593 = vst.msk [vmem:[#allocation2 + $0x128] sm:$0xff] %vm1555_vm12, %v5568_v4  ;;  %1592 = vst.msk [vmem:[#allocation2 + $0x120] sm:$0xff] %vm1555_vm12, %v5570_v23 }
 0x17f   : > { %2003 = vst.msk [vmem:[#allocation2 + $0xa6] sm:$0xff] %vm1976_vm0, %v5574_v26  ;;  %2004 = vst.msk [vmem:[#allocation2 + $0xae] sm:$0xff] %vm1976_vm0, %v5573_v17  ;;  %v4908_v13 = vpop.permute.xlu1 %3270 }
 0x180   : > { %v4910_v16 = vpop.permute.xlu0 %3265  ;;  %v5579_v1 = vunpack.i.h.bf16 %v4908_v13  ;;  %v5577_v4 = vunpack.i.l.bf16 %v4908_v13 }
 0x181   : > { %v5582_v18 = vunpack.i.h.bf16 %v4910_v16  ;;  %v5583_v23 = vunpack.i.l.bf16 %v4910_v16 }
 0x182   : > { %1609 = vst.msk [vmem:[#allocation2 + $0x1a8] sm:$0xff] %vm1555_vm12, %v5577_v4  ;;  %1610 = vst.msk [vmem:[#allocation2 + $0x1b0] sm:$0xff] %vm1555_vm12, %v5579_v1 }
 0x183   : > { %v2061_v55 = vld [vmem:[#allocation2 + $0x20] sm:$0xff]  ;;  %v2062_v59 = vld [vmem:[#allocation2 + $0x28] sm:$0xff]  ;;  %1594 = vst.msk [vmem:[#allocation2 + $0x130] sm:$0xff] %vm1555_vm12, %v5583_v23  ;;  %1608 = vst.msk [vmem:[#allocation2 + $0x1a0] sm:$0xff] %vm1555_vm12, %v5582_v18  ;;  %v4928_v17 = vpop.permute.xlu1 %3280 }
 0x184   : > { %v4930_v26 = vpop.permute.xlu0 %3275  ;;  %v2123_v8 = vpack.c.bf16 %v2062_v59, %v2061_v55  ;;  %v5586_v46 = vunpack.i.h.bf16 %v4928_v17  ;;  %v5584_v4 = vunpack.i.l.bf16 %v4928_v17 }
 0x185   : > { %v5593_v36 = vunpack.i.h.bf16 %v4930_v26  ;;  %v5597_v1 = vunpack.i.l.bf16 %v4930_v26 }
 0x186   : > { %v2077_v39 = vld [vmem:[#allocation2 + $0xa0] sm:$0xff]  ;;  %v2078_v57 = vld [vmem:[#allocation2 + $0xa8] sm:$0xff]  ;;  %1806 = vst.msk [vmem:[#allocation2 + $0x12f] sm:$0xff] %vm1758_vm14, %v5584_v4  ;;  %v2165_v23 = vsel %vm2154_vm1, %v2123_v8, 0 }
 0x187   : > { %1824 = vst.msk [vmem:[#allocation2 + $0x19f] sm:$0xfe] %vm1756_vm13, %v5586_v46  ;;  %1804 = vst.msk [vmem:[#allocation2 + $0x11f] sm:$0xfe] %vm1756_vm13, %v5597_v1  ;;  %v2131_v55 = vpack.c.bf16 %v2078_v57, %v2077_v39  ;;  %v4948_v59 = vpop.permute.xlu1 %3290 }
 0x188   : > { %1805 = vst.msk [vmem:[#allocation2 + $0x127] sm:$0xff] %vm1758_vm14, %v5593_v36  ;;  %v4950_v18 = vpop.permute.xlu0 %3285  ;;  %v5588_v4 = vunpack.i.h.bf16 %v4948_v59  ;;  %v5591_v30 = vunpack.i.l.bf16 %v4948_v59 }
 0x189   : > { %v5589_v46 = vunpack.i.h.bf16 %v4950_v18  ;;  %v5590_v56 = vunpack.i.l.bf16 %v4950_v18  ;;  %2611 = vmatprep.subr.msk.bf16.mxu0 %vm2154_vm1, %v2131_v55 }
 0x18a   : > { %2578 = vmatpush3.bf16.xpose.msra.mxu0 %v2165_v23  ;;  %2022 = vst.msk [vmem:[#allocation2 + $0x11e] sm:$0xfc] %vm1974_vm15, %v5591_v30 }
 0x18b   : > { %2023 = vst.msk [vmem:[#allocation2 + $0x126] sm:$0xff] %vm1976_vm0, %v5588_v4  ;;  %v4970_v39 = vpop.permute.xlu1 %3300 }
 0x18c   : > { %1825 = vst.msk [vmem:[#allocation2 + $0x1a7] sm:$0xff] %vm1758_vm14, %v5590_v56  ;;  %1826 = vst.msk [vmem:[#allocation2 + $0x1af] sm:$0xff] %vm1758_vm14, %v5589_v46  ;;  %v4972_v57 = vpop.permute.xlu0 %3295  ;;  %v5594_v23 = vunpack.i.h.bf16 %v4970_v39  ;;  %v5592_v8 = vunpack.i.l.bf16 %v4970_v39 }
 0x18d   : > { %v5595_v55 = vunpack.i.h.bf16 %v4972_v57  ;;  %v5596_v4 = vunpack.i.l.bf16 %v4972_v57 }
 0x18e   : > { %2043 = vst.msk [vmem:[#allocation2 + $0x1a6] sm:$0xff] %vm1976_vm0, %v5592_v8  ;;  %2044 = vst.msk [vmem:[#allocation2 + $0x1ae] sm:$0xff] %vm1976_vm0, %v5594_v23 }
 0x18f   : > { %2024 = vst.msk [vmem:[#allocation2 + $0x12e] sm:$0xff] %vm1976_vm0, %v5596_v4  ;;  %v4990_v46 = vpop.permute.xlu1 %3310 }
 0x190   : > { %2042 = vst.msk [vmem:[#allocation2 + $0x19e] sm:$0xfc] %vm1974_vm15, %v5595_v55  ;;  %v4992_v56 = vpop.permute.xlu0 %3305  ;;  %v5604_v30 = vunpack.i.h.bf16 %v4990_v46  ;;  %v5605_v8 = vunpack.i.l.bf16 %v4990_v46 }
 0x191   : > { %v5600_v36 = vunpack.i.h.bf16 %v4992_v56  ;;  %v5598_v23 = vunpack.i.l.bf16 %v4992_v56 }
 0x192   : > { %v2093_v52 = vld [vmem:[#allocation2 + $0x120] sm:$0xff] }
 0x193   : > { %1563 = vst.msk [vmem:[#allocation2 + $0x38] sm:$0xff] %vm1555_vm12, %v5598_v23  ;;  %1579 = vst.msk [vmem:[#allocation2 + $0xb8] sm:$0xff] %vm1555_vm12, %v5600_v36  ;;  %v5010_v55 = vpop.permute.xlu1 %3320 }
 0x194   : > { %1768 = vst.msk [vmem:[#allocation2 + $0x3f] sm:$0x1] %vm1762_vm4, %v5604_v30  ;;  %v5012_v4 = vpop.permute.xlu0 %3315  ;;  %v5611_v1 = vunpack.i.h.bf16 %v5010_v55  ;;  %v5609_v23 = vunpack.i.l.bf16 %v5010_v55 }
 0x195   : > { %1767 = vst.msk [vmem:[#allocation2 + $0x37] sm:$0xff] %vm1758_vm14, %v5605_v8  ;;  %v5618_v49 = vunpack.i.h.bf16 %v5012_v4  ;;  %v5613_v36 = vunpack.i.l.bf16 %v5012_v4  ;;  %v2110_v7 = vld [vmem:[#allocation2 + $0x1a8] sm:$0xff] }
 0x196   : > { %v2094_v30 = vld [vmem:[#allocation2 + $0x128] sm:$0xff]  ;;  %1985 = vst.msk [vmem:[#allocation2 + $0x36] sm:$0xff] %vm1976_vm0, %v5609_v23 }
 0x197   : > { %v2109_v62 = vld [vmem:[#allocation2 + $0x1a0] sm:$0xff]  ;;  %1986 = vst.msk [vmem:[#allocation2 + $0x3e] sm:$0x3] %vm1980_vm5, %v5611_v1  ;;  %v2139_v25 = vpack.c.bf16 %v2094_v30, %v2093_v52  ;;  %v5030_v0 = vpop.permute.xlu1 %3330 }
 0x198   : > { %1787 = vst.msk [vmem:[#allocation2 + $0xb7] sm:$0xff] %vm1758_vm14, %v5613_v36  ;;  %v2147_v8 = vpack.c.bf16 %v2110_v7, %v2109_v62  ;;  %v5032_v58 = vpop.permute.xlu0 %3325  ;;  %v5614_v23 = vunpack.i.h.bf16 %v5030_v0  ;;  %v5615_v38 = vunpack.i.l.bf16 %v5030_v0 }
 0x199   : > { %1788 = vst.msk [vmem:[#allocation2 + $0xbf] sm:$0x1] %vm1762_vm4, %v5618_v49  ;;  %v5616_v1 = vunpack.i.h.bf16 %v5032_v58  ;;  %v5617_v27 = vunpack.i.l.bf16 %v5032_v58  ;;  %v2213_v36 = vsel %vm2154_vm1, %v2139_v25, 0 }
 0x19a   : > { %2619 = vmatprep.subr.msk.bf16.mxu1 %vm2154_vm1, %v2147_v8  ;;  %1595 = vst.msk [vmem:[#allocation2 + $0x138] sm:$0xff] %vm1555_vm12, %v5615_v38  ;;  %1611 = vst.msk [vmem:[#allocation2 + $0x1b8] sm:$0xff] %vm1555_vm12, %v5614_v23 }
 0x19b   : > { %2005 = vst.msk [vmem:[#allocation2 + $0xb6] sm:$0xff] %vm1976_vm0, %v5617_v27  ;;  %2596 = vmatpush3.bf16.xpose.msra.mxu1 %v2213_v36  ;;  %v5052_v62 = vpop.permute.xlu1 %3340 }
 0x19c   : > { %2006 = vst.msk [vmem:[#allocation2 + $0xbe] sm:$0x3] %vm1980_vm5, %v5616_v1  ;;  %v5054_v7 = vpop.permute.xlu0 %3335  ;;  %v5621_v25 = vunpack.i.h.bf16 %v5052_v62  ;;  %v5619_v30 = vunpack.i.l.bf16 %v5052_v62 }
 0x19d   : > { %v5624_v52 = vunpack.i.h.bf16 %v5054_v7  ;;  %v5625_v8 = vunpack.i.l.bf16 %v5054_v7  ;;  %v2063_v23 = vld [vmem:[#allocation2 + $0x30] sm:$0xff] }
 0x19e   : > { %v2064_v38 = vld [vmem:[#allocation2 + $0x38] sm:$0xff]  ;;  %1827 = vst.msk [vmem:[#allocation2 + $0x1b7] sm:$0xff] %vm1758_vm14, %v5619_v30 }
 0x19f   : > { %1828 = vst.msk [vmem:[#allocation2 + $0x1bf] sm:$0x1] %vm1762_vm4, %v5621_v25  ;;  %1808 = vst.msk [vmem:[#allocation2 + $0x13f] sm:$0x1] %vm1762_vm4, %v5624_v52  ;;  %v5072_v36 = vpop.permute.xlu1 %3350  ;;  %v2124_v27 = vpack.c.bf16 %v2064_v38, %v2063_v23 }
 0x1a0   : > { %1807 = vst.msk [vmem:[#allocation2 + $0x137] sm:$0xff] %vm1758_vm14, %v5625_v8  ;;  %5639 = vst [vmem:[#allocation4_spill] sm:$0xff] %v5072_v36  ;;  %v5074_v1 = vpop.permute.xlu0 %3345  ;;  %v5631_v49 = vunpack.i.h.bf16 %v5072_v36  ;;  %v5628_v30 = vunpack.i.l.bf16 %v5072_v36 }
 0x1a1   : > { %5640 = vst [vmem:[#allocation5_spill] sm:$0xff] %v5074_v1  ;;  %v5632_v33 = vunpack.i.h.bf16 %v5074_v1  ;;  %v5633_v25 = vunpack.i.l.bf16 %v5074_v1  ;;  %v2168_v8 = vsel %vm2154_vm1, %v2124_v27, 0 }
 0x1a2   : > { %v2079_v32 = vld [vmem:[#allocation2 + $0xb0] sm:$0xff]  ;;  %2045 = vst.msk [vmem:[#allocation2 + $0x1b6] sm:$0xff] %vm1976_vm0, %v5628_v30 }
 0x1a3   : > { %v2080_v42 = vld [vmem:[#allocation2 + $0xb8] sm:$0xff]  ;;  %2046 = vst.msk [vmem:[#allocation2 + $0x1be] sm:$0x3] %vm1980_vm5, %v5631_v49  ;;  %2026 = vst.msk [vmem:[#allocation2 + $0x13e] sm:$0x3] %vm1980_vm5, %v5632_v33  ;;  %v3361_v23 = vpop.permute.xlu1 %3360 }
 0x1a4   : > { %2025 = vst.msk [vmem:[#allocation2 + $0x136] sm:$0xff] %vm1976_vm0, %v5633_v25  ;;  %v2132_v38 = vpack.c.bf16 %v2080_v42, %v2079_v32  ;;  %v3356_v52 = vpop.permute.xlu0 %3355  ;;  %v3363_v3 = vunpack.i.h.bf16 %v3361_v23  ;;  %v3362_v45 = vunpack.i.l.bf16 %v3361_v23 }
 0x1a5   : > { %v3358_v30 = vunpack.i.h.bf16 %v3356_v52  ;;  %v3357_v37 = vunpack.i.l.bf16 %v3356_v52 }
 0x1a6   : > { %2612 = vmatprep.subr.msk.bf16.mxu0 %vm2154_vm1, %v2132_v38  ;;  %1172 = vst.msk [vmem:[#allocation2 + $0x4f] sm:$0xff] %vm1159_vm8, %v3362_v45  ;;  %1173 = vst.msk [vmem:[#allocation2 + $0x57] sm:$0xff] %vm1159_vm8, %v3363_v3 }
 0x1a7   : > { %2580 = vmatpush3.bf16.xpose.msra.mxu0 %v2168_v8  ;;  %1177 = vst.msk [vmem:[#allocation2 + $0x6f] sm:$0xff] %vm1159_vm8, %v3362_v45  ;;  %1178 = vst.msk [vmem:[#allocation2 + $0x77] sm:$0xff] %vm1159_vm8, %v3363_v3  ;;  %v3371_v32 = vpop.permute.xlu1 %3370 }
 0x1a8   : > { %1170 = vst.msk [vmem:[#allocation2 + $0x3f] sm:$0xfe] %vm1157_vm9, %v3357_v37  ;;  %1175 = vst.msk [vmem:[#allocation2 + $0x5f] sm:$0xfe] %vm1157_vm9, %v3357_v37  ;;  %v3366_v27 = vpop.permute.xlu0 %3365  ;;  %v3373_v42 = vunpack.i.h.bf16 %v3371_v32  ;;  %v3372_v52 = vunpack.i.l.bf16 %v3371_v32 }
 0x1a9   : > { %1171 = vst.msk [vmem:[#allocation2 + $0x47] sm:$0xff] %vm1159_vm8, %v3358_v30  ;;  %1176 = vst.msk [vmem:[#allocation2 + $0x67] sm:$0xff] %vm1159_vm8, %v3358_v30  ;;  %v3368_v8 = vunpack.i.h.bf16 %v3366_v27  ;;  %v3367_v38 = vunpack.i.l.bf16 %v3366_v27  ;;  %v2111_v23 = vld [vmem:[#allocation2 + $0x1b0] sm:$0xff] }
 0x1aa   : > { %v2112_v49 = vld [vmem:[#allocation2 + $0x1b8] sm:$0xff]  ;;  %1192 = vst.msk [vmem:[#allocation2 + $0xcf] sm:$0xff] %vm1159_vm8, %v3372_v52  ;;  %1193 = vst.msk [vmem:[#allocation2 + $0xd7] sm:$0xff] %vm1159_vm8, %v3373_v42 }
 0x1ab   : > { %v2095_v33 = vld [vmem:[#allocation2 + $0x130] sm:$0xff]  ;;  %1197 = vst.msk [vmem:[#allocation2 + $0xef] sm:$0xff] %vm1159_vm8, %v3372_v52  ;;  %1198 = vst.msk [vmem:[#allocation2 + $0xf7] sm:$0xff] %vm1159_vm8, %v3373_v42  ;;  %v2148_v45 = vpack.c.bf16 %v2112_v49, %v2111_v23  ;;  %v2096_v37 = vld [vmem:[#allocation2 + $0x138] sm:$0xff]  ;;  %v3381_v3 = vpop.permute.xlu1 %3380  ;;  %v5642_v49 = vunpack.i.l.bf16 %v4804_v41  ;;  %v5644_v52 = vunpack.i.h.bf16 %v4441_v22  ;;  %v5647_v23 = vunpack.i.l.bf16 %v4826_v19 }
 0x1ac   : > { %1190 = vst.msk [vmem:[#allocation2 + $0xbf] sm:$0xfe] %vm1157_vm9, %v3367_v38  ;;  %1195 = vst.msk [vmem:[#allocation2 + $0xdf] sm:$0xfe] %vm1157_vm9, %v3367_v38  ;;  %v3376_v30 = vpop.permute.xlu0 %3375  ;;  %v2140_v32 = vpack.c.bf16 %v2096_v37, %v2095_v33  ;;  %v3383_v27 = vunpack.i.h.bf16 %v3381_v3  ;;  %v3382_v25 = vunpack.i.l.bf16 %v3381_v3  ;;  %v5641_v33 = vunpack.i.l.bf16 %v4802_v43 }
 0x1ad   : > { %1191 = vst.msk [vmem:[#allocation2 + $0xc7] sm:$0xff] %vm1159_vm8, %v3368_v8  ;;  %1196 = vst.msk [vmem:[#allocation2 + $0xe7] sm:$0xff] %vm1159_vm8, %v3368_v8  ;;  %v3378_v36 = vunpack.i.h.bf16 %v3376_v30  ;;  %v3377_v1 = vunpack.i.l.bf16 %v3376_v30  ;;  %2620 = vmatprep.subr.msk.bf16.mxu1 %vm2154_vm1, %v2148_v45  ;;  %v5649_v22 = vunpack.i.l.bf16 %v4848_v14  ;;  %v5650_v45 = vunpack.i.h.bf16 %v4497_v6 }
 0x1ae   : > { %v2216_v42 = vsel %vm2154_vm1, %v2140_v32, 0  ;;  %1375 = vst.msk [vmem:[#allocation2 + $0x4e] sm:$0xff] %vm1362_vm10, %v3382_v25  ;;  %1376 = vst.msk [vmem:[#allocation2 + $0x56] sm:$0xff] %vm1362_vm10, %v3383_v27  ;;  %v5652_v37 = vunpack.i.h.bf16 %v4495_v5  ;;  %v5654_v6 = vunpack.i.h.bf16 %v4870_v21 }
 0x1af   : > { %1380 = vst.msk [vmem:[#allocation2 + $0x6e] sm:$0xff] %vm1362_vm10, %v3382_v25  ;;  %1381 = vst.msk [vmem:[#allocation2 + $0x76] sm:$0xff] %vm1362_vm10, %v3383_v27  ;;  %2598 = vmatpush3.bf16.xpose.msra.mxu1 %v2216_v42  ;;  %v5643_v25 = vunpack.i.h.bf16 %v4804_v41  ;;  %v3391_v8 = vpop.permute.xlu1 %3390  ;;  %v5648_v41 = vunpack.i.h.bf16 %v4826_v19  ;;  %v5653_v27 = vunpack.i.l.bf16 %v4870_v21  ;;  %v5655_v42 = vunpack.i.l.bf16 %v4868_v44 }
 0x1b0   : > { %1373 = vst.msk [vmem:[#allocation2 + $0x3e] sm:$0xfc] %vm1360_vm11, %v3377_v1  ;;  %1378 = vst.msk [vmem:[#allocation2 + $0x5e] sm:$0xfc] %vm1360_vm11, %v3377_v1  ;;  %v5645_v1 = vunpack.i.l.bf16 %v4455_v11  ;;  %v3386_v38 = vpop.permute.xlu0 %3385  ;;  %v3393_v3 = vunpack.i.h.bf16 %v3391_v8  ;;  %v3392_v19 = vunpack.i.l.bf16 %v3391_v8  ;;  %v5661_v21 = vunpack.i.l.bf16 %v4828_v61 }
 0x1b1   : > { %1374 = vst.msk [vmem:[#allocation2 + $0x46] sm:$0xff] %vm1362_vm10, %v3378_v36  ;;  %1379 = vst.msk [vmem:[#allocation2 + $0x66] sm:$0xff] %vm1362_vm10, %v3378_v36  ;;  %v5646_v36 = vunpack.i.h.bf16 %v4455_v11  ;;  %v5651_v11 = vunpack.i.l.bf16 %v4495_v5  ;;  %v3388_v30 = vunpack.i.h.bf16 %v3386_v38  ;;  %v3387_v32 = vunpack.i.l.bf16 %v3386_v38 }
 0x1b2   : > { %1566 = vst.msk [vmem:[#allocation2 + $0x50] sm:$0xff] %vm1555_vm12, %v5641_v33  ;;  %1564 = vst.msk [vmem:[#allocation2 + $0x40] sm:$0xff] %vm1555_vm12, %v5642_v49  ;;  %v5656_v5 = vunpack.i.h.bf16 %v4539_v47  ;;  %v5657_v33 = vunpack.i.l.bf16 %v4555_v51  ;;  %v5658_v49 = vunpack.i.h.bf16 %v4555_v51  ;;  %v5659_v47 = vunpack.i.h.bf16 %v4828_v61 }
 0x1b3   : > { %1565 = vst.msk [vmem:[#allocation2 + $0x48] sm:$0xff] %vm1555_vm12, %v5643_v25  ;;  %1568 = vst.msk [vmem:[#allocation2 + $0x60] sm:$0xff] %vm1555_vm12, %v5644_v52  ;;  %v5660_v51 = vunpack.i.h.bf16 %v4802_v43  ;;  %v5662_v25 = vunpack.i.l.bf16 %v4553_v31  ;;  %v5663_v52 = vunpack.i.h.bf16 %v4553_v31  ;;  %v5665_v8 = vunpack.i.h.bf16 %v4848_v14 }
 0x1b4   : > { %1569 = vst.msk [vmem:[#allocation2 + $0x68] sm:$0xff] %vm1555_vm12, %v5645_v1  ;;  %1570 = vst.msk [vmem:[#allocation2 + $0x70] sm:$0xff] %vm1555_vm12, %v5646_v36  ;;  %v5664_v1 = vunpack.i.l.bf16 %v4579_v9  ;;  %v3401_v36 = vpop.permute.xlu1 %3400  ;;  %v3396_v43 = vpop.permute.xlu0 %3395  ;;  %v5666_v61 = vunpack.i.l.bf16 %v4846_v35  ;;  %v5667_v38 = vunpack.i.h.bf16 %v4846_v35  ;;  %v5668_v31 = vunpack.i.l.bf16 %v4603_v48 }
 0x1b5   : > { %1769 = vst.msk [vmem:[#allocation2 + $0x3f] sm:$0xfe] %vm1756_vm13, %v5647_v23  ;;  %1774 = vst.msk [vmem:[#allocation2 + $0x5f] sm:$0xfe] %vm1756_vm13, %v5650_v45  ;;  %v5669_v23 = vunpack.i.h.bf16 %v4603_v48  ;;  %v3402_v14 = vunpack.i.l.bf16 %v3401_v36  ;;  %v3398_v45 = vunpack.i.h.bf16 %v3396_v43  ;;  %v5671_v35 = vunpack.i.h.bf16 %v4868_v44 }
 0x1b6   : > { %1770 = vst.msk [vmem:[#allocation2 + $0x47] sm:$0xff] %vm1758_vm14, %v5648_v41  ;;  %1771 = vst.msk [vmem:[#allocation2 + $0x4f] sm:$0xff] %vm1758_vm14, %v5649_v22  ;;  %v3403_v41 = vunpack.i.h.bf16 %v3401_v36  ;;  %v5670_v22 = vunpack.i.l.bf16 %v4601_v10  ;;  %v5673_v48 = vunpack.i.h.bf16 %v4890_v24  ;;  %v5676_v44 = vunpack.i.l.bf16 %v4653_v50 }
 0x1b7   : > { %1775 = vst.msk [vmem:[#allocation2 + $0x67] sm:$0xff] %vm1758_vm14, %v5651_v11  ;;  %1776 = vst.msk [vmem:[#allocation2 + $0x6f] sm:$0xff] %vm1758_vm14, %v5652_v37  ;;  %v3397_v11 = vunpack.i.l.bf16 %v3396_v43  ;;  %v5672_v37 = vunpack.i.l.bf16 %v4890_v24 }
 0x1b8   : > { %1987 = vst.msk [vmem:[#allocation2 + $0x3e] sm:$0xfc] %vm1974_vm15, %v5653_v27  ;;  %1992 = vst.msk [vmem:[#allocation2 + $0x5e] sm:$0xfc] %vm1974_vm15, %v5656_v5  ;;  %v3406_v24 = vpop.permute.xlu0 %3405 }
 0x1b9   : > { %1988 = vst.msk [vmem:[#allocation2 + $0x46] sm:$0xff] %vm1976_vm0, %v5654_v6  ;;  %1989 = vst.msk [vmem:[#allocation2 + $0x4e] sm:$0xff] %vm1976_vm0, %v5655_v42  ;;  %v3408_v27 = vunpack.i.h.bf16 %v3406_v24  ;;  %v3407_v6 = vunpack.i.l.bf16 %v3406_v24  ;;  %v5692_v24 = vunpack.i.l.bf16 %v4651_v34 }
 0x1ba   : > { %1993 = vst.msk [vmem:[#allocation2 + $0x66] sm:$0xff] %vm1976_vm0, %v5657_v33  ;;  %1994 = vst.msk [vmem:[#allocation2 + $0x6e] sm:$0xff] %vm1976_vm0, %v5658_v49 }
 0x1bb   : > { %1395 = vst.msk [vmem:[#allocation2 + $0xce] sm:$0xff] %vm1362_vm10, %v3392_v19  ;;  %1396 = vst.msk [vmem:[#allocation2 + $0xd6] sm:$0xff] %vm1362_vm10, %v3393_v3 }
 0x1bc   : > { %1400 = vst.msk [vmem:[#allocation2 + $0xee] sm:$0xff] %vm1362_vm10, %v3392_v19  ;;  %1401 = vst.msk [vmem:[#allocation2 + $0xf6] sm:$0xff] %vm1362_vm10, %v3393_v3  ;;  %v5674_v3 = vunpack.i.l.bf16 %v4625_v53  ;;  %v5675_v19 = vunpack.i.h.bf16 %v4625_v53  ;;  %v3411_v53 = vpop.permute.xlu1 %3410  ;;  %v3416_v49 = vpop.permute.xlu0 %3415 }
 0x1bd   : > { %1393 = vst.msk [vmem:[#allocation2 + $0xbe] sm:$0xfc] %vm1360_vm11, %v3387_v32  ;;  %1398 = vst.msk [vmem:[#allocation2 + $0xde] sm:$0xfc] %vm1360_vm11, %v3387_v32  ;;  %v3412_v32 = vunpack.i.l.bf16 %v3411_v53 }
 0x1be   : > { %1394 = vst.msk [vmem:[#allocation2 + $0xc6] sm:$0xff] %vm1362_vm10, %v3388_v30  ;;  %1399 = vst.msk [vmem:[#allocation2 + $0xe6] sm:$0xff] %vm1362_vm10, %v3388_v30  ;;  %v3413_v30 = vunpack.i.h.bf16 %v3411_v53  ;;  %v5691_v53 = vunpack.i.h.bf16 %v4653_v50  ;;  %v5696_v50 = vunpack.i.l.bf16 %v4908_v13 }
 0x1bf   : > { %1582 = vst.msk [vmem:[#allocation2 + $0xd0] sm:$0xff] %vm1555_vm12, %v5659_v47  ;;  %1580 = vst.msk [vmem:[#allocation2 + $0xc0] sm:$0xff] %vm1555_vm12, %v5660_v51 }
 0x1c0   : > { %1581 = vst.msk [vmem:[#allocation2 + $0xc8] sm:$0xff] %vm1555_vm12, %v5661_v21  ;;  %1584 = vst.msk [vmem:[#allocation2 + $0xe0] sm:$0xff] %vm1555_vm12, %v5662_v25  ;;  %v2065_v42 = vld [vmem:[#allocation2 + $0x40] sm:$0xff]  ;;  %v2066_v5 = vld [vmem:[#allocation2 + $0x48] sm:$0xff]  ;;  %v3421_v33 = vpop.permute.xlu1 %3420  ;;  %v3418_v25 = vunpack.i.h.bf16 %v3416_v49 }
 0x1c1   : > { %1585 = vst.msk [vmem:[#allocation2 + $0xe8] sm:$0xff] %vm1555_vm12, %v5663_v52  ;;  %1586 = vst.msk [vmem:[#allocation2 + $0xf0] sm:$0xff] %vm1555_vm12, %v5664_v1  ;;  %v2125_v47 = vpack.c.bf16 %v2066_v5, %v2065_v42  ;;  %v3423_v51 = vunpack.i.h.bf16 %v3421_v33  ;;  %v3422_v21 = vunpack.i.l.bf16 %v3421_v33  ;;  %v3417_v52 = vunpack.i.l.bf16 %v3416_v49 }
 0x1c2   : > { %1789 = vst.msk [vmem:[#allocation2 + $0xbf] sm:$0xfe] %vm1756_vm13, %v5665_v8  ;;  %1794 = vst.msk [vmem:[#allocation2 + $0xdf] sm:$0xfe] %vm1756_vm13, %v5668_v31  ;;  %v5677_v8 = vunpack.i.l.bf16 %v4888_v60  ;;  %v5680_v31 = vunpack.i.l.bf16 %v4577_v12  ;;  %v5699_v42 = vunpack.i.l.bf16 %v4950_v18 }
 0x1c3   : > { %1790 = vst.msk [vmem:[#allocation2 + $0xc7] sm:$0xff] %vm1758_vm14, %v5666_v61  ;;  %1791 = vst.msk [vmem:[#allocation2 + $0xcf] sm:$0xff] %vm1758_vm14, %v5667_v38  ;;  %v5678_v61 = vunpack.i.h.bf16 %v4888_v60  ;;  %v5679_v38 = vunpack.i.h.bf16 %v4579_v9  ;;  %v3426_v60 = vpop.permute.xlu0 %3425  ;;  %v2171_v9 = vsel %vm2154_vm1, %v2125_v47, 0  ;;  %v5701_v47 = vunpack.i.h.bf16 %v4972_v57 }
 0x1c4   : > { %1795 = vst.msk [vmem:[#allocation2 + $0xe7] sm:$0xff] %vm1758_vm14, %v5669_v23  ;;  %1796 = vst.msk [vmem:[#allocation2 + $0xef] sm:$0xff] %vm1758_vm14, %v5670_v22  ;;  %v5681_v23 = vunpack.i.l.bf16 %v4910_v16  ;;  %v5683_v22 = vunpack.i.l.bf16 %v4930_v26 }
 0x1c5   : > { %2007 = vst.msk [vmem:[#allocation2 + $0xbe] sm:$0xfc] %vm1974_vm15, %v5671_v35  ;;  %2012 = vst.msk [vmem:[#allocation2 + $0xde] sm:$0xfc] %vm1974_vm15, %v5674_v3  ;;  %v5688_v3 = vunpack.i.h.bf16 %v4627_v2 }
 0x1c6   : > { %2008 = vst.msk [vmem:[#allocation2 + $0xc6] sm:$0xff] %vm1976_vm0, %v5672_v37  ;;  %2009 = vst.msk [vmem:[#allocation2 + $0xce] sm:$0xff] %vm1976_vm0, %v5673_v48  ;;  %v5687_v48 = vunpack.i.l.bf16 %v4928_v17 }
 0x1c7   : > { %2013 = vst.msk [vmem:[#allocation2 + $0xe6] sm:$0xff] %vm1976_vm0, %v5675_v19  ;;  %2014 = vst.msk [vmem:[#allocation2 + $0xee] sm:$0xff] %vm1976_vm0, %v5676_v44  ;;  %v3427_v19 = vunpack.i.l.bf16 %v3426_v60  ;;  %v5690_v44 = vunpack.i.h.bf16 %v4948_v59 }
 0x1c8   : > { %1212 = vst.msk [vmem:[#allocation2 + $0x14f] sm:$0xff] %vm1159_vm8, %v3402_v14  ;;  %1217 = vst.msk [vmem:[#allocation2 + $0x16f] sm:$0xff] %vm1159_vm8, %v3402_v14  ;;  %v3431_v14 = vpop.permute.xlu1 %3430 }
 0x1c9   : > { %1213 = vst.msk [vmem:[#allocation2 + $0x157] sm:$0xff] %vm1159_vm8, %v3403_v41  ;;  %1218 = vst.msk [vmem:[#allocation2 + $0x177] sm:$0xff] %vm1159_vm8, %v3403_v41  ;;  %v5682_v41 = vunpack.i.h.bf16 %v4577_v12  ;;  %v5686_v12 = vunpack.i.l.bf16 %v4627_v2  ;;  %v3433_v35 = vunpack.i.h.bf16 %v3431_v14  ;;  %v3432_v37 = vunpack.i.l.bf16 %v3431_v14 }
 0x1ca   : > { %1210 = vst.msk [vmem:[#allocation2 + $0x13f] sm:$0xfe] %vm1157_vm9, %v3397_v11  ;;  %1215 = vst.msk [vmem:[#allocation2 + $0x15f] sm:$0xfe] %vm1157_vm9, %v3397_v11  ;;  %v5685_v11 = vunpack.i.h.bf16 %v4601_v10  ;;  %v5689_v10 = vunpack.i.l.bf16 %v4948_v59  ;;  %v5693_v2 = vunpack.i.l.bf16 %v4972_v57  ;;  %v5697_v59 = vunpack.i.h.bf16 %v4908_v13 }
 0x1cb   : > { %1211 = vst.msk [vmem:[#allocation2 + $0x147] sm:$0xff] %vm1159_vm8, %v3398_v45  ;;  %1216 = vst.msk [vmem:[#allocation2 + $0x167] sm:$0xff] %vm1159_vm8, %v3398_v45  ;;  %v5684_v45 = vunpack.i.h.bf16 %v4930_v26  ;;  %v3428_v26 = vunpack.i.h.bf16 %v3426_v60  ;;  %v5704_v57 = vunpack.i.l.bf16 %v4992_v56  ;;  %v5713_v14 = vunpack.i.h.bf16 %v5012_v4 }
 0x1cc   : > { %1232 = vst.msk [vmem:[#allocation2 + $0x1cf] sm:$0xff] %vm1159_vm8, %v3412_v32  ;;  %1237 = vst.msk [vmem:[#allocation2 + $0x1ef] sm:$0xff] %vm1159_vm8, %v3412_v32  ;;  %v3436_v32 = vpop.permute.xlu0 %3435  ;;  %v5715_v60 = vunpack.i.h.bf16 %v4758_v40 }
 0x1cd   : > { %1233 = vst.msk [vmem:[#allocation2 + $0x1d7] sm:$0xff] %vm1159_vm8, %v3413_v30  ;;  %1238 = vst.msk [vmem:[#allocation2 + $0x1f7] sm:$0xff] %vm1159_vm8, %v3413_v30  ;;  %v2081_v1 = vld [vmem:[#allocation2 + $0xc0] sm:$0xff]  ;;  %v2082_v36 = vld [vmem:[#allocation2 + $0xc8] sm:$0xff]  ;;  %v5694_v30 = vunpack.i.h.bf16 %v4651_v34  ;;  %v5695_v34 = vunpack.i.h.bf16 %v4910_v16  ;;  %v5700_v16 = vunpack.i.h.bf16 %v4950_v18  ;;  %v3438_v5 = vunpack.i.h.bf16 %v3436_v32 }
 0x1ce   : > { %1230 = vst.msk [vmem:[#allocation2 + $0x1bf] sm:$0xfe] %vm1157_vm9, %v3407_v6  ;;  %1235 = vst.msk [vmem:[#allocation2 + $0x1df] sm:$0xfe] %vm1157_vm9, %v3407_v6  ;;  %v2133_v43 = vpack.c.bf16 %v2082_v36, %v2081_v1  ;;  %v5698_v6 = vunpack.i.h.bf16 %v4928_v17  ;;  %v3437_v33 = vunpack.i.l.bf16 %v3436_v32  ;;  %v5702_v17 = vunpack.i.l.bf16 %v4970_v39 }
 0x1cf   : > { %1231 = vst.msk [vmem:[#allocation2 + $0x1c7] sm:$0xff] %vm1159_vm8, %v3408_v27  ;;  %1236 = vst.msk [vmem:[#allocation2 + $0x1e7] sm:$0xff] %vm1159_vm8, %v3408_v27  ;;  %v3441_v27 = vpop.permute.xlu1 %3440 }
 0x1d0   : > { %1415 = vst.msk [vmem:[#allocation2 + $0x14e] sm:$0xff] %vm1362_vm10, %v3422_v21  ;;  %1420 = vst.msk [vmem:[#allocation2 + $0x16e] sm:$0xff] %vm1362_vm10, %v3422_v21  ;;  %2613 = vmatprep.subr.msk.bf16.mxu0 %vm2154_vm1, %v2133_v43  ;;  %v3443_v49 = vunpack.i.h.bf16 %v3441_v27  ;;  %v3442_v13 = vunpack.i.l.bf16 %v3441_v27  ;;  %v3446_v18 = vpop.permute.xlu0 %3445  ;;  %v5705_v21 = vunpack.i.h.bf16 %v4694_v63  ;;  %v5709_v63 = vunpack.i.h.bf16 %v4990_v46 }
 0x1d1   : > { %1416 = vst.msk [vmem:[#allocation2 + $0x156] sm:$0xff] %vm1362_vm10, %v3423_v51  ;;  %1421 = vst.msk [vmem:[#allocation2 + $0x176] sm:$0xff] %vm1362_vm10, %v3423_v51  ;;  %2582 = vmatpush3.bf16.xpose.msra.mxu0 %v2171_v9  ;;  %v5703_v51 = vunpack.i.h.bf16 %v4970_v39  ;;  %v3448_v1 = vunpack.i.h.bf16 %v3446_v18  ;;  %v3447_v36 = vunpack.i.l.bf16 %v3446_v18  ;;  %v5717_v9 = vunpack.i.h.bf16 %v5010_v55  ;;  %v2085_v18 = vld [vmem:[#allocation2 + $0xe0] sm:$0xff] }
 0x1d2   : > { %1413 = vst.msk [vmem:[#allocation2 + $0x13e] sm:$0xfc] %vm1360_vm11, %v3417_v52  ;;  %1418 = vst.msk [vmem:[#allocation2 + $0x15e] sm:$0xfc] %vm1360_vm11, %v3417_v52  ;;  %v5707_v52 = vunpack.i.l.bf16 %v4734_v28 }
 0x1d3   : > { %1414 = vst.msk [vmem:[#allocation2 + $0x146] sm:$0xff] %vm1362_vm10, %v3418_v25  ;;  %1419 = vst.msk [vmem:[#allocation2 + $0x166] sm:$0xff] %vm1362_vm10, %v3418_v25  ;;  %v3451_v39 = vpop.permute.xlu1 %3450  ;;  %v5706_v25 = vunpack.i.h.bf16 %v4992_v56  ;;  %v5710_v56 = vunpack.i.l.bf16 %v4708_v29 }
 0x1d4   : > { %1596 = vst.msk [vmem:[#allocation2 + $0x140] sm:$0xff] %vm1555_vm12, %v5677_v8  ;;  %1597 = vst.msk [vmem:[#allocation2 + $0x148] sm:$0xff] %vm1555_vm12, %v5678_v61  ;;  %v3453_v43 = vunpack.i.h.bf16 %v3451_v39  ;;  %v3452_v8 = vunpack.i.l.bf16 %v3451_v39  ;;  %v2086_v39 = vld [vmem:[#allocation2 + $0xe8] sm:$0xff] }
 0x1d5   : > { %1600 = vst.msk [vmem:[#allocation2 + $0x160] sm:$0xff] %vm1555_vm12, %v5679_v38  ;;  %1601 = vst.msk [vmem:[#allocation2 + $0x168] sm:$0xff] %vm1555_vm12, %v5680_v31  ;;  %v5708_v31 = vunpack.i.l.bf16 %v4990_v46  ;;  %v5714_v46 = vunpack.i.l.bf16 %v4758_v40  ;;  %v5720_v40 = vunpack.i.l.bf16 %v5032_v58 }
 0x1d6   : > { %1598 = vst.msk [vmem:[#allocation2 + $0x150] sm:$0xff] %vm1555_vm12, %v5681_v23  ;;  %1602 = vst.msk [vmem:[#allocation2 + $0x170] sm:$0xff] %vm1555_vm12, %v5682_v41  ;;  %v5711_v23 = vunpack.i.h.bf16 %v4708_v29  ;;  %v5712_v41 = vunpack.i.l.bf16 %v5012_v4  ;;  %v5716_v29 = vunpack.i.l.bf16 %v5010_v55  ;;  %v5718_v4 = vunpack.i.l.bf16 %v4736_v54 }
 0x1d7   : > { %1809 = vst.msk [vmem:[#allocation2 + $0x13f] sm:$0xfe] %vm1756_vm13, %v5683_v22  ;;  %1814 = vst.msk [vmem:[#allocation2 + $0x15f] sm:$0xfe] %vm1756_vm13, %v5685_v11  ;;  %v5719_v22 = vunpack.i.h.bf16 %v4736_v54  ;;  %v5722_v55 = vunpack.i.l.bf16 %v4780_v15  ;;  %v5723_v11 = vunpack.i.h.bf16 %v4780_v15  ;;  %v3456_v54 = vpop.permute.xlu0 %3455  ;;  %v1516_v15 = vpop.permute.xlu1 %1515 }
 0x1d8   : > { %1810 = vst.msk [vmem:[#allocation2 + $0x147] sm:$0xff] %vm1758_vm14, %v5684_v45  ;;  %1815 = vst.msk [vmem:[#allocation2 + $0x167] sm:$0xff] %vm1758_vm14, %v5686_v12  ;;  %v5721_v45 = vunpack.i.h.bf16 %v5032_v58  ;;  %v5724_v12 = vunpack.i.l.bf16 %v5030_v0 }
 0x1d9   : > { %1811 = vst.msk [vmem:[#allocation2 + $0x14f] sm:$0xff] %vm1758_vm14, %v5687_v48  ;;  %1816 = vst.msk [vmem:[#allocation2 + $0x16f] sm:$0xff] %vm1758_vm14, %v5688_v3  ;;  %v3458_v48 = vunpack.i.h.bf16 %v3456_v54  ;;  %v3457_v3 = vunpack.i.l.bf16 %v3456_v54 }
 0x1da   : > { %2027 = vst.msk [vmem:[#allocation2 + $0x13e] sm:$0xfc] %vm1974_vm15, %v5689_v10  ;;  %2032 = vst.msk [vmem:[#allocation2 + $0x15e] sm:$0xfc] %vm1974_vm15, %v5691_v53  ;;  %v5727_v10 = vunpack.i.l.bf16 %v5054_v7  ;;  %v5731_v53 = vunpack.i.l.bf16 %v5052_v62 }
 0x1db   : > { %2028 = vst.msk [vmem:[#allocation2 + $0x146] sm:$0xff] %vm1976_vm0, %v5690_v44  ;;  %2033 = vst.msk [vmem:[#allocation2 + $0x166] sm:$0xff] %vm1976_vm0, %v5692_v24  ;;  %v5728_v44 = vunpack.i.h.bf16 %v5054_v7  ;;  %v5732_v24 = vunpack.i.h.bf16 %v5052_v62  ;;  %v5733_v7 = vld [vmem:[#allocation5_spill] sm:$0xff]  ;;  %v5739_v62 = vld [vmem:[#allocation4_spill] sm:$0xff] }
 0x1dc   : > { %2029 = vst.msk [vmem:[#allocation2 + $0x14e] sm:$0xff] %vm1976_vm0, %v5693_v2  ;;  %2034 = vst.msk [vmem:[#allocation2 + $0x16e] sm:$0xff] %vm1976_vm0, %v5694_v30  ;;  %v5734_v30 = vunpack.i.l.bf16 %v5733_v7  ;;  %v5740_v32 = vunpack.i.l.bf16 %v5739_v62  ;;  %v5741_v27 = vunpack.i.h.bf16 %v5739_v62 }
 0x1dd   : > { %1435 = vst.msk [vmem:[#allocation2 + $0x1ce] sm:$0xff] %vm1362_vm10, %v3432_v37  ;;  %1436 = vst.msk [vmem:[#allocation2 + $0x1d6] sm:$0xff] %vm1362_vm10, %v3433_v35 }
 0x1de   : > { %1440 = vst.msk [vmem:[#allocation2 + $0x1ee] sm:$0xff] %vm1362_vm10, %v3432_v37  ;;  %1441 = vst.msk [vmem:[#allocation2 + $0x1f6] sm:$0xff] %vm1362_vm10, %v3433_v35  ;;  %v5725_v35 = vunpack.i.h.bf16 %v4734_v28  ;;  %v5726_v37 = vunpack.i.h.bf16 %v5030_v0  ;;  %v5729_v28 = vunpack.i.l.bf16 %v4756_v20  ;;  %v5730_v0 = vunpack.i.h.bf16 %v4756_v20  ;;  %v5736_v20 = vld [vmem:[#allocation3_spill] sm:$0xff] }
 0x1df   : > { %1433 = vst.msk [vmem:[#allocation2 + $0x1be] sm:$0xfc] %vm1360_vm11, %v3427_v19  ;;  %1438 = vst.msk [vmem:[#allocation2 + $0x1de] sm:$0xfc] %vm1360_vm11, %v3427_v19 }
 0x1e0   : > { %1434 = vst.msk [vmem:[#allocation2 + $0x1c6] sm:$0xff] %vm1362_vm10, %v3428_v26  ;;  %1439 = vst.msk [vmem:[#allocation2 + $0x1e6] sm:$0xff] %vm1362_vm10, %v3428_v26 }
 0x1e1   : > { %1612 = vst.msk [vmem:[#allocation2 + $0x1c0] sm:$0xff] %vm1555_vm12, %v5695_v34  ;;  %1613 = vst.msk [vmem:[#allocation2 + $0x1c8] sm:$0xff] %vm1555_vm12, %v5696_v50  ;;  %v5735_v34 = vunpack.i.h.bf16 %v5733_v7  ;;  %v5737_v50 = vunpack.i.l.bf16 %v5736_v20 }
 0x1e2   : > { %1614 = vst.msk [vmem:[#allocation2 + $0x1d0] sm:$0xff] %vm1555_vm12, %v5697_v59  ;;  %v2097_v61 = vld [vmem:[#allocation2 + $0x140] sm:$0xff]  ;;  %1618 = vst.msk [vmem:[#allocation2 + $0x1f0] sm:$0xff] %vm1555_vm12, %v1516_v15  ;;  %v5738_v59 = vunpack.i.h.bf16 %v5736_v20 }
 0x1e3   : > { %1829 = vst.msk [vmem:[#allocation2 + $0x1bf] sm:$0xfe] %vm1756_vm13, %v5698_v6  ;;  %v2098_v38 = vld [vmem:[#allocation2 + $0x148] sm:$0xff]  ;;  %v3461_v6 = vpop.permute.xlu0 %3460  ;;  %v3479_v20 = vld [vmem:[%s5531_s1] sm:$0xf] }
 0x1e4   : > { %1830 = vst.msk [vmem:[#allocation2 + $0x1c7] sm:$0xff] %vm1758_vm14, %v5699_v42  ;;  %1831 = vst.msk [vmem:[#allocation2 + $0x1cf] sm:$0xff] %vm1758_vm14, %v5700_v16  ;;  %v2141_v58 = vpack.c.bf16 %v2098_v38, %v2097_v61  ;;  %v1706_v16 = vpop.permute.xlu1 %1705 }
 0x1e5   : > { %2047 = vst.msk [vmem:[#allocation2 + $0x1be] sm:$0xfc] %vm1974_vm15, %v5701_v47 }
 0x1e6   : > { %2048 = vst.msk [vmem:[#allocation2 + $0x1c6] sm:$0xff] %vm1976_vm0, %v5702_v17  ;;  %2049 = vst.msk [vmem:[#allocation2 + $0x1ce] sm:$0xff] %vm1976_vm0, %v5703_v51  ;;  %v2219_v42 = vsel %vm2154_vm1, %v2141_v58, 0 }
 0x1e7   : > { %1174 = vst.msk [vmem:[#allocation2 + $0x5f] sm:$0x1] %vm1163_vm2, %v3437_v33  ;;  %1179 = vst.msk [vmem:[#allocation2 + $0x7f] sm:$0x1] %vm1163_vm2, %v3437_v33  ;;  %v3462_v33 = vunpack.i.l.bf16 %v3461_v6 }
 0x1e8   : > { %1194 = vst.msk [vmem:[#allocation2 + $0xdf] sm:$0x1] %vm1163_vm2, %v3438_v5  ;;  %1199 = vst.msk [vmem:[#allocation2 + $0xff] sm:$0x1] %vm1163_vm2, %v3438_v5  ;;  %v3463_v5 = vunpack.i.h.bf16 %v3461_v6 }
 0x1e9   : > { %1377 = vst.msk [vmem:[#allocation2 + $0x5e] sm:$0x3] %vm1366_vm3, %v3442_v13  ;;  %1382 = vst.msk [vmem:[#allocation2 + $0x7e] sm:$0x3] %vm1366_vm3, %v3442_v13 }
 0x1ea   : > { %1397 = vst.msk [vmem:[#allocation2 + $0xde] sm:$0x3] %vm1366_vm3, %v3443_v49  ;;  %1402 = vst.msk [vmem:[#allocation2 + $0xfe] sm:$0x3] %vm1366_vm3, %v3443_v49 }
 0x1eb   : > { %1567 = vst.msk [vmem:[#allocation2 + $0x58] sm:$0xff] %vm1555_vm12, %v5704_v57  ;;  %1571 = vst.msk [vmem:[#allocation2 + $0x78] sm:$0xff] %vm1555_vm12, %v5705_v21  ;;  %v3466_v57 = vpop.permute.xlu0 %3465  ;;  %v1924_v21 = vpop.permute.xlu1 %1923 }
 0x1ec   : > { %1583 = vst.msk [vmem:[#allocation2 + $0xd8] sm:$0xff] %vm1555_vm12, %v5706_v25  ;;  %1587 = vst.msk [vmem:[#allocation2 + $0xf8] sm:$0xff] %vm1555_vm12, %v5707_v52  ;;  %v3468_v52 = vunpack.i.h.bf16 %v3466_v57 }
 0x1ed   : > { %1772 = vst.msk [vmem:[#allocation2 + $0x57] sm:$0xff] %vm1758_vm14, %v5708_v31  ;;  %1777 = vst.msk [vmem:[#allocation2 + $0x77] sm:$0xff] %vm1758_vm14, %v5710_v56  ;;  %v2113_v26 = vld [vmem:[#allocation2 + $0x1c0] sm:$0xff]  ;;  %v2114_v19 = vld [vmem:[#allocation2 + $0x1c8] sm:$0xff] }
 0x1ee   : > { %1773 = vst.msk [vmem:[#allocation2 + $0x5f] sm:$0x1] %vm1762_vm4, %v5709_v63  ;;  %1778 = vst.msk [vmem:[#allocation2 + $0x7f] sm:$0x1] %vm1762_vm4, %v5711_v23  ;;  %v2149_v2 = vpack.c.bf16 %v2114_v19, %v2113_v26  ;;  %v2069_v56 = vld [vmem:[#allocation2 + $0x60] sm:$0xff]  ;;  %v2070_v23 = vld [vmem:[#allocation2 + $0x68] sm:$0xff] }
 0x1ef   : > { %1792 = vst.msk [vmem:[#allocation2 + $0xd7] sm:$0xff] %vm1758_vm14, %v5712_v41  ;;  %1797 = vst.msk [vmem:[#allocation2 + $0xf7] sm:$0xff] %vm1758_vm14, %v5714_v46  ;;  %v1518_v41 = vpop.permute.xlu0 %1517  ;;  %v3471_v46 = vpop.permute.xlu1 %3470 }
 0x1f0   : > { %1793 = vst.msk [vmem:[#allocation2 + $0xdf] sm:$0x1] %vm1762_vm4, %v5713_v14  ;;  %1798 = vst.msk [vmem:[#allocation2 + $0xff] sm:$0x1] %vm1762_vm4, %v5715_v60  ;;  %2621 = vmatprep.subr.msk.bf16.mxu1 %vm2154_vm1, %v2149_v2  ;;  %v3473_v60 = vunpack.i.h.bf16 %v3471_v46 }
 0x1f1   : > { %1990 = vst.msk [vmem:[#allocation2 + $0x56] sm:$0xff] %vm1976_vm0, %v5716_v29  ;;  %1995 = vst.msk [vmem:[#allocation2 + $0x76] sm:$0xff] %vm1976_vm0, %v5718_v4  ;;  %2600 = vmatpush3.bf16.xpose.msra.mxu1 %v2219_v42  ;;  %v3472_v29 = vunpack.i.l.bf16 %v3471_v46  ;;  %v2127_v4 = vpack.c.bf16 %v2070_v23, %v2069_v56 }
 0x1f2   : > { %1991 = vst.msk [vmem:[#allocation2 + $0x5e] sm:$0x3] %vm1980_vm5, %v5717_v9  ;;  %1996 = vst.msk [vmem:[#allocation2 + $0x7e] sm:$0x3] %vm1980_vm5, %v5719_v22  ;;  %v2101_v22 = vld [vmem:[#allocation2 + $0x160] sm:$0xff] }
 0x1f3   : > { %2010 = vst.msk [vmem:[#allocation2 + $0xd6] sm:$0xff] %vm1976_vm0, %v5720_v40  ;;  %2015 = vst.msk [vmem:[#allocation2 + $0xf6] sm:$0xff] %vm1976_vm0, %v5722_v55  ;;  %v2102_v55 = vld [vmem:[#allocation2 + $0x168] sm:$0xff]  ;;  %v2177_v58 = vsel %vm2154_vm1, %v2127_v4, 0 }
 0x1f4   : > { %2011 = vst.msk [vmem:[#allocation2 + $0xde] sm:$0x3] %vm1980_vm5, %v5721_v45  ;;  %2016 = vst.msk [vmem:[#allocation2 + $0xfe] sm:$0x3] %vm1980_vm5, %v5723_v11  ;;  %v3476_v11 = vpop.permute.xlu0 %3475 }
 0x1f5   : > { %1214 = vst.msk [vmem:[#allocation2 + $0x15f] sm:$0x1] %vm1163_vm2, %v3447_v36  ;;  %1219 = vst.msk [vmem:[#allocation2 + $0x17f] sm:$0x1] %vm1163_vm2, %v3447_v36  ;;  %v3478_v54 = vunpack.i.h.bf16 %v3476_v11  ;;  %v3477_v15 = vunpack.i.l.bf16 %v3476_v11 }
 0x1f6   : > { %1234 = vst.msk [vmem:[#allocation2 + $0x1df] sm:$0x1] %vm1163_vm2, %v3448_v1  ;;  %1239 = vst.msk [vmem:[#allocation2 + $0x1ff] sm:$0x1] %vm1163_vm2, %v3448_v1  ;;  %v3467_v1 = vunpack.i.l.bf16 %v3466_v57 }
 0x1f7   : > { %1417 = vst.msk [vmem:[#allocation2 + $0x15e] sm:$0x3] %vm1366_vm3, %v3452_v8  ;;  %1422 = vst.msk [vmem:[#allocation2 + $0x17e] sm:$0x3] %vm1366_vm3, %v3452_v8 }
 0x1f8   : > { %1437 = vst.msk [vmem:[#allocation2 + $0x1de] sm:$0x3] %vm1366_vm3, %v3453_v43  ;;  %1442 = vst.msk [vmem:[#allocation2 + $0x1fe] sm:$0x3] %vm1366_vm3, %v3453_v43  ;;  %v2067_v47 = vld [vmem:[#allocation2 + $0x50] sm:$0xff]  ;;  %v2135_v43 = vpack.c.bf16 %v2086_v39, %v2085_v18 }
 0x1f9   : > { %1599 = vst.msk [vmem:[#allocation2 + $0x158] sm:$0xff] %vm1555_vm12, %v5724_v12  ;;  %1603 = vst.msk [vmem:[#allocation2 + $0x178] sm:$0xff] %vm1555_vm12, %v5725_v35  ;;  %v2068_v51 = vld [vmem:[#allocation2 + $0x58] sm:$0xff]  ;;  %v2071_v26 = vld [vmem:[#allocation2 + $0x70] sm:$0xff] }
 0x1fa   : > { %1615 = vst.msk [vmem:[#allocation2 + $0x1d8] sm:$0xff] %vm1555_vm12, %v5726_v37  ;;  %1616 = vst.msk [vmem:[#allocation2 + $0x1e0] sm:$0xff] %vm1555_vm12, %v3457_v3  ;;  %v2083_v49 = vld [vmem:[#allocation2 + $0xd0] sm:$0xff]  ;;  %v2126_v25 = vpack.c.bf16 %v2068_v51, %v2067_v47  ;;  %v2072_v19 = vld [vmem:[#allocation2 + $0x78] sm:$0xff] }
 0x1fb   : > { %1812 = vst.msk [vmem:[#allocation2 + $0x157] sm:$0xff] %vm1758_vm14, %v5727_v10  ;;  %1817 = vst.msk [vmem:[#allocation2 + $0x177] sm:$0xff] %vm1758_vm14, %v5729_v28  ;;  %v2084_v13 = vld [vmem:[#allocation2 + $0xd8] sm:$0xff]  ;;  %v2087_v40 = vld [vmem:[#allocation2 + $0xf0] sm:$0xff] }
 0x1fc   : > { %1813 = vst.msk [vmem:[#allocation2 + $0x15f] sm:$0x1] %vm1762_vm4, %v5728_v44  ;;  %1818 = vst.msk [vmem:[#allocation2 + $0x17f] sm:$0x1] %vm1762_vm4, %v5730_v0  ;;  %v2134_v17 = vpack.c.bf16 %v2084_v13, %v2083_v49  ;;  %v2174_v36 = vsel %vm2154_vm1, %v2126_v25, 0  ;;  %v2088_v45 = vld [vmem:[#allocation2 + $0xf8] sm:$0xff]  ;;  %v2128_v44 = vpack.c.bf16 %v2072_v19, %v2071_v26 }
 0x1fd   : > { %1832 = vst.msk [vmem:[#allocation2 + $0x1d7] sm:$0xff] %vm1758_vm14, %v5731_v53  ;;  %v2136_v12 = vpack.c.bf16 %v2088_v45, %v2087_v40 }
 0x1fe   : > { %1833 = vst.msk [vmem:[#allocation2 + $0x1df] sm:$0x1] %vm1762_vm4, %v5732_v24  ;;  %2614 = vmatprep.subr.msk.bf16.mxu0 %vm2154_vm1, %v2134_v17  ;;  %v2180_v53 = vsel %vm2154_vm1, %v2128_v44, 0 }
 0x1ff   : > { %2030 = vst.msk [vmem:[#allocation2 + $0x156] sm:$0xff] %vm1976_vm0, %v5734_v30  ;;  %2035 = vst.msk [vmem:[#allocation2 + $0x176] sm:$0xff] %vm1976_vm0, %v5737_v50  ;;  %2584 = vmatpush3.bf16.xpose.msra.mxu0 %v2174_v36 }
 0x200   : > { %2031 = vst.msk [vmem:[#allocation2 + $0x15e] sm:$0x3] %vm1980_vm5, %v5735_v34  ;;  %2036 = vst.msk [vmem:[#allocation2 + $0x17e] sm:$0x3] %vm1980_vm5, %v5738_v59  ;;  %2615 = vmatprep.subr.msk.bf16.mxu0 %vm2154_vm1, %v2135_v43 }
 0x201   : > { %2050 = vst.msk [vmem:[#allocation2 + $0x1d6] sm:$0xff] %vm1976_vm0, %v5740_v32 }
 0x202   : > { %2051 = vst.msk [vmem:[#allocation2 + $0x1de] sm:$0x3] %vm1980_vm5, %v5741_v27 }
 0x203   : > { %1617 = vst.msk [vmem:[#allocation2 + $0x1e8] sm:$0xff] %vm1555_vm12, %v3458_v48  ;;  %1619 = vst.msk [vmem:[#allocation2 + $0x1f8] sm:$0xff] %vm1555_vm12, %v1518_v41  ;;  %v2143_v48 = vpack.c.bf16 %v2102_v55, %v2101_v22 }
 0x204   : > { %1836 = vst.msk [vmem:[#allocation2 + $0x1ef] sm:$0xff] %vm1758_vm14, %v1706_v16  ;;  %1835 = vst.msk [vmem:[#allocation2 + $0x1e7] sm:$0xff] %vm1758_vm14, %v3463_v5 }
 0x205   : > { %1834 = vst.msk [vmem:[#allocation2 + $0x1df] sm:$0xfe] %vm1756_vm13, %v3462_v33  ;;  %v2225_v10 = vsel %vm2154_vm1, %v2143_v48, 0 }
 0x206   : > { %2054 = vst.msk [vmem:[#allocation2 + $0x1ee] sm:$0xff] %vm1976_vm0, %v1924_v21  ;;  %v2099_v38 = vld [vmem:[#allocation2 + $0x150] sm:$0xff]  ;;  %2053 = vst.msk [vmem:[#allocation2 + $0x1e6] sm:$0xff] %vm1976_vm0, %v3468_v52 }
 0x207   : > { %2052 = vst.msk [vmem:[#allocation2 + $0x1de] sm:$0xfc] %vm1974_vm15, %v3467_v1  ;;  %v2100_v63 = vld [vmem:[#allocation2 + $0x158] sm:$0xff]  ;;  %2586 = vmatpush3.bf16.xpose.msra.mxu0 %v2177_v58  ;;  %v2103_v28 = vld [vmem:[#allocation2 + $0x170] sm:$0xff] }
 0x208   : > { %v2115_v8 = vld [vmem:[#allocation2 + $0x1d0] sm:$0xff]  ;;  %v2142_v14 = vpack.c.bf16 %v2100_v63, %v2099_v38  ;;  %1837 = vst.msk [vmem:[#allocation2 + $0x1f7] sm:$0xff] %vm1758_vm14, %v3472_v29  ;;  %2616 = vmatprep.subr.msk.bf16.mxu0 %vm2154_vm1, %v2136_v12  ;;  %v2104_v0 = vld [vmem:[#allocation2 + $0x178] sm:$0xff] }
 0x209   : > { %v2116_v61 = vld [vmem:[#allocation2 + $0x1d8] sm:$0xff]  ;;  %1838 = vst.msk [vmem:[#allocation2 + $0x1ff] sm:$0x1] %vm1762_vm4, %v3473_v60  ;;  %v2144_v7 = vpack.c.bf16 %v2104_v0, %v2103_v28 }
 0x20a   : > { %v2150_v31 = vpack.c.bf16 %v2116_v61, %v2115_v8  ;;  %v2222_v9 = vsel %vm2154_vm1, %v2142_v14, 0  ;;  %2055 = vst.msk [vmem:[#allocation2 + $0x1f6] sm:$0xff] %vm1976_vm0, %v3477_v15 }
 0x20b   : > { %2056 = vst.msk [vmem:[#allocation2 + $0x1fe] sm:$0x3] %vm1980_vm5, %v3478_v54  ;;  %v2228_v34 = vsel %vm2154_vm1, %v2144_v7, 0 }
 0x20c   : > { %2622 = vmatprep.subr.msk.bf16.mxu1 %vm2154_vm1, %v2150_v31 }
 0x20d   : > { %2602 = vmatpush3.bf16.xpose.msra.mxu1 %v2222_v9  ;;  %v2118_v37 = vld [vmem:[#allocation2 + $0x1e8] sm:$0xff] }
 0x20e   : > { %v2117_v35 = vld [vmem:[#allocation2 + $0x1e0] sm:$0xff] }
 0x20f   : > { %v2151_v3 = vpack.c.bf16 %v2118_v37, %v2117_v35  ;;  %2588 = vmatpush3.bf16.xpose.msra.mxu0 %v2180_v53 }
 0x211   : > { %2623 = vmatprep.subr.msk.bf16.mxu1 %vm2154_vm1, %v2151_v3  ;;  %v2119_v24 = vld [vmem:[#allocation2 + $0x1f0] sm:$0xff] }
 0x212   : > { %v2120_v2 = vld [vmem:[#allocation2 + $0x1f8] sm:$0xff] }
 0x213   : > { %v2152_v30 = vpack.c.bf16 %v2120_v2, %v2119_v24 }
 0x215   : > { %2604 = vmatpush3.bf16.xpose.msra.mxu1 %v2225_v10 }
 0x216   : > { %2624 = vmatprep.subr.msk.bf16.mxu1 %vm2154_vm1, %v2152_v30  ;;  %2590 = vmatmul.mubr.msk.bf16.vlgmr.msra.gmra.mrb[0].mxu0 %vm2154_vm1, %v3479_v20 }
 0x21d   : > { %2606 = vmatpush3.bf16.xpose.msra.mxu1 %v2228_v34 }
 0x224   : > { %2608 = vmatmul.mubr.msk.bf16.vlgmr.msra.gmra.mrb[0].mxu1 %vm2154_vm1, %v3479_v20 }
 0x2e9   : > { %v2288_v50 = vpop.f32.mrb[0].mxu0 }
 0x2ea   : > { %v2343_v59 = vmul.f32 %v2288_v50, %v2288_v50  ;;  %2354 = vst [vmem:[%s219_s24] sm:$0xff] %v2288_v50  ;;  %v2290_v62 = vpop.f32.mrb[1].mxu0 }
 0x2eb   : > { %v2336_v32 = vadd.f32 %v2290_v62, %v2288_v50  ;;  %v2344_v27 = vmul.f32 %v2290_v62, %v2290_v62  ;;  %2355 = vst [vmem:[%s219_s24 + $0x8] sm:$0xff] %v2290_v62  ;;  %v2292_v6 = vpop.f32.mrb[2].mxu0 }
 0x2ec   : > { %v2293_v42 = vpop.f32.mrb[3].mxu0 }
 0x2ed   : > { %v2347_v16 = vadd.f32 %v2344_v27, %v2343_v59 }
 0x2f7   : > { %v2329_v5 = vpop.f32.mrb[0].mxu1 }
 0x2f8   : > { %v2337_v33 = vadd.f32 %v2336_v32, %v2329_v5  ;;  %v2345_v49 = vmul.f32 %v2329_v5, %v2329_v5  ;;  %2356 = vst [vmem:[%s219_s24 + $0x10] sm:$0xff] %v2329_v5  ;;  %v2331_v13 = vpop.f32.mrb[1].mxu1 }
 0x2f9   : > { %v2346_v47 = vmul.f32 %v2331_v13, %v2331_v13  ;;  %2357 = vst [vmem:[%s219_s24 + $0x18] sm:$0xff] %v2331_v13  ;;  %v2333_v17 = vpop.f32.mrb[2].mxu1 }
 0x2fa   : > { %v2348_v51 = vadd.f32 %v2347_v16, %v2345_v49  ;;  %v2338_v18 = vadd.f32 %v2337_v33, %v2331_v13  ;;  %v2334_v39 = vpop.f32.mrb[3].mxu1 }
 0x2fc   : > { %2339 = vadd.xlane.f32.xlu1 %v2338_v18  ;;  %v2349_v57 = vadd.f32 %v2348_v51, %v2346_v47 }
 0x2fe   : > { %2350 = vadd.xlane.f32.xlu0 %v2349_v57 }
 0x389   : > { %v2340_v21 = vpop.xlane.xlu1 %2339 }
 0x38a   : > { %2342 = vst.msk [vmem:[%s226_s26] sm:$0xff] %vm2341_vm6, %v2340_v21 }
 0x38b   : > { %v2351_v25 = vpop.xlane.xlu0 %2350 }
 0x38c   : > { %2353 = vst.msk [vmem:[%s226_s26] sm:$0xff] %vm2352_vm7, %v2351_v25 }
 0x38d PF: > { %s14_s16 = sadd.s32 1, %s3518_s16   ;;  %s5742_s12 = smov %s3510_s14 }
 0x38e   : > { %p11_p8 = scmp.ge.s32.totalorder %s14_s16, 6   ;;  %s5743_s13 = smov %s3514_s15 }
 0x38f   : > { %s5744_s14 = smov %s5747_s17  ;;  %s5745_s15 = smov %s5751_s18 }
 0x390   :  { %13 = sbr.rel (!%p11_p8) target bundleno = 3 (0x3), region = 70 }

</bundles_post_ra>
